<compile_context>
chip_gen: v5e
topology: v5e:2x2
jax: 0.10.0
libtpu: 0.0.40
codegen_flags: <defaults>
</compile_context>

<pallas_src>
import functools

import jax
import jax.numpy as jnp
from jax.experimental import pallas as pl
from jax.experimental.pallas import tpu as pltpu


# --------------------------------------------------------------------------- config
def _round_up(x, m):
    return (x + m - 1) // m * m


def _pick_tile(dim, candidates):
    """Largest candidate that divides `dim`, else the full dim (a block equal to the
    full array dim always satisfies the (8,128) rule)."""
    for c in candidates:
        if c <= dim and dim % c == 0:
            return c
    return dim


def _tpu_vmem_capacity_bytes():
    try:
        cap = getattr(pltpu.get_tpu_info(), "vmem_capacity_bytes", None)
        if cap:
            return int(cap)
    except Exception:
        pass
    return 64 * 1024 * 1024  # conservative default: v7x per-TensorCore VMEM


_VMEM_CAP = _tpu_vmem_capacity_bytes()
# ~48 MiB on v7x (64 MiB/TC), ~96 MiB on v5e/v6e (128 MiB/TC)
_VMEM_LIMIT = min(3 * _VMEM_CAP // 4, 112 * 1024 * 1024)
_BIG_VMEM = _VMEM_CAP >= 100 * 1024 * 1024


# -------------------------------------------------------- kernel 1: direct 3x3 conv
def _conv3x3_tap_kernel(x_ref, w_ref, b_ref, o_ref, *, th, wp, relu):
    """One (1, th, wp, Cout) output tile of a stride-1/pad-1 3x3 conv.

    The halo-padded activation block is resident across the row-tile grid axis
    (constant block index), so the 9 taps below are pure VMEM reads feeding 9 MXU
    matmuls that accumulate in f32 before bias + ReLU.  No im2col tensor in HBM.
    """
    row0 = pl.program_id(1) * th
    cin = x_ref.shape[-1]
    cout = o_ref.shape[-1]
    acc = jnp.zeros((th * wp, cout), jnp.float32)
    for dy in range(3):
        for dx in range(3):
            patch = x_ref[0, pl.ds(row0 + dy, th), pl.ds(dx, wp), :]  # (th, wp, Cin)
            acc = acc + jnp.dot(patch.reshape(th * wp, cin),
                                w_ref[dy * 3 + dx],
                                preferred_element_type=jnp.float32)
    y = acc + b_ref[...]
    if relu:
        y = jnp.maximum(y, 0.0)
    o_ref[...] = y.reshape(1, th, wp, cout).astype(o_ref.dtype)


def pallas_conv3x3_same(x_nhwc, w_hwio, b, relu=True, out_dtype=jnp.bfloat16):
    """3x3 / stride-1 / pad-1 conv as an in-kernel 9-tap accumulation (no im2col)."""
    n, h, w, c = x_nhwc.shape
    kh, kw, cin, cout = w_hwio.shape
    assert (kh, kw) == (3, 3) and cin == c
    hp = max(_round_up(h, 8), 8)      # output-row tiles in multiples of 8
    wp = max(_round_up(w, 16), 16)    # 16: bf16 sublane packing -> free reshapes
    # 1-pixel halo pad + alignment pad: ~1.06x the activation, vs 9x for im2col.
    xp = jnp.pad(x_nhwc.astype(jnp.bfloat16),
                 ((0, 0), (1, hp - h + 1), (1, wp - w + 1), (0, 0)))
    w9 = w_hwio.reshape(9, cin, cout).astype(jnp.bfloat16)
    b2 = b.reshape(1, cout).astype(jnp.float32)
    th = _pick_tile(hp, (64, 32, 16, 8) if _BIG_VMEM else (32, 16, 8))
    grid = (n, hp // th)

    out = pl.pallas_call(
        functools.partial(_conv3x3_tap_kernel, th=th, wp=wp, relu=relu),
        out_shape=jax.ShapeDtypeStruct((n, hp, wp, cout), out_dtype),
        grid_spec=pltpu.PrefetchScalarGridSpec(
            num_scalar_prefetch=0,
            grid=grid,
            in_specs=[
                # constant block index over the row-tile axis -> DMA'd once per n
                pl.BlockSpec((1, hp + 2, wp + 2, cin), lambda i, r: (i, 0, 0, 0)),
                pl.BlockSpec((9, cin, cout), lambda i, r: (0, 0, 0)),   # resident
                pl.BlockSpec((1, cout), lambda i, r: (0, 0)),           # resident
            ],
            out_specs=pl.BlockSpec((1, th, wp, cout), lambda i, r: (i, r, 0, 0)),
        ),
        compiler_params=pltpu.CompilerParams(
            dimension_semantics=("parallel", "arbitrary"),
            vmem_limit_bytes=_VMEM_LIMIT,
        ),
    )(xp, w9, b2)
    return out[:, :h, :w, :]


# ------------------------------------------------ kernel 2: full-K resident matmul
def _linear_kernel(x_ref, w_ref, b_ref, o_ref, *, relu):
    y = jnp.dot(x_ref[...], w_ref[...], preferred_element_type=jnp.float32)
    y = y + b_ref[...]
    if relu:
        y = jnp.maximum(y, 0.0)
    o_ref[...] = y.astype(o_ref.dtype)


def pallas_linear(x, w, b, relu=False, out_dtype=jnp.bfloat16):
    """x:[M,K] @ w:[K,N] + b; bf16 MXU inputs, f32 accumulation.  The bf16 weight
    slab is kept full-K VMEM-resident: no K grid axis, no accumulator scratch, no
    per-M-tile weight re-fetch."""
    M, K = x.shape
    Kw, N = w.shape
    assert K == Kw
    tn = N if N <= 512 else _pick_tile(N, (512, 256, 128))
    if K * tn * 2 > _VMEM_LIMIT // 4:
        # TODO(synk): K-tiled accumulating variant for weights too large to keep
        # resident; every matmul in this model fits comfortably, so keep XLA here.
        y = x.astype(jnp.float32) @ w.astype(jnp.float32) + b
        return (jnp.maximum(y, 0.0) if relu else y).astype(out_dtype)

    xb = x.astype(jnp.bfloat16)
    wb = w.astype(jnp.bfloat16)
    b2 = b.reshape(1, N).astype(jnp.float32)
    tm_cap = 1024 if _BIG_VMEM else 512          # 256-aligned for the 2x256^2 MXU
    tm = min(tm_cap, _round_up(M, 16))           # bf16 packs 16 sublanes per vreg
    grid = (pl.cdiv(M, tm), pl.cdiv(N, tn))

    return pl.pallas_call(
        functools.partial(_linear_kernel, relu=relu),
        out_shape=jax.ShapeDtypeStruct((M, N), out_dtype),
        grid_spec=pltpu.PrefetchScalarGridSpec(
            num_scalar_prefetch=0,
            grid=grid,
            in_specs=[
                pl.BlockSpec((tm, K), lambda i, j: (i, 0)),
                pl.BlockSpec((K, tn), lambda i, j: (0, j)),   # full-K weight slab
                pl.BlockSpec((1, tn), lambda i, j: (0, j)),
            ],
            out_specs=pl.BlockSpec((tm, tn), lambda i, j: (i, j)),
        ),
        compiler_params=pltpu.CompilerParams(
            dimension_semantics=("parallel", "parallel"),
            vmem_limit_bytes=_VMEM_LIMIT,
        ),
    )(xb, wb, b2)


# -------------------------------------------- kernel 3: fused bb3-conv + ASPP 1x1
def _double_linear_kernel(x_ref, w1_ref, b1_ref, w2_ref, b2_ref, o_ref, *, relu2):
    """relu(x @ w1 + b1) @ w2 + b2 (+ReLU); the 960-wide intermediate stays in VMEM."""
    h = jnp.dot(x_ref[...], w1_ref[...], preferred_element_type=jnp.float32)
    h = jnp.maximum(h + b1_ref[...], 0.0)
    y = jnp.dot(h.astype(w2_ref.dtype), w2_ref[...],
                preferred_element_type=jnp.float32)
    y = y + b2_ref[...]
    if relu2:
        y = jnp.maximum(y, 0.0)
    o_ref[...] = y.astype(o_ref.dtype)


def pallas_double_linear(x, w1, b1, w2, b2, relu2=True, out_dtype=jnp.bfloat16):
    """Fused backbone-final conv + ASPP 1x1 projection: the 960-wide activation
    never round-trips HBM.  Both weight slabs are VMEM-resident across M tiles."""
    M, K1 = x.shape
    K1w, N1 = w1.shape
    N1w, N2 = w2.shape
    assert K1 == K1w and N1 == N1w
    xb = x.astype(jnp.bfloat16)
    w1b = w1.astype(jnp.bfloat16)
    w2b = w2.astype(jnp.bfloat16)
    b1r = b1.reshape(1, N1).astype(jnp.float32)
    b2r = b2.reshape(1, N2).astype(jnp.float32)
    tm_cap = 512 if _BIG_VMEM else 256           # 256-aligned M tiles
    tm = min(tm_cap, _round_up(M, 16))
    grid = (pl.cdiv(M, tm),)

    # TODO(synk): the four resident weight/bias blocks below are candidates for
    # pipeline_mode=pl.Buffered(1) (constant index_map needs no double buffer);
    # kept at the default to stay on the well-trodden lowering path (<2 MiB cost).
    return pl.pallas_call(
        functools.partial(_double_linear_kernel, relu2=relu2),
        out_shape=jax.ShapeDtypeStruct((M, N2), out_dtype),
        grid_spec=pltpu.PrefetchScalarGridSpec(
            num_scalar_prefetch=0,
            grid=grid,
            in_specs=[
                pl.BlockSpec((tm, K1), lambda i: (i, 0)),
                pl.BlockSpec((K1, N1), lambda i: (0, 0)),    # resident weight 1
                pl.BlockSpec((1, N1), lambda i: (0, 0)),
                pl.BlockSpec((N1, N2), lambda i: (0, 0)),    # resident weight 2
                pl.BlockSpec((1, N2), lambda i: (0, 0)),
            ],
            out_specs=pl.BlockSpec((tm, N2), lambda i: (i, 0)),
        ),
        compiler_params=pltpu.CompilerParams(
            dimension_semantics=("parallel",),
            vmem_limit_bytes=_VMEM_LIMIT,
        ),
    )(xb, w1b, b1r, w2b, b2r)


# ------------------------------------------------------------------------ conv glue
def dense(x2d, w, b, relu=False, out_dtype=None):
    """Lane-dense problems -> Pallas MXU kernel; tiny-channel layers (N or K < 128)
    -> plain XLA, where pallas_call overhead + masked stores lose."""
    K = x2d.shape[1]
    N = w.shape[1]
    if N >= 128 and K >= 128:
        return pallas_linear(x2d, w, b, relu=relu,
                             out_dtype=jnp.bfloat16 if out_dtype is None else out_dtype)
    y = x2d.astype(jnp.float32) @ w.astype(jnp.float32) + b
    y = jnp.maximum(y, 0.0) if relu else y
    return y if out_dtype is None else y.astype(out_dtype)


def conv1x1(x_nhwc, w, b, relu=False):
    """1x1 conv == per-pixel matmul.  w: [Cin, Cout]."""
    n, h, wd, c = x_nhwc.shape
    y = dense(x_nhwc.reshape(n * h * wd, c), w, b, relu=relu)
    return y.reshape(n, h, wd, w.shape[1])


def _im2col(x_nhwc, kh, kw, stride, pad):
    n, h, wd, c = x_nhwc.shape
    xp = jnp.pad(x_nhwc, ((0, 0), (pad, pad), (pad, pad), (0, 0)))
    ho = (h + 2 * pad - kh) // stride + 1
    wo = (wd + 2 * pad - kw) // stride + 1
    cols = []
    for i in range(kh):
        for j in range(kw):
            cols.append(xp[:, i:i + ho * stride:stride, j:j + wo * stride:stride, :])
    patches = jnp.concatenate(cols, axis=-1)               # [N, Ho, Wo, kh*kw*C]
    return patches.reshape(n * ho * wo, kh * kw * c), (n, ho, wo)


def conv3x3(x_nhwc, w_hwio, b, stride=1, pad=1, relu=False):
    """3x3 conv.  Wide stride-1 convs -> direct Pallas 9-tap kernel (no im2col);
    everything else -> im2col + matmul (XLA for tiny channels)."""
    kh, kw, cin, cout = w_hwio.shape
    if stride == 1 and pad == 1 and cin >= 128 and cout >= 128:
        try:
            return pallas_conv3x3_same(x_nhwc, w_hwio, b, relu=relu)
        except Exception:
            # Safety net: if the direct-tap kernel does not lower on the local
            # toolchain, fall back to im2col + the full-K resident matmul below.
            pass
    if cout >= 128 and kh * kw * cin >= 128:
        x_nhwc = x_nhwc.astype(jnp.bfloat16)   # halve the im2col-amplified bytes
    patches, (n, ho, wo) = _im2col(x_nhwc, kh, kw, stride, pad)
    w2d = w_hwio.reshape(kh * kw * cin, cout)
    y = dense(patches, w2d, b, relu=relu)
    return y.reshape(n, ho, wo, cout)


def conv3x3_then_1x1(x_nhwc, w1_hwio, b1, w2, b2, stride=2, pad=1):
    """Fused backbone-final 3x3 conv (stride 2) + ASPP 1x1 projection (+ReLU each)."""
    # TODO(synk): the strided 3x3 still goes through im2col (2.25x amplification at
    # only 64 input channels); an in-kernel strided-tap variant would remove it.
    patches, (n, ho, wo) = _im2col(x_nhwc.astype(jnp.bfloat16), 3, 3, stride, pad)
    w1_2d = w1_hwio.reshape(-1, w1_hwio.shape[-1])
    y = pallas_double_linear(patches, w1_2d, b1, w2, b2, relu2=True)
    return y.reshape(n, ho, wo, w2.shape[1])


# ------------------------------------------------------------------------ parameters
def _kaiming(key, shape, fan_out):
    # kaiming_normal_, mode='fan_out', nonlinearity='relu'
    std = (2.0 / fan_out) ** 0.5
    return std * jax.random.normal(key, shape, dtype=jnp.float32)


def init_params(key):
    ks = jax.random.split(key, 8)
    p = {}
    # conv1: Conv2d(7, 3, 1)                         weight [Cin=7, Cout=3]
    p["conv1_w"] = _kaiming(ks[0], (7, 3), fan_out=3 * 1 * 1)
    p["conv1_b"] = jnp.zeros((3,), jnp.float32)
    # TODO(synk): pretrained MobileNetV3-Large backbone not reproducible in-script;
    # stand-in: three strided 3x3 convs (output stride 8, 960 output channels).
    p["bb1_w"] = _kaiming(ks[1], (3, 3, 3, 16), fan_out=16 * 9)
    p["bb1_b"] = jnp.zeros((16,), jnp.float32)
    p["bb2_w"] = _kaiming(ks[2], (3, 3, 16, 64), fan_out=64 * 9)
    p["bb2_b"] = jnp.zeros((64,), jnp.float32)
    p["bb3_w"] = _kaiming(ks[3], (3, 3, 64, 960), fan_out=960 * 9)
    p["bb3_b"] = jnp.zeros((960,), jnp.float32)
    # TODO(synk): ASPP dilated branches / image pooling omitted; 1x1 projection 960->256 kept.
    p["aspp_w"] = _kaiming(ks[4], (960, 256), fan_out=256 * 1 * 1)
    p["aspp_b"] = jnp.zeros((256,), jnp.float32)
    # DeepLabHead intermediate Conv2d(256,256,3,pad=1) (+BN folded) + ReLU
    p["head_w"] = _kaiming(ks[5], (3, 3, 256, 256), fan_out=256 * 9)
    p["head_b"] = jnp.zeros((256,), jnp.float32)
    # main.classifier[4] = Conv2d(256, 1, kernel_size=1)
    p["cls_w"] = _kaiming(ks[6], (256, 1), fan_out=1 * 1 * 1)
    p["cls_b"] = jnp.zeros((1,), jnp.float32)
    return p


# --------------------------------------------------------------------------- forward
def transfer_learning_forward(params, x_nchw):
    """x_nchw: [N, 7, H, W] float32 -> out: [N, 1, H, W] float32."""
    n, c, h, w = x_nchw.shape
    assert c == 7
    x = jnp.transpose(x_nchw, (0, 2, 3, 1))                       # -> NHWC

    # x1 = self.conv1(input)   (7 -> 3, 1x1; tiny channels -> XLA path)
    x = conv1x1(x, params["conv1_w"], params["conv1_b"], relu=False)

    # simplified backbone (output stride 8); small-channel layers stay in XLA
    x = conv3x3(x, params["bb1_w"], params["bb1_b"], stride=2, pad=1, relu=True)
    x = conv3x3(x, params["bb2_w"], params["bb2_b"], stride=2, pad=1, relu=True)

    # bb3 (64 -> 960, stride 2) fused with the ASPP 1x1 projection (960 -> 256);
    # bf16 output (consumer casts to bf16 anyway).
    x = conv3x3_then_1x1(x, params["bb3_w"], params["bb3_b"],
                         params["aspp_w"], params["aspp_b"], stride=2, pad=1)

    # DeepLabHead 3x3 conv (256 -> 256) + ReLU: direct Pallas 9-tap kernel, bf16 out
    x = conv3x3(x, params["head_w"], params["head_b"], stride=1, pad=1, relu=True)

    # main.classifier[4]: 1x1 conv 256 -> 1  (N=1 -> XLA path, avoids masked stores)
    x = conv1x1(x, params["cls_w"], params["cls_b"], relu=False)

    # F.interpolate(..., size=input, mode='bilinear', align_corners=False)
    x = jax.image.resize(x, (n, h, w, 1), method="bilinear")
    return jnp.transpose(x, (0, 3, 1, 2))                         # -> NCHW [N,1,H,W]


# ------------------------------------------------------------- pure-XLA f32 reference
def _conv2d_ref(x_nhwc, w_hwio, b, stride, pad, relu):
    y = jax.lax.conv_general_dilated(
        x_nhwc.astype(jnp.float32), w_hwio.astype(jnp.float32),
        window_strides=(stride, stride), padding=[(pad, pad), (pad, pad)],
        dimension_numbers=("NHWC", "HWIO", "NHWC"))
    y = y + b
    return jnp.maximum(y, 0.0) if relu else y


def reference_forward(params, x_nchw):
    n, c, h, w = x_nchw.shape
    x = jnp.transpose(x_nchw, (0, 2, 3, 1)).astype(jnp.float32)
    x = x @ params["conv1_w"] + params["conv1_b"]
    x = _conv2d_ref(x, params["bb1_w"], params["bb1_b"], 2, 1, True)
    x = _conv2d_ref(x, params["bb2_w"], params["bb2_b"], 2, 1, True)
    x = _conv2d_ref(x, params["bb3_w"], params["bb3_b"], 2, 1, True)
    x = jnp.maximum(x @ params["aspp_w"] + params["aspp_b"], 0.0)
    x = _conv2d_ref(x, params["head_w"], params["head_b"], 1, 1, True)
    x = x @ params["cls_w"] + params["cls_b"]
    x = jax.image.resize(x, (n, h, w, 1), method="bilinear")
    return jnp.transpose(x, (0, 3, 1, 2))


# ------------------------------------------------------------------------------ main
if __name__ == "__main__":
    key = jax.random.PRNGKey(0)
    pkey, xkey = jax.random.split(key)
    params = init_params(pkey)

    # small shapes consistent with the module: batch=2, 7 input channels, 16x16 spatial
    x = jax.random.normal(xkey, (2, 7, 16, 16), dtype=jnp.float32)

    # Kept eager (each pallas_call compiles individually) so the conv-kernel fallback
    # in conv3x3 can catch lowering issues on older toolchains.
    out = transfer_learning_forward(params, x)
    out = jax.block_until_ready(out)

    assert out.shape == (2, 1, 16, 16), out.shape
    assert out.dtype == jnp.float32
    assert bool(jnp.all(jnp.isfinite(out)))

    # tolerance-check the bf16 Pallas path against the pure-f32 XLA reference
    ref = jax.block_until_ready(reference_forward(params, x))
    rel_err = float(jnp.linalg.norm(out - ref) / (jnp.linalg.norm(ref) + 1e-6))
    assert rel_err < 0.1, rel_err

    print("KERNEL_OK")
</pallas_src>

<mosaic_0001>
module attributes {stable_mosaic.version = 11 : i64} {
  func.func @_double_linear_kernel(%arg0: i32, %arg1: memref<16x576xbf16, #tpu.memory_space<vmem>>, %arg2: memref<576x960xbf16, #tpu.memory_space<vmem>>, %arg3: memref<1x960xf32, #tpu.memory_space<vmem>>, %arg4: memref<960x256xbf16, #tpu.memory_space<vmem>>, %arg5: memref<1x256xf32, #tpu.memory_space<vmem>>, %arg6: memref<16x256xbf16, #tpu.memory_space<vmem>>) attributes {dimension_semantics = [#tpu.dimension_semantics<parallel>], iteration_bounds = array<i64: 1>, scalar_prefetch = 0 : i64, scratch_operands = 0 : i64, tpu.core_type = #tpu.core_type<tc>, window_params = [{transform_indices = @transform_0, window_bounds = array<i64: 16, 576>}, {pipeline_mode = #tpu.pipeline_mode<synchronous>, transform_indices = @transform_1, window_bounds = array<i64: 576, 960>}, {pipeline_mode = #tpu.pipeline_mode<synchronous>, transform_indices = @transform_2, window_bounds = array<i64: 1, 960>}, {pipeline_mode = #tpu.pipeline_mode<synchronous>, transform_indices = @transform_3, window_bounds = array<i64: 960, 256>}, {pipeline_mode = #tpu.pipeline_mode<synchronous>, transform_indices = @transform_4, window_bounds = array<i64: 1, 256>}, {transform_indices = @transform_5, window_bounds = array<i64: 16, 256>}]} {
    %c0 = arith.constant 0 : index
    %c0_0 = arith.constant 0 : index
    %0 = vector.load %arg1[%c0, %c0_0] : memref<16x576xbf16, #tpu.memory_space<vmem>>, vector<16x576xbf16>
    %c0_1 = arith.constant 0 : index
    %c0_2 = arith.constant 0 : index
    %1 = vector.load %arg2[%c0_1, %c0_2] : memref<576x960xbf16, #tpu.memory_space<vmem>>, vector<576x960xbf16>
    %cst = arith.constant dense<0.000000e+00> : vector<16x960xf32>
    %2 = tpu.matmul %0, %1, %cst {dimension_numbers = #tpu.dot_dimension_numbers<[1], [0], [0], [1], [0, 0, 1, 1], [], []>} : vector<16x576xbf16>, vector<576x960xbf16>, vector<16x960xf32> -> vector<16x960xf32>
    %c0_3 = arith.constant 0 : index
    %c0_4 = arith.constant 0 : index
    %3 = vector.load %arg3[%c0_3, %c0_4] : memref<1x960xf32, #tpu.memory_space<vmem>>, vector<1x960xf32>
    %4 = vector.broadcast %3 : vector<1x960xf32> to vector<16x960xf32>
    %5 = arith.addf %2, %4 : vector<16x960xf32>
    %cst_5 = arith.constant 0.000000e+00 : f32
    %6 = vector.broadcast %cst_5 : f32 to vector<16x960xf32>
    %7 = arith.maximumf %5, %6 : vector<16x960xf32>
    %8 = arith.truncf %7 : vector<16x960xf32> to vector<16x960xbf16>
    %c0_6 = arith.constant 0 : index
    %c0_7 = arith.constant 0 : index
    %9 = vector.load %arg4[%c0_6, %c0_7] : memref<960x256xbf16, #tpu.memory_space<vmem>>, vector<960x256xbf16>
    %cst_8 = arith.constant dense<0.000000e+00> : vector<16x256xf32>
    %10 = tpu.matmul %8, %9, %cst_8 {dimension_numbers = #tpu.dot_dimension_numbers<[1], [0], [0], [1], [0, 0, 1, 1], [], []>} : vector<16x960xbf16>, vector<960x256xbf16>, vector<16x256xf32> -> vector<16x256xf32>
    %c0_9 = arith.constant 0 : index
    %c0_10 = arith.constant 0 : index
    %11 = vector.load %arg5[%c0_9, %c0_10] : memref<1x256xf32, #tpu.memory_space<vmem>>, vector<1x256xf32>
    %12 = vector.broadcast %11 : vector<1x256xf32> to vector<16x256xf32>
    %13 = arith.addf %10, %12 : vector<16x256xf32>
    %cst_11 = arith.constant 0.000000e+00 : f32
    %14 = vector.broadcast %cst_11 : f32 to vector<16x256xf32>
    %15 = arith.maximumf %13, %14 : vector<16x256xf32>
    %16 = arith.truncf %15 : vector<16x256xf32> to vector<16x256xbf16>
    %c0_12 = arith.constant 0 : index
    %c0_13 = arith.constant 0 : index
    %17 = vector.load %arg6[%c0_12, %c0_13] : memref<16x256xbf16, #tpu.memory_space<vmem>>, vector<16x256xbf16>
    tpu.vector_store %arg6[%c0_12, %c0_13], %16 {strides = array<i32>} : memref<16x256xbf16, #tpu.memory_space<vmem>>, vector<16x256xbf16>,
    return
  }
  func.func @transform_0(%arg0: i32) -> (i32, i32) {
    %c0_i32 = arith.constant 0 : i32
    %c0_i32_0 = arith.constant 0 : i32
    return %arg0, %c0_i32 : i32, i32
  }
  func.func @transform_1(%arg0: i32) -> (i32, i32) {
    %c0_i32 = arith.constant 0 : i32
    %c0_i32_0 = arith.constant 0 : i32
    %c0_i32_1 = arith.constant 0 : i32
    return %c0_i32, %c0_i32_0 : i32, i32
  }
  func.func @transform_2(%arg0: i32) -> (i32, i32) {
    %c0_i32 = arith.constant 0 : i32
    %c0_i32_0 = arith.constant 0 : i32
    %c0_i32_1 = arith.constant 0 : i32
    return %c0_i32, %c0_i32_0 : i32, i32
  }
  func.func @transform_3(%arg0: i32) -> (i32, i32) {
    %c0_i32 = arith.constant 0 : i32
    %c0_i32_0 = arith.constant 0 : i32
    %c0_i32_1 = arith.constant 0 : i32
    return %c0_i32, %c0_i32_0 : i32, i32
  }
  func.func @transform_4(%arg0: i32) -> (i32, i32) {
    %c0_i32 = arith.constant 0 : i32
    %c0_i32_0 = arith.constant 0 : i32
    %c0_i32_1 = arith.constant 0 : i32
    return %c0_i32, %c0_i32_0 : i32, i32
  }
  func.func @transform_5(%arg0: i32) -> (i32, i32) {
    %c0_i32 = arith.constant 0 : i32
    %c0_i32_0 = arith.constant 0 : i32
    return %arg0, %c0_i32 : i32, i32
  }
}

</mosaic_0001>

<bundles_post_ra>
// kernel: tpu_custom_call.1
= control target key start
LH: loop header
LB: loop body
LE: loop exit
PB: predicated region body
PF: predicated region fallthrough
CT: control target
= control target key end

     0   :  { %10 = vsyncpa [#allocation3], 0  ;;  %s5951_s0 = inlined_call_operand.hbm [shape: bf16[8,576], index: 0, kind: input, shape index: {}]   ;;  %s5952_s1 = inlined_call_operand.hbm [shape: bf16[576,960], index: 1, kind: input, shape index: {}]   ;;  %s5953_s2 = inlined_call_operand.hbm [shape: f32[1,960], index: 2, kind: input, shape index: {}]   ;;  %s5954_s3 = inlined_call_operand.hbm [shape: bf16[960,256], index: 3, kind: input, shape index: {}]   ;;  %s5955_s4 = inlined_call_operand.hbm [shape: f32[1,256], index: 4, kind: input, shape index: {}]   ;;  %s5956_s5 = inlined_call_operand.hbm [shape: bf16[8,256], index: 5, kind: output, shape index: {}]  }
   0x1   :  { %11 = vsyncpa [#allocation6], 0 }
   0x2   :  { %12 = vsyncpa [#allocation9], 0 }
   0x3   :  { %13 = vsyncpa [#allocation4], 0  ;;  %s31_s20 = sshll.u32 %s5952_s1, 4  ;;  %s32_s20 = int_to_ptr.hbm [resolvable:$true] %s31_s20 }
   0x4   :  { %17 = vsyncadd [#allocation3], 320  ;;  %s5684_s21 = smov [#allocation5]   ;;  %s55_s25 = sshll.u32 %s5954_s3, 4  ;;  %s56_s25 = int_to_ptr.hbm [resolvable:$true] %s55_s25 }
   0x5   :  { %s33_s22 = sshll.u32 %s5684_s21, 4  ;;  %s5685_s26 = smov 512   ;;  %s34_s22 = int_to_ptr.vmem [resolvable:$true] %s33_s22 }
   0x6   :  { %s5686_s27 = smov 32   ;;  %s5687_s28 = smov [#allocation8]  }
   0x7   :  { %39 = dma.hbm_to_vmem [thread:$0]  %s32_s20, 36864, %s34_s22, [#allocation6], %s5685_s26, %s5685_s26, %s5686_s27  }
   0x8   :  { %s57_s29 = sshll.u32 %s5687_s28, 4  ;;  %s5688_s30 = smov 128   ;;  %s58_s29 = int_to_ptr.vmem [resolvable:$true] %s57_s29 }
   0x9   :  { %s5689_s6 = smov 8   ;;  %s18_s8 = sshll.u32 %s5951_s0, 4  ;;  %s19_s8 = int_to_ptr.hbm [resolvable:$true] %s18_s8 }
   0xa   :  { %63 = dma.hbm_to_vmem [thread:$0]  %s56_s25, 15360, %s58_s29, [#allocation9], %s5688_s30, %s5688_s30, %s5689_s6  }
   0xb   :  { %s5690_s9 = smov [#allocation2]   ;;  %s45_s12 = sshll.u32 %s5953_s2, 4  ;;  %s46_s12 = int_to_ptr.hbm [resolvable:$true] %s45_s12 }
   0xc   :  { %s20_s3 = sshll.u32 %s5690_s9, 4  ;;  %s5691_s13 = smov 320   ;;  %s21_s3 = int_to_ptr.vmem [resolvable:$true] %s20_s3 }
   0xd   :  { %s5692_s14 = smov 20   ;;  %s5693_s15 = smov [#allocation7]  }
   0xe   :  { %26 = dma.hbm_to_vmem [thread:$0]  %s19_s8, 320, %s21_s3, [#allocation3], %s5691_s13, %s5691_s13, %s5692_s14  }
   0xf   :  { %s47_s16 = sshll.u32 %s5693_s15, 4  ;;  %s69_s19 = sshll.u32 %s5955_s4, 4  ;;  %s48_s16 = int_to_ptr.vmem [resolvable:$true] %s47_s16  ;;  %s70_s19 = int_to_ptr.hbm [resolvable:$true] %s69_s19 }
  0x10   :  { %50 = dma.hbm_to_vmem [thread:$0]  %s46_s12, 128, %s48_s16, [#allocation6]  }
  0x11   :  { %s5694_s0 = smov [#allocation10]  }
  0x12   :  { %s71_s20 = sshll.u32 %s5694_s0, 4  ;;  %s72_s20 = int_to_ptr.vmem [resolvable:$true] %s71_s20 }
  0x13   :  { %74 = dma.hbm_to_vmem [thread:$0]  %s70_s19, 32, %s72_s20, [#allocation9]  }
  0x14   :  { %5676 = dma.done.wait [#allocation3], 640  }
  0x15   :  { %5677 = vsyncadd [#allocation3], 4294966656 }
  0x16   :  { %5678 = dma.done.wait [#allocation6], 36992  }
  0x17   :  { %5679 = vsyncadd [#allocation6], 4294930304 }
  0x18   :  { %5680 = dma.done.wait [#allocation9], 15392  }
  0x19   :  { %5681 = vsyncadd [#allocation9], 4294951904  ;;  %v3689_v0 = vld [vmem:[#allocation5 + $0x1c0] sm:$0xf]  ;;  %vm1873_vm0 = vcmask 523264  }
  0x1a   :  { %v5170_v1 = vld [vmem:[#allocation5 + $0x1dc] sm:$0xf0] }
  0x1b   :  { %v3945_v2 = vld [vmem:[#allocation5 + $0x3c0] sm:$0xf]  ;;  %v3690_v3 = vor.u32 %v5170_v1, %v3689_v0 }
  0x1c   :  { %v5234_v4 = vld [vmem:[#allocation5 + $0x3dc] sm:$0xf0] }
  0x1d   :  { %v4201_v5 = vld [vmem:[#allocation5 + $0x5c0] sm:$0xf]  ;;  %v3946_v7 = vor.u32 %v5234_v4, %v3945_v2  ;;  %1877 = vmatpush.bf16.msra.mxu0 %v3690_v3 }
  0x1e   :  { %v5298_v6 = vld [vmem:[#allocation5 + $0x5dc] sm:$0xf0] }
  0x1f   :  { %v4202_v8 = vor.u32 %v5298_v6, %v4201_v5  ;;  %v4457_v9 = vld [vmem:[#allocation5 + $0x7c0] sm:$0xf]  ;;  %1891 = vmatpush.bf16.msra.mxu1 %v3946_v7 }
  0x20   :  { %v5362_v10 = vld [vmem:[#allocation5 + $0x7dc] sm:$0xf0] }
  0x21   :  { %v3657_v11 = vld [vmem:[#allocation5 + $0x180] sm:$0xf]  ;;  %v4458_v12 = vor.u32 %v5362_v10, %v4457_v9  ;;  %1905 = vmatpush.bf16.msra.mxu2 %v4202_v8 }
  0x22   :  { %v5162_v13 = vld [vmem:[#allocation5 + $0x19c] sm:$0xf0] }
  0x23   :  { %v3913_v14 = vld [vmem:[#allocation5 + $0x380] sm:$0xf]  ;;  %v3658_v16 = vor.u32 %v5162_v13, %v3657_v11  ;;  %1919 = vmatpush.bf16.msra.mxu3 %v4458_v12 }
  0x24   :  { %v5226_v15 = vld [vmem:[#allocation5 + $0x39c] sm:$0xf0] }
  0x25   :  { %v3914_v17 = vor.u32 %v5226_v15, %v3913_v14  ;;  %v4169_v18 = vld [vmem:[#allocation5 + $0x580] sm:$0xf]  ;;  %1878 = vmatpush.bf16.msra.mxu0 %v3658_v16 }
  0x26   :  { %v5290_v19 = vld [vmem:[#allocation5 + $0x59c] sm:$0xf0] }
  0x27   :  { %v4425_v20 = vld [vmem:[#allocation5 + $0x780] sm:$0xf]  ;;  %v4170_v21 = vor.u32 %v5290_v19, %v4169_v18  ;;  %1892 = vmatpush.bf16.msra.mxu1 %v3914_v17 }
  0x28   :  { %v5354_v22 = vld [vmem:[#allocation5 + $0x79c] sm:$0xf0] }
  0x29   :  { %v3625_v23 = vld [vmem:[#allocation5 + $0x140] sm:$0xf]  ;;  %v4426_v25 = vor.u32 %v5354_v22, %v4425_v20  ;;  %1906 = vmatpush.bf16.msra.mxu2 %v4170_v21 }
  0x2a   :  { %v5154_v24 = vld [vmem:[#allocation5 + $0x15c] sm:$0xf0] }
  0x2b   :  { %v3881_v26 = vld [vmem:[#allocation5 + $0x340] sm:$0xf]  ;;  %v3626_v29 = vor.u32 %v5154_v24, %v3625_v23  ;;  %1920 = vmatpush.bf16.msra.mxu3 %v4426_v25 }
  0x2c   :  { %v5218_v27 = vld [vmem:[#allocation5 + $0x35c] sm:$0xf0] }
  0x2d   :  { %v4137_v28 = vld [vmem:[#allocation5 + $0x540] sm:$0xf]  ;;  %v3882_v33 = vor.u32 %v5218_v27, %v3881_v26  ;;  %1879 = vmatpush.bf16.msra.mxu0 %v3626_v29 }
  0x2e   :  { %v5282_v30 = vld [vmem:[#allocation5 + $0x55c] sm:$0xf0] }
  0x2f   :  { %v4393_v31 = vld [vmem:[#allocation5 + $0x740] sm:$0xf]  ;;  %v4138_v34 = vor.u32 %v5282_v30, %v4137_v28  ;;  %1893 = vmatpush.bf16.msra.mxu1 %v3882_v33  ;;  %v5166_v30 = vld [vmem:[#allocation5 + $0x1c4] sm:$0xf] }
  0x30   :  { %v5346_v32 = vld [vmem:[#allocation5 + $0x75c] sm:$0xf0]  ;;  %v3947_v33 = vld [vmem:[#allocation5 + $0x3e0] sm:$0xf0] }
  0x31   :  { %v3593_v35 = vld [vmem:[#allocation5 + $0x100] sm:$0xf]  ;;  %v4394_v38 = vor.u32 %v5346_v32, %v4393_v31  ;;  %1907 = vmatpush.bf16.msra.mxu2 %v4138_v34  ;;  %v3691_v31 = vld [vmem:[#allocation5 + $0x1e0] sm:$0xf0] }
  0x32   :  { %v5146_v36 = vld [vmem:[#allocation5 + $0x11c] sm:$0xf0]  ;;  %v5230_v32 = vld [vmem:[#allocation5 + $0x3c4] sm:$0xf] }
  0x33   :  { %v3849_v37 = vld [vmem:[#allocation5 + $0x300] sm:$0xf]  ;;  %v3594_v44 = vor.u32 %v5146_v36, %v3593_v35  ;;  %1921 = vmatpush.bf16.msra.mxu3 %v4394_v38  ;;  %v5294_v34 = vld [vmem:[#allocation5 + $0x5c4] sm:$0xf]  ;;  %v5107_v38 = vld [vmem:[#allocation2 + $0x10] sm:$0xf0] }
  0x34   :  { %v5210_v39 = vld [vmem:[#allocation5 + $0x31c] sm:$0xf0]  ;;  %v4203_v36 = vld [vmem:[#allocation5 + $0x5e0] sm:$0xf0] }
  0x35   :  { %v4105_v40 = vld [vmem:[#allocation5 + $0x500] sm:$0xf]  ;;  %v3850_v45 = vor.u32 %v5210_v39, %v3849_v37  ;;  %1880 = vmatpush.bf16.msra.mxu0 %v3594_v44  ;;  %v3445_v37 = vld [vmem:[#allocation2] sm:$0xf] }
  0x36   :  { %v5274_v41 = vld [vmem:[#allocation5 + $0x51c] sm:$0xf0] }
  0x37   :  { %v4361_v42 = vld [vmem:[#allocation5 + $0x700] sm:$0xf]  ;;  %v4106_v46 = vor.u32 %v5274_v41, %v4105_v40  ;;  %1894 = vmatpush.bf16.msra.mxu1 %v3850_v45 }
  0x38   :  { %v5338_v43 = vld [vmem:[#allocation5 + $0x71c] sm:$0xf0] }
  0x39   :  { %v3561_v47 = vld [vmem:[#allocation5 + $0xc0] sm:$0xf]  ;;  %v4362_v50 = vor.u32 %v5338_v43, %v4361_v42  ;;  %1908 = vmatpush.bf16.msra.mxu2 %v4106_v46  ;;  %v5108_v46 = vld [vmem:[#allocation2 + $0x18] sm:$0xf0] }
  0x3a   :  { %v5138_v48 = vld [vmem:[#allocation5 + $0xdc] sm:$0xf0] }
  0x3b   :  { %v3817_v49 = vld [vmem:[#allocation5 + $0x2c0] sm:$0xf]  ;;  %v3562_v56 = vor.u32 %v5138_v48, %v3561_v47  ;;  %1922 = vmatpush.bf16.msra.mxu3 %v4362_v50  ;;  %v5106_v47 = vld [vmem:[#allocation2 + $0xc] sm:$0xf]  ;;  %v3455_v48 = vld [vmem:[#allocation2 + $0x1c] sm:$0xf0]  ;;  %v3950_v50 = vor.u32 %v5230_v32, %v3947_v33 }
  0x3c   :  { %v5202_v51 = vld [vmem:[#allocation5 + $0x2dc] sm:$0xf0]  ;;  %v5198_v33 = vld [vmem:[#allocation5 + $0x2c4] sm:$0xf] }
  0x3d   :  { %v4073_v52 = vld [vmem:[#allocation5 + $0x4c0] sm:$0xf]  ;;  %v3818_v57 = vor.u32 %v5202_v51, %v3817_v49  ;;  %1881 = vmatpush.bf16.msra.mxu0 %v3562_v56  ;;  %v3694_v49 = vor.u32 %v5166_v30, %v3691_v31  ;;  %v5158_v51 = vld [vmem:[#allocation5 + $0x184] sm:$0xf] }
  0x3e   :  { %v5266_v53 = vld [vmem:[#allocation5 + $0x4dc] sm:$0xf0]  ;;  %v3915_v56 = vld [vmem:[#allocation5 + $0x3a0] sm:$0xf0] }
  0x3f   :  { %v4329_v54 = vld [vmem:[#allocation5 + $0x6c0] sm:$0xf]  ;;  %v4074_v58 = vor.u32 %v5266_v53, %v4073_v52  ;;  %1895 = vmatpush.bf16.msra.mxu1 %v3818_v57  ;;  %v3659_v52 = vld [vmem:[#allocation5 + $0x1a0] sm:$0xf0]  ;;  %v5105_v57 = vld [vmem:[#allocation2 + $0x4] sm:$0xf] }
  0x40   :  { %v5330_v55 = vld [vmem:[#allocation5 + $0x6dc] sm:$0xf0]  ;;  %v5222_v53 = vld [vmem:[#allocation5 + $0x384] sm:$0xf] }
  0x41   :  { %v3529_v59 = vld [vmem:[#allocation5 + $0x80] sm:$0xf]  ;;  %v4330_v62 = vor.u32 %v5330_v55, %v4329_v54  ;;  %1909 = vmatpush.bf16.msra.mxu2 %v4074_v58  ;;  %v4206_v54 = vor.u32 %v5294_v34, %v4203_v36  ;;  %v5744_v55 = vor.u32 %v5107_v38, %v3445_v37  ;;  %v3447_v58 = vld [vmem:[#allocation2 + $0x14] sm:$0xf0]  ;;  %v3563_v30 = vld [vmem:[#allocation5 + $0xe0] sm:$0xf0] }
  0x42   :  { %v5130_v60 = vld [vmem:[#allocation5 + $0x9c] sm:$0xf0]  ;;  %v3819_v34 = vld [vmem:[#allocation5 + $0x2e0] sm:$0xf0] }
  0x43   :  { %v3785_v61 = vld [vmem:[#allocation5 + $0x280] sm:$0xf]  ;;  %v3530_v4 = vor.u32 %v5130_v60, %v3529_v59  ;;  %1923 = vmatpush.bf16.msra.mxu3 %v4330_v62  ;;  %v5286_v59 = vld [vmem:[#allocation5 + $0x584] sm:$0xf]  ;;  %v5748_v62 = vor.u32 %v5106_v47, %v3455_v48 }
  0x44   :  { %v5194_v63 = vld [vmem:[#allocation5 + $0x29c] sm:$0xf0]  ;;  %v4171_v60 = vld [vmem:[#allocation5 + $0x5a0] sm:$0xf0] }
  0x45   :  { %v4041_v0 = vld [vmem:[#allocation5 + $0x480] sm:$0xf]  ;;  %v3786_v6 = vor.u32 %v5194_v63, %v3785_v61  ;;  %1882 = vmatpush.bf16.msra.mxu0 %v3530_v4  ;;  %v4075_v36 = vld [vmem:[#allocation5 + $0x4e0] sm:$0xf0] }
  0x46   :  { %v5258_v1 = vld [vmem:[#allocation5 + $0x49c] sm:$0xf0]  ;;  %v5350_v37 = vld [vmem:[#allocation5 + $0x784] sm:$0xf] }
  0x47   :  { %v4297_v2 = vld [vmem:[#allocation5 + $0x680] sm:$0xf]  ;;  %v4042_v7 = vor.u32 %v5258_v1, %v4041_v0  ;;  %1896 = vmatpush.bf16.msra.mxu1 %v3786_v6  ;;  %v5750_v0 = vor.u32 %v5105_v57, %v3447_v58  ;;  %v3662_v1 = vor.u32 %v5158_v51, %v3659_v52  ;;  %v4174_v6 = vor.u32 %v5286_v59, %v4171_v60  ;;  %v4427_v38 = vld [vmem:[#allocation5 + $0x7a0] sm:$0xf0] }
  0x48   :  { %v5322_v3 = vld [vmem:[#allocation5 + $0x69c] sm:$0xf0]  ;;  %v5190_v47 = vld [vmem:[#allocation5 + $0x284] sm:$0xf] }
  0x49   :  { %v3497_v5 = vld [vmem:[#allocation5 + $0x40] sm:$0xf]  ;;  %v4298_v11 = vor.u32 %v5322_v3, %v4297_v2  ;;  %1910 = vmatpush.bf16.msra.mxu2 %v4042_v7  ;;  %v3918_v2 = vor.u32 %v5222_v53, %v3915_v56  ;;  %v3627_v7 = vld [vmem:[#allocation5 + $0x160] sm:$0xf0] }
  0x4a   :  { %v5122_v8 = vld [vmem:[#allocation5 + $0x5c] sm:$0xf0]  ;;  %v3787_v48 = vld [vmem:[#allocation5 + $0x2a0] sm:$0xf0] }
  0x4b   :  { %v3753_v9 = vld [vmem:[#allocation5 + $0x240] sm:$0xf]  ;;  %v3498_v18 = vor.u32 %v5122_v8, %v3497_v5  ;;  %1924 = vmatpush.bf16.msra.mxu3 %v4298_v11  ;;  %v5150_v5 = vld [vmem:[#allocation5 + $0x144] sm:$0xf]  ;;  %v3790_v56 = vor.u32 %v5190_v47, %v3787_v48  ;;  %v3633_v47 = vld [vmem:[#allocation5 + $0x148] sm:$0xf] }
  0x4c   :  { %v5186_v10 = vld [vmem:[#allocation5 + $0x25c] sm:$0xf0]  ;;  %v5214_v8 = vld [vmem:[#allocation5 + $0x344] sm:$0xf]  ;;  %v5155_v48 = vld [vmem:[#allocation5 + $0x164] sm:$0xf0] }
  0x4d   :  { %v4009_v12 = vld [vmem:[#allocation5 + $0x440] sm:$0xf]  ;;  %v3754_v23 = vor.u32 %v5186_v10, %v3753_v9  ;;  %1883 = vmatpush.bf16.msra.mxu0 %v3498_v18  ;;  %v3883_v9 = vld [vmem:[#allocation5 + $0x360] sm:$0xf0] }
  0x4e   :  { %v5250_v13 = vld [vmem:[#allocation5 + $0x45c] sm:$0xf0]  ;;  %v5278_v10 = vld [vmem:[#allocation5 + $0x544] sm:$0xf] }
  0x4f   :  { %v4265_v14 = vld [vmem:[#allocation5 + $0x640] sm:$0xf]  ;;  %v4010_v24 = vor.u32 %v5250_v13, %v4009_v12  ;;  %1897 = vmatpush.bf16.msra.mxu1 %v3754_v23  ;;  %v4139_v11 = vld [vmem:[#allocation5 + $0x560] sm:$0xf0] }
  0x50   :  { %v5314_v15 = vld [vmem:[#allocation5 + $0x65c] sm:$0xf0]  ;;  %v3595_v18 = vld [vmem:[#allocation5 + $0x120] sm:$0xf0] }
  0x51   :  { %v3465_v16 = vld [vmem:[#allocation5] sm:$0xf]  ;;  %v4266_v28 = vor.u32 %v5314_v15, %v4265_v14  ;;  %1911 = vmatpush.bf16.msra.mxu2 %v4010_v24  ;;  %v3630_v14 = vor.u32 %v5150_v5, %v3627_v7  ;;  %v3886_v15 = vor.u32 %v5214_v8, %v3883_v9  ;;  %v4107_v23 = vld [vmem:[#allocation5 + $0x520] sm:$0xf0] }
  0x52   :  { %v5114_v17 = vld [vmem:[#allocation5 + $0x1c] sm:$0xf0]  ;;  %v5358_v24 = vld [vmem:[#allocation5 + $0x7c4] sm:$0xf] }
  0x53   :  { %v3721_v19 = vld [vmem:[#allocation5 + $0x200] sm:$0xf]  ;;  %v3466_v35 = vor.u32 %v5114_v17, %v3465_v16  ;;  %1925 = vmatpush.bf16.msra.mxu3 %v4266_v28  ;;  %v5142_v17 = vld [vmem:[#allocation5 + $0x104] sm:$0xf] }
  0x54   :  { %v5178_v20 = vld [vmem:[#allocation5 + $0x21c] sm:$0xf0]  ;;  %v4043_v51 = vld [vmem:[#allocation5 + $0x4a0] sm:$0xf0] }
  0x55   :  { %v3977_v21 = vld [vmem:[#allocation5 + $0x400] sm:$0xf]  ;;  %v3722_v39 = vor.u32 %v5178_v20, %v3721_v19  ;;  %1884 = vmatpush.bf16.msra.mxu0 %v3466_v35  ;;  %v4142_v19 = vor.u32 %v5278_v10, %v4139_v11  ;;  %v5206_v20 = vld [vmem:[#allocation5 + $0x304] sm:$0xf] }
  0x56   :  { %v5242_v22 = vld [vmem:[#allocation5 + $0x41c] sm:$0xf0]  ;;  %v5262_v35 = vld [vmem:[#allocation5 + $0x4c4] sm:$0xf] }
  0x57   :  { %v4233_v25 = vld [vmem:[#allocation5 + $0x600] sm:$0xf]  ;;  %v3978_v40 = vor.u32 %v5242_v22, %v3977_v21  ;;  %1898 = vmatpush.bf16.msra.mxu1 %v3722_v39  ;;  %v3851_v21 = vld [vmem:[#allocation5 + $0x320] sm:$0xf0]  ;;  %v3461_v39 = vld [vmem:[#allocation2 + $0x10] sm:$0xf] }
  0x58   :  { %v5306_v26 = vld [vmem:[#allocation5 + $0x61c] sm:$0xf0]  ;;  %1885 = vmatmul.bf16.vlgmr.msra.gmra.mxu0 %v5744_v55  ;;  %v5270_v22 = vld [vmem:[#allocation5 + $0x504] sm:$0xf]  ;;  %v3854_v28 = vor.u32 %v5206_v20, %v3851_v21  ;;  %v3697_v20 = vld [vmem:[#allocation5 + $0x1c8] sm:$0xf] }
  0x59   :  { %v4585_v27 = vld [vmem:[#allocation5 + $0x8c0] sm:$0xf]  ;;  %v4234_v44 = vor.u32 %v5306_v26, %v4233_v25  ;;  %1912 = vmatpush.bf16.msra.mxu2 %v3978_v40  ;;  %v4459_v25 = vld [vmem:[#allocation5 + $0x7e0] sm:$0xf0]  ;;  %v4110_v31 = vor.u32 %v5270_v22, %v4107_v23  ;;  %v5109_v40 = vld [vmem:[#allocation2 + $0x20] sm:$0xf0] }
  0x5a   :  { %v5394_v29 = vld [vmem:[#allocation5 + $0x8dc] sm:$0xf0]  ;;  %1899 = vmatmul.bf16.vlgmr.msra.gmra.mxu1 %v5750_v0  ;;  %v4462_v32 = vor.u32 %v5358_v24, %v4459_v25  ;;  %v5342_v52 = vld [vmem:[#allocation5 + $0x744] sm:$0xf]  ;;  %v5171_v21 = vld [vmem:[#allocation5 + $0x1e4] sm:$0xf0] }
  0x5b   :  { %v4553_v41 = vld [vmem:[#allocation5 + $0x880] sm:$0xf]  ;;  %v4586_v45 = vor.u32 %v5394_v29, %v4585_v27  ;;  %1926 = vmatpush.bf16.msra.mxu3 %v4234_v44  ;;  %1947 = vmatpush.bf16.msrb.mxu1 %v3694_v49  ;;  %v3598_v27 = vor.u32 %v5142_v17, %v3595_v18  ;;  %v5134_v29 = vld [vmem:[#allocation5 + $0xc4] sm:$0xf]  ;;  %v3953_v24 = vld [vmem:[#allocation5 + $0x3c8] sm:$0xf] }
  0x5c   :  { %v5386_v42 = vld [vmem:[#allocation5 + $0x89c] sm:$0xf0]  ;;  %v3531_v44 = vld [vmem:[#allocation5 + $0xa0] sm:$0xf0]  ;;  %v5235_v25 = vld [vmem:[#allocation5 + $0x3e4] sm:$0xf0] }
  0x5d   :  { %v3453_v43 = vld [vmem:[#allocation2 + $0x8] sm:$0xf]  ;;  %1937 = vmatpush.bf16.msrb.mxu0 %v4586_v45  ;;  %v4554_v63 = vor.u32 %v5386_v42, %v4553_v41  ;;  %1961 = vmatpush.bf16.msrb.mxu2 %v3950_v50  ;;  %v3566_v41 = vor.u32 %v5134_v29, %v3563_v30  ;;  %v3822_v42 = vor.u32 %v5198_v33, %v3819_v34  ;;  %v5254_v49 = vld [vmem:[#allocation5 + $0x484] sm:$0xf] }
  0x5e   :  { %v5746_v61 = vor.u32 %v5108_v46, %v3453_v43  ;;  %v4521_v3 = vld [vmem:[#allocation5 + $0x840] sm:$0xf]  ;;  %1927 = vmatmul.bf16.vlgmr.msra.gmra.mxu3 %v5748_v62  ;;  %v5126_v43 = vld [vmem:[#allocation5 + $0x84] sm:$0xf]  ;;  %v4078_v45 = vor.u32 %v5262_v35, %v4075_v36  ;;  %v4430_v46 = vor.u32 %v5350_v37, %v4427_v38  ;;  %v5756_v50 = vor.u32 %v5109_v40, %v3461_v39  ;;  %v3665_v35 = vld [vmem:[#allocation5 + $0x188] sm:$0xf] }
  0x5f   :  { %v5378_v4 = vld [vmem:[#allocation5 + $0x85c] sm:$0xf0]  ;;  %1975 = vmatpush.bf16.msrb.mxu3 %v4206_v54  ;;  %1948 = vmatpush.bf16.msrb.mxu1 %v3662_v1  ;;  %v4395_v53 = vld [vmem:[#allocation5 + $0x760] sm:$0xf0]  ;;  %v3534_v54 = vor.u32 %v5126_v43, %v3531_v44  ;;  %v4046_v59 = vor.u32 %v5254_v49, %v4043_v51  ;;  %v3698_v29 = vor.u32 %v5171_v21, %v3697_v20  ;;  %v5163_v36 = vld [vmem:[#allocation5 + $0x1a4] sm:$0xf0] }
  0x60   :  { %1913 = vmatmul.bf16.vlgmr.msra.gmra.mxu2 %v5746_v61  ;;  %v4522_v12 = vor.u32 %v5378_v4, %v4521_v3  ;;  %v4489_v13 = vld [vmem:[#allocation5 + $0x800] sm:$0xf]  ;;  %v5118_v57 = vld [vmem:[#allocation5 + $0x44] sm:$0xf]  ;;  %v4398_v60 = vor.u32 %v5342_v52, %v4395_v53  ;;  %v3954_v33 = vor.u32 %v5235_v25, %v3953_v24  ;;  %v3921_v37 = vld [vmem:[#allocation5 + $0x388] sm:$0xf] }
  0x61   :  { %1938 = vmatpush.bf16.msrb.mxu0 %v4554_v63  ;;  %1962 = vmatpush.bf16.msrb.mxu2 %v3918_v2  ;;  %v5370_v16 = vld [vmem:[#allocation5 + $0x81c] sm:$0xf0]  ;;  %v3499_v58 = vld [vmem:[#allocation5 + $0x60] sm:$0xf0]  ;;  %v5227_v38 = vld [vmem:[#allocation5 + $0x3a4] sm:$0xf0] }
  0x62   :  { %v4490_v26 = vor.u32 %v5370_v16, %v4489_v13  ;;  %v5182_v63 = vld [vmem:[#allocation5 + $0x244] sm:$0xf]  ;;  %v3889_v49 = vld [vmem:[#allocation5 + $0x348] sm:$0xf] }
  0x63   :  { %1976 = vmatpush.bf16.msrb.mxu3 %v4174_v6  ;;  %1949 = vmatpush.bf16.msrb.mxu1 %v3630_v14  ;;  %v3755_v1 = vld [vmem:[#allocation5 + $0x260] sm:$0xf0]  ;;  %v3502_v6 = vor.u32 %v5118_v57, %v3499_v58  ;;  %v5219_v51 = vld [vmem:[#allocation5 + $0x364] sm:$0xf0] }
  0x64   :  { %v5246_v2 = vld [vmem:[#allocation5 + $0x444] sm:$0xf]  ;;  %v3758_v7 = vor.u32 %v5182_v63, %v3755_v1  ;;  %v3601_v63 = vld [vmem:[#allocation5 + $0x108] sm:$0xf] }
  0x65   :  { %1939 = vmatpush.bf16.msrb.mxu0 %v4522_v12  ;;  %1963 = vmatpush.bf16.msrb.mxu2 %v3886_v15  ;;  %v4011_v3 = vld [vmem:[#allocation5 + $0x460] sm:$0xf0]  ;;  %v5147_v1 = vld [vmem:[#allocation5 + $0x124] sm:$0xf0] }
  0x66   :  { %v5334_v4 = vld [vmem:[#allocation5 + $0x704] sm:$0xf]  ;;  %v4014_v11 = vor.u32 %v5246_v2, %v4011_v3  ;;  %v3857_v2 = vld [vmem:[#allocation5 + $0x308] sm:$0xf] }
  0x67   :  { %1977 = vmatpush.bf16.msrb.mxu3 %v4142_v19  ;;  %1950 = vmatpush.bf16.msrb.mxu1 %v3598_v27  ;;  %v4363_v5 = vld [vmem:[#allocation5 + $0x720] sm:$0xf0]  ;;  %v5211_v3 = vld [vmem:[#allocation5 + $0x324] sm:$0xf0] }
  0x68   :  { %v5110_v8 = vld [vmem:[#allocation5 + $0x4] sm:$0xf]  ;;  %v4366_v12 = vor.u32 %v5334_v4, %v4363_v5  ;;  %v4209_v4 = vld [vmem:[#allocation5 + $0x5c8] sm:$0xf] }
  0x69   :  { %1940 = vmatpush.bf16.msrb.mxu0 %v4490_v26  ;;  %1964 = vmatpush.bf16.msrb.mxu2 %v3854_v28  ;;  %v3467_v9 = vld [vmem:[#allocation5 + $0x20] sm:$0xf0]  ;;  %v5299_v5 = vld [vmem:[#allocation5 + $0x5e4] sm:$0xf0] }
  0x6a   :  { %v5174_v10 = vld [vmem:[#allocation5 + $0x204] sm:$0xf]  ;;  %v3470_v22 = vor.u32 %v5110_v8, %v3467_v9  ;;  %v5363_v8 = vld [vmem:[#allocation5 + $0x7e4] sm:$0xf0] }
  0x6b   :  { %1978 = vmatpush.bf16.msrb.mxu3 %v4110_v31  ;;  %1951 = vmatpush.bf16.msrb.mxu1 %v3566_v41  ;;  %v3723_v13 = vld [vmem:[#allocation5 + $0x220] sm:$0xf0]  ;;  %v3666_v41 = vor.u32 %v5163_v36, %v3665_v35  ;;  %v4433_v20 = vld [vmem:[#allocation5 + $0x788] sm:$0xf] }
  0x6c   :  { %4615 = vmatmul.msk.bf16.vlgmr.msrb.gmra.mxu0 %vm1873_vm0, %v5756_v50  ;;  %v5238_v14 = vld [vmem:[#allocation5 + $0x404] sm:$0xf]  ;;  %v3726_v23 = vor.u32 %v5174_v10, %v3723_v13  ;;  %v3602_v10 = vor.u32 %v5147_v1, %v3601_v63  ;;  %v3569_v13 = vld [vmem:[#allocation5 + $0xc8] sm:$0xf] }
  0x6d   :  { %1989 = vmatpush.bf16.msra.mxu0 %v4462_v32  ;;  %1965 = vmatpush.bf16.msrb.mxu2 %v3822_v42  ;;  %v3979_v15 = vld [vmem:[#allocation5 + $0x420] sm:$0xf0]  ;;  %v5355_v21 = vld [vmem:[#allocation5 + $0x7a4] sm:$0xf0] }
  0x6e   :  { %v5326_v16 = vld [vmem:[#allocation5 + $0x6c4] sm:$0xf]  ;;  %v3982_v26 = vor.u32 %v5238_v14, %v3979_v15  ;;  %v5139_v14 = vld [vmem:[#allocation5 + $0xe4] sm:$0xf0] }
  0x6f   :  { %1979 = vmatpush.bf16.msrb.mxu3 %v4078_v45  ;;  %1952 = vmatpush.bf16.msrb.mxu1 %v3534_v54  ;;  %v4331_v17 = vld [vmem:[#allocation5 + $0x6e0] sm:$0xf0]  ;;  %v3922_v45 = vor.u32 %v5227_v38, %v3921_v37  ;;  %v3825_v15 = vld [vmem:[#allocation5 + $0x2c8] sm:$0xf] }
  0x70   :  { %v5390_v18 = vld [vmem:[#allocation5 + $0x8c4] sm:$0xf]  ;;  %v4334_v27 = vor.u32 %v5326_v16, %v4331_v17  ;;  %v5203_v17 = vld [vmem:[#allocation5 + $0x2e4] sm:$0xf0] }
  0x71   :  { %1990 = vmatpush.bf16.msra.mxu0 %v4430_v46  ;;  %1966 = vmatpush.bf16.msrb.mxu2 %v3790_v56  ;;  %v4587_v19 = vld [vmem:[#allocation5 + $0x8e0] sm:$0xf0]  ;;  %v3634_v56 = vor.u32 %v5155_v48, %v3633_v47  ;;  %v3537_v25 = vld [vmem:[#allocation5 + $0x88] sm:$0xf] }
  0x72   :  { %v4590_v28 = vor.u32 %v5390_v18, %v4587_v19  ;;  %v5318_v30 = vld [vmem:[#allocation5 + $0x684] sm:$0xf]  ;;  %v4177_v18 = vld [vmem:[#allocation5 + $0x588] sm:$0xf] }
  0x73   :  { %1980 = vmatpush.bf16.msrb.mxu3 %v4046_v59  ;;  %1953 = vmatpush.bf16.msrb.mxu1 %v3502_v6  ;;  %v4299_v31 = vld [vmem:[#allocation5 + $0x6a0] sm:$0xf0]  ;;  %v5291_v19 = vld [vmem:[#allocation5 + $0x5a4] sm:$0xf0] }
  0x74   :  { %v5382_v32 = vld [vmem:[#allocation5 + $0x884] sm:$0xf]  ;;  %v4302_v39 = vor.u32 %v5318_v30, %v4299_v31  ;;  %v4178_v24 = vor.u32 %v5291_v19, %v4177_v18  ;;  %v4145_v30 = vld [vmem:[#allocation5 + $0x548] sm:$0xf] }
  0x75   :  { %1991 = vmatpush.bf16.msra.mxu0 %v4398_v60  ;;  %1967 = vmatpush.bf16.msrb.mxu2 %v3758_v7  ;;  %v4555_v34 = vld [vmem:[#allocation5 + $0x8a0] sm:$0xf0]  ;;  %v3890_v60 = vor.u32 %v5219_v51, %v3889_v49  ;;  %v4465_v7 = vld [vmem:[#allocation5 + $0x7c8] sm:$0xf] }
  0x76   :  { %v4558_v40 = vor.u32 %v5382_v32, %v4555_v34  ;;  %v5310_v42 = vld [vmem:[#allocation5 + $0x644] sm:$0xf]  ;;  %v4466_v16 = vor.u32 %v5363_v8, %v4465_v7  ;;  %v5283_v31 = vld [vmem:[#allocation5 + $0x564] sm:$0xf0] }
  0x77   :  { %1981 = vmatpush.bf16.msrb.mxu3 %v4014_v11  ;;  %1954 = vmatpush.bf16.msrb.mxu1 %v3470_v22  ;;  %v4267_v43 = vld [vmem:[#allocation5 + $0x660] sm:$0xf0]  ;;  %v3858_v11 = vor.u32 %v5211_v3, %v3857_v2  ;;  %v3570_v22 = vor.u32 %v5139_v14, %v3569_v13  ;;  %v4401_v32 = vld [vmem:[#allocation5 + $0x748] sm:$0xf]  ;;  %v4146_v36 = vor.u32 %v5283_v31, %v4145_v30  ;;  %v5167_v2 = vld [vmem:[#allocation5 + $0x1cc] sm:$0xf] }
  0x78   :  { %v5374_v44 = vld [vmem:[#allocation5 + $0x844] sm:$0xf]  ;;  %v4270_v52 = vor.u32 %v5310_v42, %v4267_v43  ;;  %v3505_v37 = vld [vmem:[#allocation5 + $0x48] sm:$0xf]  ;;  %v3699_v3 = vld [vmem:[#allocation5 + $0x1e8] sm:$0xf0] }
  0x79   :  { %1992 = vmatpush.bf16.msra.mxu0 %v4366_v12  ;;  %1968 = vmatpush.bf16.msrb.mxu2 %v3726_v23  ;;  %v4523_v46 = vld [vmem:[#allocation5 + $0x860] sm:$0xf0]  ;;  %v4210_v12 = vor.u32 %v5299_v5, %v4209_v4  ;;  %v3826_v23 = vor.u32 %v5203_v17, %v3825_v15  ;;  %v5123_v38 = vld [vmem:[#allocation5 + $0x64] sm:$0xf0]  ;;  %v5159_v15 = vld [vmem:[#allocation5 + $0x18c] sm:$0xf] }
  0x7a   :  { %1955 = vmatmul.bf16.vlgmr.msrb.gmra.mxu1 %v5744_v55  ;;  %v5302_v53 = vld [vmem:[#allocation5 + $0x604] sm:$0xf]  ;;  %v4526_v54 = vor.u32 %v5374_v44, %v4523_v46  ;;  %v4113_v42 = vld [vmem:[#allocation5 + $0x508] sm:$0xf]  ;;  %v3506_v46 = vor.u32 %v5123_v38, %v3505_v37 }
  0x7b   :  { %1982 = vmatpush.bf16.msrb.mxu3 %v3982_v26  ;;  %2007 = vmatpush.bf16.msra.mxu1 %v4590_v28  ;;  %v4235_v57 = vld [vmem:[#allocation5 + $0x620] sm:$0xf0]  ;;  %v5131_v26 = vld [vmem:[#allocation5 + $0xa4] sm:$0xf0]  ;;  %v4434_v28 = vor.u32 %v5355_v21, %v4433_v20 }
  0x7c   :  { %1969 = vmatmul.bf16.vlgmr.msrb.gmra.mxu2 %v5750_v0  ;;  %v5366_v58 = vld [vmem:[#allocation5 + $0x804] sm:$0xf]  ;;  %v4238_v6 = vor.u32 %v5302_v53, %v4235_v57  ;;  %v3538_v34 = vor.u32 %v5131_v26, %v3537_v25  ;;  %v5275_v43 = vld [vmem:[#allocation5 + $0x524] sm:$0xf0] }
  0x7d   :  { %1993 = vmatpush.bf16.msra.mxu0 %v4334_v27  ;;  %2017 = vmatpush.bf16.msra.mxu2 %v3698_v29  ;;  %v4491_v59 = vld [vmem:[#allocation5 + $0x820] sm:$0xf0]  ;;  %v3793_v27 = vld [vmem:[#allocation5 + $0x288] sm:$0xf]  ;;  %v4114_v49 = vor.u32 %v5275_v43, %v4113_v42  ;;  %v3955_v42 = vld [vmem:[#allocation5 + $0x3e8] sm:$0xf0] }
  0x7e   :  { %1983 = vmatmul.bf16.vlgmr.msrb.gmra.mxu3 %v5746_v61  ;;  %v4494_v9 = vor.u32 %v5366_v58, %v4491_v59  ;;  %v5195_v29 = vld [vmem:[#allocation5 + $0x2a4] sm:$0xf0]  ;;  %v5295_v43 = vld [vmem:[#allocation5 + $0x5cc] sm:$0xf] }
  0x7f   :  { %2031 = vmatpush.bf16.msra.mxu3 %v3954_v33  ;;  %2008 = vmatpush.bf16.msra.mxu1 %v4558_v40  ;;  %v5347_v33 = vld [vmem:[#allocation5 + $0x764] sm:$0xf0]  ;;  %v3794_v35 = vor.u32 %v5195_v29, %v3793_v27  ;;  %v5151_v27 = vld [vmem:[#allocation5 + $0x14c] sm:$0xf] }
  0x80   :  { %v4402_v40 = vor.u32 %v5347_v33, %v4401_v32  ;;  %v4369_v44 = vld [vmem:[#allocation5 + $0x708] sm:$0xf] }
  0x81   :  { %1994 = vmatpush.bf16.msra.mxu0 %v4302_v39  ;;  %2018 = vmatpush.bf16.msra.mxu2 %v3666_v41  ;;  %v3761_v39 = vld [vmem:[#allocation5 + $0x248] sm:$0xf] }
  0x82   :  { %v5187_v41 = vld [vmem:[#allocation5 + $0x264] sm:$0xf0] }
  0x83   :  { %2032 = vmatpush.bf16.msra.mxu3 %v3922_v45  ;;  %2009 = vmatpush.bf16.msra.mxu1 %v4526_v54  ;;  %v5339_v45 = vld [vmem:[#allocation5 + $0x724] sm:$0xf0]  ;;  %v3762_v48 = vor.u32 %v5187_v41, %v3761_v39  ;;  %v5143_v39 = vld [vmem:[#allocation5 + $0x10c] sm:$0xf] }
  0x84   :  { %v3473_v47 = vld [vmem:[#allocation5 + $0x8] sm:$0xf]  ;;  %v4370_v54 = vor.u32 %v5339_v45, %v4369_v44  ;;  %v5231_v41 = vld [vmem:[#allocation5 + $0x3cc] sm:$0xf] }
  0x85   :  { %1995 = vmatpush.bf16.msra.mxu0 %v4270_v52  ;;  %2019 = vmatpush.bf16.msra.mxu2 %v3634_v56  ;;  %v5115_v51 = vld [vmem:[#allocation5 + $0x24] sm:$0xf0]  ;;  %v4211_v45 = vld [vmem:[#allocation5 + $0x5e8] sm:$0xf0] }
  0x86   :  { %v3729_v52 = vld [vmem:[#allocation5 + $0x208] sm:$0xf]  ;;  %v3474_v1 = vor.u32 %v5115_v51, %v3473_v47  ;;  %v4467_v47 = vld [vmem:[#allocation5 + $0x7e8] sm:$0xf0] }
  0x87   :  { %2033 = vmatpush.bf16.msra.mxu3 %v3890_v60  ;;  %2010 = vmatpush.bf16.msra.mxu1 %v4494_v9  ;;  %v5179_v53 = vld [vmem:[#allocation5 + $0x224] sm:$0xf0] }
  0x88   :  { %v4081_v56 = vld [vmem:[#allocation5 + $0x4c8] sm:$0xf]  ;;  %v3730_v4 = vor.u32 %v5179_v53, %v3729_v52  ;;  %v3958_v52 = vor.u32 %v5231_v41, %v3955_v42  ;;  %v5135_v53 = vld [vmem:[#allocation5 + $0xcc] sm:$0xf] }
  0x89   :  { %1996 = vmatpush.bf16.msra.mxu0 %v4238_v6  ;;  %2020 = vmatpush.bf16.msra.mxu2 %v3602_v10  ;;  %v5267_v57 = vld [vmem:[#allocation5 + $0x4e4] sm:$0xf0] }
  0x8a   :  { %4616 = vmatmul.msk.bf16.vlgmr.msra.gmra.mxu1 %vm1873_vm0, %v5756_v50  ;;  %v4337_v58 = vld [vmem:[#allocation5 + $0x6c8] sm:$0xf]  ;;  %v4082_v5 = vor.u32 %v5267_v57, %v4081_v56  ;;  %v4214_v56 = vor.u32 %v5295_v43, %v4211_v45  ;;  %v5191_v45 = vld [vmem:[#allocation5 + $0x28c] sm:$0xf] }
  0x8b   :  { %2034 = vmatpush.bf16.msra.mxu3 %v3858_v11  ;;  %2059 = vmatpush.bf16.msrb.mxu1 %v4466_v16  ;;  %v5331_v59 = vld [vmem:[#allocation5 + $0x6e4] sm:$0xf0]  ;;  %v3702_v11 = vor.u32 %v5167_v2, %v3699_v3  ;;  %v3667_v16 = vld [vmem:[#allocation5 + $0x1a8] sm:$0xf0] }
  0x8c   :  { %1997 = vmatmul.bf16.vlgmr.msra.gmra.mxu0 %v5748_v62  ;;  %v4593_v60 = vld [vmem:[#allocation5 + $0x8c8] sm:$0xf]  ;;  %v4338_v6 = vor.u32 %v5331_v59, %v4337_v58  ;;  %v5223_v58 = vld [vmem:[#allocation5 + $0x38c] sm:$0xf] }
  0x8d   :  { %2045 = vmatpush.bf16.msrb.mxu0 %v4210_v12  ;;  %2021 = vmatpush.bf16.msra.mxu2 %v3570_v22  ;;  %v5395_v63 = vld [vmem:[#allocation5 + $0x8e4] sm:$0xf0]  ;;  %v3923_v59 = vld [vmem:[#allocation5 + $0x3a8] sm:$0xf0] }
  0x8e   :  { %v4594_v7 = vor.u32 %v5395_v63, %v4593_v60  ;;  %v4049_v8 = vld [vmem:[#allocation5 + $0x488] sm:$0xf]  ;;  %v5287_v60 = vld [vmem:[#allocation5 + $0x58c] sm:$0xf] }
  0x8f   :  { %2035 = vmatpush.bf16.msra.mxu3 %v3826_v23  ;;  %2060 = vmatpush.bf16.msrb.mxu1 %v4434_v28  ;;  %v5259_v9 = vld [vmem:[#allocation5 + $0x4a4] sm:$0xf0]  ;;  %v3670_v23 = vor.u32 %v5159_v15, %v3667_v16  ;;  %v3635_v28 = vld [vmem:[#allocation5 + $0x168] sm:$0xf0] }
  0x90   :  { %v4305_v10 = vld [vmem:[#allocation5 + $0x688] sm:$0xf]  ;;  %v4050_v17 = vor.u32 %v5259_v9, %v4049_v8  ;;  %v3638_v37 = vor.u32 %v5151_v27, %v3635_v28  ;;  %v4179_v63 = vld [vmem:[#allocation5 + $0x5a8] sm:$0xf0] }
  0x91   :  { %2046 = vmatpush.bf16.msrb.mxu0 %v4178_v24  ;;  %2022 = vmatpush.bf16.msra.mxu2 %v3538_v34  ;;  %v5323_v12 = vld [vmem:[#allocation5 + $0x6a4] sm:$0xf0]  ;;  %v4435_v2 = vld [vmem:[#allocation5 + $0x7a8] sm:$0xf0] }
  0x92   :  { %v4561_v13 = vld [vmem:[#allocation5 + $0x888] sm:$0xf]  ;;  %v4306_v18 = vor.u32 %v5323_v12, %v4305_v10  ;;  %v5215_v9 = vld [vmem:[#allocation5 + $0x34c] sm:$0xf] }
  0x93   :  { %2036 = vmatpush.bf16.msra.mxu3 %v3794_v35  ;;  %2061 = vmatpush.bf16.msrb.mxu1 %v4402_v40  ;;  %v5387_v14 = vld [vmem:[#allocation5 + $0x8a4] sm:$0xf0]  ;;  %v3603_v40 = vld [vmem:[#allocation5 + $0x128] sm:$0xf0] }
  0x94   :  { %v4562_v19 = vor.u32 %v5387_v14, %v4561_v13  ;;  %v4017_v20 = vld [vmem:[#allocation5 + $0x448] sm:$0xf]  ;;  %v3606_v51 = vor.u32 %v5143_v39, %v3603_v40  ;;  %v3891_v10 = vld [vmem:[#allocation5 + $0x368] sm:$0xf0] }
  0x95   :  { %2047 = vmatpush.bf16.msrb.mxu0 %v4146_v36  ;;  %2023 = vmatpush.bf16.msra.mxu2 %v3506_v46  ;;  %v5251_v21 = vld [vmem:[#allocation5 + $0x464] sm:$0xf0]  ;;  %v5359_v46 = vld [vmem:[#allocation5 + $0x7cc] sm:$0xf]  ;;  %v3894_v16 = vor.u32 %v5215_v9, %v3891_v10 }
  0x96   :  { %v4273_v22 = vld [vmem:[#allocation5 + $0x648] sm:$0xf]  ;;  %v4018_v29 = vor.u32 %v5251_v21, %v4017_v20  ;;  %v4470_v57 = vor.u32 %v5359_v46, %v4467_v47  ;;  %v4147_v12 = vld [vmem:[#allocation5 + $0x568] sm:$0xf0] }
  0x97   :  { %2037 = vmatpush.bf16.msra.mxu3 %v3762_v48  ;;  %2062 = vmatpush.bf16.msrb.mxu1 %v4370_v54  ;;  %v5315_v24 = vld [vmem:[#allocation5 + $0x664] sm:$0xf0]  ;;  %v3571_v54 = vld [vmem:[#allocation5 + $0xe8] sm:$0xf0] }
  0x98   :  { %v4529_v25 = vld [vmem:[#allocation5 + $0x848] sm:$0xf]  ;;  %v4274_v32 = vor.u32 %v5315_v24, %v4273_v22  ;;  %v3574_v3 = vor.u32 %v5135_v53, %v3571_v54  ;;  %v5343_v13 = vld [vmem:[#allocation5 + $0x74c] sm:$0xf] }
  0x99   :  { %2048 = vmatpush.bf16.msrb.mxu0 %v4114_v49  ;;  %2024 = vmatpush.bf16.msra.mxu2 %v3474_v1  ;;  %v5379_v26 = vld [vmem:[#allocation5 + $0x864] sm:$0xf0]  ;;  %v5351_v1 = vld [vmem:[#allocation5 + $0x78c] sm:$0xf] }
  0x9a   :  { %v3985_v30 = vld [vmem:[#allocation5 + $0x408] sm:$0xf]  ;;  %v4530_v33 = vor.u32 %v5379_v26, %v4529_v25  ;;  %v4438_v8 = vor.u32 %v5351_v1, %v4435_v2  ;;  %v4403_v14 = vld [vmem:[#allocation5 + $0x768] sm:$0xf0] }
  0x9b   :  { %2038 = vmatpush.bf16.msra.mxu3 %v3730_v4  ;;  %2063 = vmatpush.bf16.msrb.mxu1 %v4338_v6  ;;  %v5243_v31 = vld [vmem:[#allocation5 + $0x424] sm:$0xf0]  ;;  %v3926_v4 = vor.u32 %v5223_v58, %v3923_v59  ;;  %v3539_v6 = vld [vmem:[#allocation5 + $0xa8] sm:$0xf0]  ;;  %v4406_v20 = vor.u32 %v5343_v13, %v4403_v14 }
  0x9c   :  { %2025 = vmatmul.bf16.vlgmr.msra.gmra.mxu2 %v5744_v55  ;;  %v4241_v34 = vld [vmem:[#allocation5 + $0x608] sm:$0xf]  ;;  %v3986_v44 = vor.u32 %v5243_v31, %v3985_v30  ;;  %v5207_v21 = vld [vmem:[#allocation5 + $0x30c] sm:$0xf] }
  0x9d   :  { %2049 = vmatpush.bf16.msrb.mxu0 %v4082_v5  ;;  %2077 = vmatpush.bf16.msrb.mxu2 %v4594_v7  ;;  %v5307_v35 = vld [vmem:[#allocation5 + $0x624] sm:$0xf0]  ;;  %v5127_v5 = vld [vmem:[#allocation5 + $0x8c] sm:$0xf]  ;;  %v4182_v7 = vor.u32 %v5287_v60, %v4179_v63 }
  0x9e   :  { %2039 = vmatmul.bf16.vlgmr.msra.gmra.mxu3 %v5750_v0  ;;  %v4497_v36 = vld [vmem:[#allocation5 + $0x808] sm:$0xf]  ;;  %v4242_v48 = vor.u32 %v5307_v35, %v4241_v34  ;;  %v3542_v15 = vor.u32 %v5127_v5, %v3539_v6  ;;  %v3859_v22 = vld [vmem:[#allocation5 + $0x328] sm:$0xf0] }
  0x9f   :  { %2087 = vmatpush.bf16.msrb.mxu3 %v3702_v11  ;;  %2064 = vmatpush.bf16.msrb.mxu1 %v4306_v18  ;;  %v5371_v38 = vld [vmem:[#allocation5 + $0x824] sm:$0xf0]  ;;  %v5279_v11 = vld [vmem:[#allocation5 + $0x54c] sm:$0xf]  ;;  %v3862_v28 = vor.u32 %v5207_v21, %v3859_v22  ;;  %v3961_v21 = vld [vmem:[#allocation5 + $0x3d0] sm:$0xf] }
  0xa0   :  { %v4498_v49 = vor.u32 %v5371_v38, %v4497_v36  ;;  %v3507_v18 = vld [vmem:[#allocation5 + $0x68] sm:$0xf0] }
  0xa1   :  { %2050 = vmatpush.bf16.msrb.mxu0 %v4050_v17  ;;  %2078 = vmatpush.bf16.msrb.mxu2 %v4562_v19  ;;  %v5119_v17 = vld [vmem:[#allocation5 + $0x4c] sm:$0xf]  ;;  %v4150_v19 = vor.u32 %v5279_v11, %v4147_v12 }
  0xa2   :  { %v4115_v24 = vld [vmem:[#allocation5 + $0x528] sm:$0xf0]  ;;  %v3510_v27 = vor.u32 %v5119_v17, %v3507_v18 }
  0xa3   :  { %2088 = vmatpush.bf16.msrb.mxu3 %v3670_v23  ;;  %2065 = vmatpush.bf16.msrb.mxu1 %v4274_v32  ;;  %v5271_v23 = vld [vmem:[#allocation5 + $0x50c] sm:$0xf] }
  0xa4   :  { %v5335_v25 = vld [vmem:[#allocation5 + $0x70c] sm:$0xf]  ;;  %v4118_v31 = vor.u32 %v5271_v23, %v4115_v24  ;;  %v5236_v23 = vld [vmem:[#allocation5 + $0x3ec] sm:$0xf0] }
  0xa5   :  { %2051 = vmatpush.bf16.msrb.mxu0 %v4018_v29  ;;  %2079 = vmatpush.bf16.msrb.mxu2 %v4530_v33  ;;  %v4371_v26 = vld [vmem:[#allocation5 + $0x728] sm:$0xf0]  ;;  %v4217_v24 = vld [vmem:[#allocation5 + $0x5d0] sm:$0xf] }
  0xa6   :  { %v5111_v29 = vld [vmem:[#allocation5 + $0xc] sm:$0xf]  ;;  %v4374_v32 = vor.u32 %v5335_v25, %v4371_v26  ;;  %v5300_v25 = vld [vmem:[#allocation5 + $0x5ec] sm:$0xf0] }
  0xa7   :  { %2089 = vmatpush.bf16.msrb.mxu3 %v3638_v37  ;;  %2066 = vmatpush.bf16.msrb.mxu1 %v4242_v48  ;;  %v3475_v30 = vld [vmem:[#allocation5 + $0x28] sm:$0xf0] }
  0xa8   :  { %v5199_v33 = vld [vmem:[#allocation5 + $0x2cc] sm:$0xf]  ;;  %v3478_v41 = vor.u32 %v5111_v29, %v3475_v30  ;;  %v5364_v29 = vld [vmem:[#allocation5 + $0x7ec] sm:$0xf0] }
  0xa9   :  { %2052 = vmatpush.bf16.msrb.mxu0 %v3986_v44  ;;  %2080 = vmatpush.bf16.msrb.mxu2 %v4498_v49  ;;  %v3827_v34 = vld [vmem:[#allocation5 + $0x2e8] sm:$0xf0] }
  0xaa   :  { %2067 = vmatmul.bf16.vlgmr.msrb.gmra.mxu1 %v5748_v62  ;;  %v5263_v35 = vld [vmem:[#allocation5 + $0x4cc] sm:$0xf]  ;;  %v3830_v42 = vor.u32 %v5199_v33, %v3827_v34  ;;  %v4218_v33 = vor.u32 %v5300_v25, %v4217_v24  ;;  %v3673_v34 = vld [vmem:[#allocation5 + $0x190] sm:$0xf] }
  0xab   :  { %2090 = vmatpush.bf16.msrb.mxu3 %v3606_v51  ;;  %2115 = vmatpush.bf16.msra.mxu1 %v4214_v56  ;;  %v4083_v36 = vld [vmem:[#allocation5 + $0x4e8] sm:$0xf0]  ;;  %v5132_v24 = vld [vmem:[#allocation5 + $0xac] sm:$0xf0] }
  0xac   :  { %2053 = vmatmul.bf16.vlgmr.msrb.gmra.mxu0 %v5746_v61  ;;  %4617 = vmatmul.msk.bf16.vlgmr.msrb.gmra.mxu2 %vm1873_vm0, %v5756_v50  ;;  %v5327_v37 = vld [vmem:[#allocation5 + $0x6cc] sm:$0xf]  ;;  %v4086_v43 = vor.u32 %v5263_v35, %v4083_v36  ;;  %v5164_v35 = vld [vmem:[#allocation5 + $0x1ac] sm:$0xf0] }
  0xad   :  { %2101 = vmatpush.bf16.msra.mxu0 %v3958_v52  ;;  %2129 = vmatpush.bf16.msra.mxu2 %v4470_v57  ;;  %v4339_v38 = vld [vmem:[#allocation5 + $0x6e8] sm:$0xf0]  ;;  %v3929_v36 = vld [vmem:[#allocation5 + $0x390] sm:$0xf] }
  0xae   :  { %v5391_v39 = vld [vmem:[#allocation5 + $0x8cc] sm:$0xf]  ;;  %v4342_v44 = vor.u32 %v5327_v37, %v4339_v38  ;;  %v5228_v38 = vld [vmem:[#allocation5 + $0x3ac] sm:$0xf0] }
  0xaf   :  { %2091 = vmatpush.bf16.msrb.mxu3 %v3574_v3  ;;  %2116 = vmatpush.bf16.msra.mxu1 %v4182_v7  ;;  %v4595_v40 = vld [vmem:[#allocation5 + $0x8e8] sm:$0xf0]  ;;  %v3801_v25 = vld [vmem:[#allocation5 + $0x290] sm:$0xf] }
  0xb0   :  { %v3795_v46 = vld [vmem:[#allocation5 + $0x2a8] sm:$0xf0]  ;;  %v4598_v48 = vor.u32 %v5391_v39, %v4595_v40  ;;  %v4185_v39 = vld [vmem:[#allocation5 + $0x590] sm:$0xf] }
  0xb1   :  { %2102 = vmatpush.bf16.msra.mxu0 %v3926_v4  ;;  %2130 = vmatpush.bf16.msra.mxu2 %v4438_v8  ;;  %v5255_v47 = vld [vmem:[#allocation5 + $0x48c] sm:$0xf]  ;;  %v3798_v56 = vor.u32 %v5191_v45, %v3795_v46  ;;  %v5292_v40 = vld [vmem:[#allocation5 + $0x5ac] sm:$0xf0] }
  0xb2   :  { %v4051_v49 = vld [vmem:[#allocation5 + $0x4a8] sm:$0xf0]  ;;  %v4186_v45 = vor.u32 %v5292_v40, %v4185_v39  ;;  %v3641_v46 = vld [vmem:[#allocation5 + $0x150] sm:$0xf] }
  0xb3   :  { %2092 = vmatpush.bf16.msrb.mxu3 %v3542_v15  ;;  %2117 = vmatpush.bf16.msra.mxu1 %v4150_v19  ;;  %v5319_v51 = vld [vmem:[#allocation5 + $0x68c] sm:$0xf]  ;;  %v4054_v57 = vor.u32 %v5255_v47, %v4051_v49  ;;  %v3705_v19 = vld [vmem:[#allocation5 + $0x1d0] sm:$0xf] }
  0xb4   :  { %v4307_v52 = vld [vmem:[#allocation5 + $0x6a8] sm:$0xf0]  ;;  %v5156_v47 = vld [vmem:[#allocation5 + $0x16c] sm:$0xf0] }
  0xb5   :  { %2103 = vmatpush.bf16.msra.mxu0 %v3894_v16  ;;  %2131 = vmatpush.bf16.msra.mxu2 %v4406_v20  ;;  %v5383_v53 = vld [vmem:[#allocation5 + $0x88c] sm:$0xf]  ;;  %v4310_v58 = vor.u32 %v5319_v51, %v4307_v52  ;;  %v5172_v20 = vld [vmem:[#allocation5 + $0x1ec] sm:$0xf0] }
  0xb6   :  { %v4563_v54 = vld [vmem:[#allocation5 + $0x8a8] sm:$0xf0]  ;;  %v5220_v51 = vld [vmem:[#allocation5 + $0x36c] sm:$0xf0] }
  0xb7   :  { %2093 = vmatpush.bf16.msrb.mxu3 %v3510_v27  ;;  %2118 = vmatpush.bf16.msra.mxu1 %v4118_v31  ;;  %v5183_v59 = vld [vmem:[#allocation5 + $0x24c] sm:$0xf]  ;;  %v4566_v1 = vor.u32 %v5383_v53, %v4563_v54  ;;  %v3706_v31 = vor.u32 %v5172_v20, %v3705_v19  ;;  %v4153_v52 = vld [vmem:[#allocation5 + $0x550] sm:$0xf] }
  0xb8   :  { %v3763_v60 = vld [vmem:[#allocation5 + $0x268] sm:$0xf0]  ;;  %v5284_v53 = vld [vmem:[#allocation5 + $0x56c] sm:$0xf0] }
  0xb9   :  { %2104 = vmatpush.bf16.msra.mxu0 %v3862_v28  ;;  %2132 = vmatpush.bf16.msra.mxu2 %v4374_v32  ;;  %v5247_v63 = vld [vmem:[#allocation5 + $0x44c] sm:$0xf]  ;;  %v3766_v7 = vor.u32 %v5183_v59, %v3763_v60  ;;  %v4473_v28 = vld [vmem:[#allocation5 + $0x7d0] sm:$0xf]  ;;  %v3962_v32 = vor.u32 %v5236_v23, %v3961_v21  ;;  %v4154_v59 = vor.u32 %v5284_v53, %v4153_v52 }
  0xba   :  { %v4019_v2 = vld [vmem:[#allocation5 + $0x468] sm:$0xf0]  ;;  %v4474_v37 = vor.u32 %v5364_v29, %v4473_v28  ;;  %v4409_v54 = vld [vmem:[#allocation5 + $0x750] sm:$0xf] }
  0xbb   :  { %2094 = vmatpush.bf16.msrb.mxu3 %v3478_v41  ;;  %2119 = vmatpush.bf16.msra.mxu1 %v4086_v43  ;;  %v5311_v3 = vld [vmem:[#allocation5 + $0x64c] sm:$0xf]  ;;  %v4022_v10 = vor.u32 %v5247_v63, %v4019_v2  ;;  %v4441_v41 = vld [vmem:[#allocation5 + $0x790] sm:$0xf]  ;;  %v3674_v43 = vor.u32 %v5164_v35, %v3673_v34 }
  0xbc   :  { %v4275_v4 = vld [vmem:[#allocation5 + $0x668] sm:$0xf0]  ;;  %v3609_v60 = vld [vmem:[#allocation5 + $0x110] sm:$0xf] }
  0xbd   :  { %2105 = vmatpush.bf16.msra.mxu0 %v3830_v42  ;;  %2133 = vmatpush.bf16.msra.mxu2 %v4342_v44  ;;  %v5375_v5 = vld [vmem:[#allocation5 + $0x84c] sm:$0xf]  ;;  %v4278_v11 = vor.u32 %v5311_v3, %v4275_v4  ;;  %v5356_v42 = vld [vmem:[#allocation5 + $0x7ac] sm:$0xf0]  ;;  %v3930_v44 = vor.u32 %v5228_v38, %v3929_v36  ;;  %v5778_v38 = vld [vmem:[#allocation7] sm:$0xff] }
  0xbe   :  { %2095 = vmatmul.bf16.vlgmr.msrb.gmra.mxu3 %v5744_v55  ;;  %v4531_v6 = vld [vmem:[#allocation5 + $0x868] sm:$0xf0]  ;;  %v4442_v49 = vor.u32 %v5356_v42, %v4441_v41  ;;  %v5148_v63 = vld [vmem:[#allocation5 + $0x12c] sm:$0xf0] }
  0xbf   :  { %2147 = vmatpush.bf16.msra.mxu3 %v4598_v48  ;;  %v5175_v8 = vld [vmem:[#allocation5 + $0x20c] sm:$0xf]  ;;  %2120 = vmatpush.bf16.msra.mxu1 %v4054_v57  ;;  %v4534_v15 = vor.u32 %v5375_v5, %v4531_v6  ;;  %v3897_v48 = vld [vmem:[#allocation5 + $0x350] sm:$0xf]  ;;  %v3642_v57 = vor.u32 %v5156_v47, %v3641_v46  ;;  %v392_v46 = vperm.slane %v5778_v38, 0 }
  0xc0   :  { %v3731_v9 = vld [vmem:[#allocation5 + $0x228] sm:$0xf0]  ;;  %v5212_v3 = vld [vmem:[#allocation5 + $0x32c] sm:$0xf0] }
  0xc1   :  { %2106 = vmatpush.bf16.msra.mxu0 %v3798_v56  ;;  %2134 = vmatpush.bf16.msra.mxu2 %v4310_v58  ;;  %v5239_v12 = vld [vmem:[#allocation5 + $0x40c] sm:$0xf]  ;;  %v3734_v22 = vor.u32 %v5175_v8, %v3731_v9  ;;  %v5348_v56 = vld [vmem:[#allocation5 + $0x76c] sm:$0xf0]  ;;  %v3898_v58 = vor.u32 %v5220_v51, %v3897_v48  ;;  %v3610_v8 = vor.u32 %v5148_v63, %v3609_v60 }
  0xc2   :  { %v3987_v13 = vld [vmem:[#allocation5 + $0x428] sm:$0xf0]  ;;  %v4410_v2 = vor.u32 %v5348_v56, %v4409_v54  ;;  %v4121_v4 = vld [vmem:[#allocation5 + $0x510] sm:$0xf] }
  0xc3   :  { %v5303_v14 = vld [vmem:[#allocation5 + $0x60c] sm:$0xf]  ;;  %2148 = vmatpush.bf16.msra.mxu3 %v4566_v1  ;;  %2121 = vmatpush.bf16.msra.mxu1 %v4022_v10  ;;  %v3990_v26 = vor.u32 %v5239_v12, %v3987_v13  ;;  %v3865_v1 = vld [vmem:[#allocation5 + $0x310] sm:$0xf] }
  0xc4   :  { %v4243_v16 = vld [vmem:[#allocation5 + $0x628] sm:$0xf0]  ;;  %v5276_v5 = vld [vmem:[#allocation5 + $0x52c] sm:$0xf0]  ;;  %v3866_v9 = vor.u32 %v5212_v3, %v3865_v1 }
  0xc5   :  { %v5367_v17 = vld [vmem:[#allocation5 + $0x80c] sm:$0xf]  ;;  %2107 = vmatpush.bf16.msra.mxu0 %v3766_v7  ;;  %2135 = vmatpush.bf16.msra.mxu2 %v4278_v11  ;;  %v4246_v27 = vor.u32 %v5303_v14, %v4243_v16  ;;  %v4377_v6 = vld [vmem:[#allocation5 + $0x710] sm:$0xf]  ;;  %v4122_v10 = vor.u32 %v5276_v5, %v4121_v4  ;;  %v3707_v5 = vld [vmem:[#allocation5 + $0x1f0] sm:$0xf0] }
  0xc6   :  { %v4499_v18 = vld [vmem:[#allocation5 + $0x828] sm:$0xf0]  ;;  %v5340_v7 = vld [vmem:[#allocation5 + $0x72c] sm:$0xf0] }
  0xc7   :  { %2149 = vmatpush.bf16.msra.mxu3 %v4534_v15  ;;  %v4502_v30 = vor.u32 %v5367_v17, %v4499_v18  ;;  %2122 = vmatpush.bf16.msra.mxu1 %v3990_v26  ;;  %v3577_v11 = vld [vmem:[#allocation5 + $0xd0] sm:$0xf]  ;;  %v4378_v14 = vor.u32 %v5340_v7, %v4377_v6  ;;  %v5232_v6 = vld [vmem:[#allocation5 + $0x3d4] sm:$0xf] }
  0xc8   :  { %v5140_v12 = vld [vmem:[#allocation5 + $0xec] sm:$0xf0]  ;;  %v3963_v7 = vld [vmem:[#allocation5 + $0x3f0] sm:$0xf0] }
  0xc9   :  { %2108 = vmatpush.bf16.msra.mxu0 %v3734_v22  ;;  %2136 = vmatpush.bf16.msra.mxu2 %v4246_v27  ;;  %v3833_v13 = vld [vmem:[#allocation5 + $0x2d0] sm:$0xf]  ;;  %v3578_v20 = vor.u32 %v5140_v12, %v3577_v11  ;;  %v4219_v11 = vld [vmem:[#allocation5 + $0x5f0] sm:$0xf0] }
  0xca   :  { %2123 = vmatmul.bf16.vlgmr.msra.gmra.mxu1 %v5746_v61  ;;  %v5204_v15 = vld [vmem:[#allocation5 + $0x2ec] sm:$0xf0] }
  0xcb   :  { %2150 = vmatpush.bf16.msra.mxu3 %v4502_v30  ;;  %2171 = vmatpush.bf16.msrb.mxu1 %v3962_v32  ;;  %v4089_v16 = vld [vmem:[#allocation5 + $0x4d0] sm:$0xf]  ;;  %v3834_v21 = vor.u32 %v5204_v15, %v3833_v13 }
  0xcc   :  { %2109 = vmatmul.bf16.vlgmr.msra.gmra.mxu0 %v5750_v0  ;;  %2137 = vmatmul.bf16.vlgmr.msra.gmra.mxu2 %v5748_v62  ;;  %v5268_v17 = vld [vmem:[#allocation5 + $0x4ec] sm:$0xf0] }
  0xcd   :  { %2157 = vmatpush.bf16.msrb.mxu0 %v3706_v31  ;;  %2185 = vmatpush.bf16.msrb.mxu2 %v4218_v33  ;;  %v4345_v18 = vld [vmem:[#allocation5 + $0x6d0] sm:$0xf]  ;;  %v4090_v22 = vor.u32 %v5268_v17, %v4089_v16  ;;  %v3966_v17 = vor.u32 %v5232_v6, %v3963_v7  ;;  %v5200_v7 = vld [vmem:[#allocation5 + $0x2d4] sm:$0xf] }
  0xce   :  { %4618 = vmatmul.msk.bf16.vlgmr.msra.gmra.mxu3 %vm1873_vm0, %v5756_v50  ;;  %v5332_v19 = vld [vmem:[#allocation5 + $0x6ec] sm:$0xf0] }
  0xcf   :  { %2199 = vmatpush.bf16.msrb.mxu3 %v4474_v37  ;;  %2172 = vmatpush.bf16.msrb.mxu1 %v3930_v44  ;;  %v3545_v23 = vld [vmem:[#allocation5 + $0x90] sm:$0xf]  ;;  %v4346_v26 = vor.u32 %v5332_v19, %v4345_v18 }
  0xd0   :  { %v5196_v27 = vld [vmem:[#allocation5 + $0x2ac] sm:$0xf0]  ;;  %v3546_v32 = vor.u32 %v5132_v24, %v3545_v23  ;;  %v5224_v23 = vld [vmem:[#allocation5 + $0x394] sm:$0xf] }
  0xd1   :  { %2158 = vmatpush.bf16.msrb.mxu0 %v3674_v43  ;;  %2186 = vmatpush.bf16.msrb.mxu2 %v4186_v45  ;;  %v4057_v28 = vld [vmem:[#allocation5 + $0x490] sm:$0xf]  ;;  %v3802_v34 = vor.u32 %v5196_v27, %v3801_v25  ;;  %v3931_v24 = vld [vmem:[#allocation5 + $0x3b0] sm:$0xf0] }
  0xd2   :  { %v5260_v29 = vld [vmem:[#allocation5 + $0x4ac] sm:$0xf0]  ;;  %v5288_v25 = vld [vmem:[#allocation5 + $0x594] sm:$0xf] }
  0xd3   :  { %2200 = vmatpush.bf16.msrb.mxu3 %v4442_v49  ;;  %2173 = vmatpush.bf16.msrb.mxu1 %v3898_v58  ;;  %v4313_v30 = vld [vmem:[#allocation5 + $0x690] sm:$0xf]  ;;  %v4058_v35 = vor.u32 %v5260_v29, %v4057_v28 }
  0xd4   :  { %v5324_v31 = vld [vmem:[#allocation5 + $0x6ac] sm:$0xf0] }
  0xd5   :  { %2159 = vmatpush.bf16.msrb.mxu0 %v3642_v57  ;;  %2187 = vmatpush.bf16.msrb.mxu2 %v4154_v59  ;;  %v3513_v33 = vld [vmem:[#allocation5 + $0x50] sm:$0xf]  ;;  %v4314_v39 = vor.u32 %v5324_v31, %v4313_v30  ;;  %v1886_v60 = vpop.f32.mrf.mxu0  ;;  %v3934_v30 = vor.u32 %v5224_v23, %v3931_v24  ;;  %v5344_v23 = vld [vmem:[#allocation5 + $0x754] sm:$0xf] }
  0xd6   :  { %v5124_v36 = vld [vmem:[#allocation5 + $0x6c] sm:$0xf0]  ;;  %v1887_v3 = vadd.f32 %v1886_v60, %v392_v46  ;;  %v4475_v60 = vld [vmem:[#allocation5 + $0x7f0] sm:$0xf0] }
  0xd7   :  { %2201 = vmatpush.bf16.msrb.mxu3 %v4410_v2  ;;  %2174 = vmatpush.bf16.msrb.mxu1 %v3866_v9  ;;  %v3769_v37 = vld [vmem:[#allocation5 + $0x250] sm:$0xf]  ;;  %v3514_v45 = vor.u32 %v5124_v36, %v3513_v33  ;;  %v5168_v2 = vld [vmem:[#allocation5 + $0x1d4] sm:$0xf]  ;;  %v1900_v12 = vpop.f32.mrf.mxu1 }
  0xd8   :  { %v5188_v40 = vld [vmem:[#allocation5 + $0x26c] sm:$0xf0]  ;;  %v1901_v15 = vadd.f32 %v1900_v12, %v1887_v3  ;;  %v3710_v16 = vor.u32 %v5168_v2, %v3707_v5  ;;  %v3643_v36 = vld [vmem:[#allocation5 + $0x170] sm:$0xf0] }
  0xd9   :  { %2160 = vmatpush.bf16.msrb.mxu0 %v3610_v8  ;;  %2188 = vmatpush.bf16.msrb.mxu2 %v4122_v10  ;;  %v4025_v41 = vld [vmem:[#allocation5 + $0x450] sm:$0xf]  ;;  %v3770_v49 = vor.u32 %v5188_v40, %v3769_v37  ;;  %v5296_v10 = vld [vmem:[#allocation5 + $0x5d4] sm:$0xf] }
  0xda   :  { %v5252_v42 = vld [vmem:[#allocation5 + $0x46c] sm:$0xf0]  ;;  %v5216_v37 = vld [vmem:[#allocation5 + $0x354] sm:$0xf] }
  0xdb   :  { %2202 = vmatpush.bf16.msrb.mxu3 %v4378_v14  ;;  %2175 = vmatpush.bf16.msrb.mxu1 %v3834_v21  ;;  %v4281_v43 = vld [vmem:[#allocation5 + $0x650] sm:$0xf]  ;;  %v4026_v51 = vor.u32 %v5252_v42, %v4025_v41  ;;  %v4222_v21 = vor.u32 %v5296_v10, %v4219_v11  ;;  %v5280_v41 = vld [vmem:[#allocation5 + $0x554] sm:$0xf] }
  0xdc   :  { %v5316_v44 = vld [vmem:[#allocation5 + $0x66c] sm:$0xf0]  ;;  %v4155_v42 = vld [vmem:[#allocation5 + $0x570] sm:$0xf0] }
  0xdd   :  { %2161 = vmatpush.bf16.msrb.mxu0 %v3578_v20  ;;  %2189 = vmatpush.bf16.msrb.mxu2 %v4090_v22  ;;  %v3481_v47 = vld [vmem:[#allocation5 + $0x10] sm:$0xf]  ;;  %v4282_v56 = vor.u32 %v5316_v44, %v4281_v43  ;;  %v5160_v20 = vld [vmem:[#allocation5 + $0x194] sm:$0xf] }
  0xde   :  { %v5116_v48 = vld [vmem:[#allocation5 + $0x2c] sm:$0xf0]  ;;  %v3675_v22 = vld [vmem:[#allocation5 + $0x1b0] sm:$0xf0] }
  0xdf   :  { %2203 = vmatpush.bf16.msrb.mxu3 %v4346_v26  ;;  %2176 = vmatpush.bf16.msrb.mxu1 %v3802_v34  ;;  %v3737_v52 = vld [vmem:[#allocation5 + $0x210] sm:$0xf]  ;;  %v3482_v4 = vor.u32 %v5116_v48, %v3481_v47  ;;  %v4187_v26 = vld [vmem:[#allocation5 + $0x5b0] sm:$0xf0]  ;;  %v3678_v29 = vor.u32 %v5160_v20, %v3675_v22 }
  0xe0   :  { %v5180_v53 = vld [vmem:[#allocation5 + $0x22c] sm:$0xf0]  ;;  %v5152_v34 = vld [vmem:[#allocation5 + $0x154] sm:$0xf] }
  0xe1   :  { %2162 = vmatpush.bf16.msrb.mxu0 %v3546_v32  ;;  %2190 = vmatpush.bf16.msrb.mxu2 %v4058_v35  ;;  %v3993_v54 = vld [vmem:[#allocation5 + $0x410] sm:$0xf]  ;;  %v3738_v8 = vor.u32 %v5180_v53, %v3737_v52  ;;  %v4190_v35 = vor.u32 %v5288_v25, %v4187_v26  ;;  %v1928_v40 = vpop.f32.mrf.mxu3  ;;  %v3646_v47 = vor.u32 %v5152_v34, %v3643_v36  ;;  %v3611_v52 = vld [vmem:[#allocation5 + $0x130] sm:$0xf0] }
  0xe2   :  { %v5244_v57 = vld [vmem:[#allocation5 + $0x42c] sm:$0xf0]  ;;  %v4158_v53 = vor.u32 %v5280_v41, %v4155_v42  ;;  %v5136_v3 = vld [vmem:[#allocation5 + $0xd4] sm:$0xf] }
  0xe3   :  { %2204 = vmatpush.bf16.msrb.mxu3 %v4314_v39  ;;  %v4249_v58 = vld [vmem:[#allocation5 + $0x610] sm:$0xf]  ;;  %2177 = vmatpush.bf16.msrb.mxu1 %v3770_v49  ;;  %v3994_v9 = vor.u32 %v5244_v57, %v3993_v54  ;;  %v1914_v28 = vpop.f32.mrf.mxu2  ;;  %v3899_v39 = vld [vmem:[#allocation5 + $0x370] sm:$0xf0] }
  0xe4   :  { %v5308_v59 = vld [vmem:[#allocation5 + $0x62c] sm:$0xf0]  ;;  %v1915_v31 = vadd.f32 %v1914_v28, %v1901_v15  ;;  %v3902_v48 = vor.u32 %v5216_v37, %v3899_v39  ;;  %v5208_v54 = vld [vmem:[#allocation5 + $0x314] sm:$0xf] }
  0xe5   :  { %v4601_v63 = vld [vmem:[#allocation5 + $0x8d0] sm:$0xf]  ;;  %2163 = vmatpush.bf16.msrb.mxu0 %v3514_v45  ;;  %2191 = vmatpush.bf16.msrb.mxu2 %v4026_v51  ;;  %v4250_v13 = vor.u32 %v5308_v59, %v4249_v58  ;;  %v5144_v51 = vld [vmem:[#allocation5 + $0x114] sm:$0xf] }
  0xe6   :  { %v5396_v1 = vld [vmem:[#allocation5 + $0x8ec] sm:$0xf0]  ;;  %v5786_v43 = vadd.f32 %v1928_v40, %v1915_v31  ;;  %v5272_v57 = vld [vmem:[#allocation5 + $0x514] sm:$0xf] }
  0xe7   :  { %2205 = vmatpush.bf16.msrb.mxu3 %v4282_v56  ;;  %v4602_v14 = vor.u32 %v5396_v1, %v4601_v63  ;;  %v4569_v18 = vld [vmem:[#allocation5 + $0x890] sm:$0xf]  ;;  %2178 = vmatpush.bf16.msrb.mxu1 %v3738_v8  ;;  %v3867_v56 = vld [vmem:[#allocation5 + $0x330] sm:$0xf0]  ;;  %v3614_v1 = vor.u32 %v5144_v51, %v3611_v52 }
  0xe8   :  { %v5388_v19 = vld [vmem:[#allocation5 + $0x8ac] sm:$0xf0]  ;;  %v4123_v58 = vld [vmem:[#allocation5 + $0x530] sm:$0xf0]  ;;  %v3870_v2 = vor.u32 %v5208_v54, %v3867_v56  ;;  %v3713_v56 = vld [vmem:[#allocation5 + $0x1d8] sm:$0xf] }
  0xe9   :  { %2164 = vmatpush.bf16.msrb.mxu0 %v3482_v4  ;;  %2192 = vmatpush.bf16.msrb.mxu2 %v3994_v9  ;;  %v4570_v27 = vor.u32 %v5388_v19, %v4569_v18  ;;  %v4537_v32 = vld [vmem:[#allocation5 + $0x850] sm:$0xf]  ;;  %v5360_v59 = vld [vmem:[#allocation5 + $0x7d4] sm:$0xf]  ;;  %v4126_v5 = vor.u32 %v5272_v57, %v4123_v58  ;;  %v5173_v57 = vld [vmem:[#allocation5 + $0x1f4] sm:$0xf0] }
  0xea   :  { %v5380_v33 = vld [vmem:[#allocation5 + $0x86c] sm:$0xf0]  ;;  %2179 = vmatmul.bf16.vlgmr.msrb.gmra.mxu1 %v5750_v0  ;;  %v3579_v4 = vld [vmem:[#allocation5 + $0xf0] sm:$0xf0]  ;;  %v4478_v6 = vor.u32 %v5360_v59, %v4475_v60  ;;  %v3969_v60 = vld [vmem:[#allocation5 + $0x3d8] sm:$0xf] }
  0xeb   :  { %2206 = vmatpush.bf16.msrb.mxu3 %v4250_v13  ;;  %2227 = vmatpush.bf16.msra.mxu1 %v3710_v16  ;;  %v4538_v44 = vor.u32 %v5380_v33, %v4537_v32  ;;  %v4505_v45 = vld [vmem:[#allocation5 + $0x810] sm:$0xf]  ;;  %v3835_v8 = vld [vmem:[#allocation5 + $0x2f0] sm:$0xf0]  ;;  %v3582_v13 = vor.u32 %v5136_v3, %v3579_v4  ;;  %v3714_v4 = vor.u32 %v5173_v57, %v3713_v56  ;;  %v5205_v57 = vld [vmem:[#allocation5 + $0x2f4] sm:$0xf0] }
  0xec   :  { %2165 = vmatmul.bf16.vlgmr.msrb.gmra.mxu0 %v5744_v55  ;;  %2193 = vmatmul.bf16.vlgmr.msrb.gmra.mxu2 %v5746_v61  ;;  %v5372_v49 = vld [vmem:[#allocation5 + $0x82c] sm:$0xf0]  ;;  %v5264_v9 = vld [vmem:[#allocation5 + $0x4d4] sm:$0xf] }
  0xed   :  { %2217 = vmatpush.bf16.msra.mxu0 %v4602_v14  ;;  %2241 = vmatpush.bf16.msra.mxu2 %v3966_v17  ;;  %v4506_v63 = vor.u32 %v5372_v49, %v4505_v45  ;;  %v4091_v10 = vld [vmem:[#allocation5 + $0x4f0] sm:$0xf0]  ;;  %v3838_v14 = vor.u32 %v5200_v7, %v3835_v8 }
  0xee   :  { %2207 = vmatmul.bf16.vlgmr.msrb.gmra.mxu3 %v5748_v62  ;;  %v5352_v11 = vld [vmem:[#allocation5 + $0x794] sm:$0xf]  ;;  %v4094_v17 = vor.u32 %v5264_v9, %v4091_v10  ;;  %v3681_v10 = vld [vmem:[#allocation5 + $0x198] sm:$0xf] }
  0xef   :  { %2255 = vmatpush.bf16.msra.mxu3 %v4222_v21  ;;  %2228 = vmatpush.bf16.msra.mxu1 %v3678_v29  ;;  %v4443_v12 = vld [vmem:[#allocation5 + $0x7b0] sm:$0xf0] }
  0xf0   :  { %v5128_v15 = vld [vmem:[#allocation5 + $0x94] sm:$0xf]  ;;  %v4446_v18 = vor.u32 %v5352_v11, %v4443_v12  ;;  %v5165_v11 = vld [vmem:[#allocation5 + $0x1b4] sm:$0xf0] }
  0xf1   :  { %2218 = vmatpush.bf16.msra.mxu0 %v4570_v27  ;;  %2242 = vmatpush.bf16.msra.mxu2 %v3934_v30  ;;  %v3547_v16 = vld [vmem:[#allocation5 + $0xb0] sm:$0xf0]  ;;  %v3937_v12 = vld [vmem:[#allocation5 + $0x398] sm:$0xf] }
  0xf2   :  { %v5192_v19 = vld [vmem:[#allocation5 + $0x294] sm:$0xf]  ;;  %v3550_v25 = vor.u32 %v5128_v15, %v3547_v16  ;;  %v3682_v16 = vor.u32 %v5165_v11, %v3681_v10  ;;  %v4161_v10 = vld [vmem:[#allocation5 + $0x558] sm:$0xf] }
  0xf3   :  { %2256 = vmatpush.bf16.msra.mxu3 %v4190_v35  ;;  %2229 = vmatpush.bf16.msra.mxu1 %v3646_v47  ;;  %v3803_v20 = vld [vmem:[#allocation5 + $0x2b0] sm:$0xf0]  ;;  %v5285_v11 = vld [vmem:[#allocation5 + $0x574] sm:$0xf0] }
  0xf4   :  { %v5256_v21 = vld [vmem:[#allocation5 + $0x494] sm:$0xf]  ;;  %v3806_v26 = vor.u32 %v5192_v19, %v3803_v20 }
  0xf5   :  { %2219 = vmatpush.bf16.msra.mxu0 %v4538_v44  ;;  %2243 = vmatpush.bf16.msra.mxu2 %v3902_v48  ;;  %v4059_v22 = vld [vmem:[#allocation5 + $0x4b0] sm:$0xf0] }
  0xf6   :  { %v4411_v24 = vld [vmem:[#allocation5 + $0x770] sm:$0xf0]  ;;  %v4062_v29 = vor.u32 %v5256_v21, %v4059_v22  ;;  %v3649_v22 = vld [vmem:[#allocation5 + $0x158] sm:$0xf] }
  0xf7   :  { %2257 = vmatpush.bf16.msra.mxu3 %v4158_v53  ;;  %2230 = vmatpush.bf16.msra.mxu1 %v3614_v1  ;;  %v5120_v27 = vld [vmem:[#allocation5 + $0x54] sm:$0xf]  ;;  %v4414_v30 = vor.u32 %v5344_v23, %v4411_v24  ;;  %v5157_v23 = vld [vmem:[#allocation5 + $0x174] sm:$0xf0] }
  0xf8   :  { %v3515_v28 = vld [vmem:[#allocation5 + $0x70] sm:$0xf0]  ;;  %v3905_v24 = vld [vmem:[#allocation5 + $0x358] sm:$0xf] }
  0xf9   :  { %2220 = vmatpush.bf16.msra.mxu0 %v4506_v63  ;;  %2244 = vmatpush.bf16.msra.mxu2 %v3870_v2  ;;  %v5184_v31 = vld [vmem:[#allocation5 + $0x254] sm:$0xf]  ;;  %v3518_v37 = vor.u32 %v5120_v27, %v3515_v28  ;;  %v5237_v63 = vld [vmem:[#allocation5 + $0x3f4] sm:$0xf0] }
  0xfa   :  { %v3771_v32 = vld [vmem:[#allocation5 + $0x270] sm:$0xf0]  ;;  %v3970_v8 = vor.u32 %v5237_v63, %v3969_v60  ;;  %v4449_v60 = vld [vmem:[#allocation5 + $0x798] sm:$0xf] }
  0xfb   :  { %2258 = vmatpush.bf16.msra.mxu3 %v4126_v5  ;;  %2231 = vmatpush.bf16.msra.mxu1 %v3582_v13  ;;  %v5248_v33 = vld [vmem:[#allocation5 + $0x454] sm:$0xf]  ;;  %v3774_v39 = vor.u32 %v5184_v31, %v3771_v32  ;;  %v5229_v13 = vld [vmem:[#allocation5 + $0x3b4] sm:$0xf0] }
  0xfc   :  { %4619 = vmatmul.msk.bf16.vlgmr.msra.gmra.mxu0 %vm1873_vm0, %v5756_v50  ;;  %v4027_v34 = vld [vmem:[#allocation5 + $0x470] sm:$0xf0]  ;;  %v3938_v20 = vor.u32 %v5229_v13, %v3937_v12  ;;  %v5357_v63 = vld [vmem:[#allocation5 + $0x7b4] sm:$0xf0]  ;;  %v5799_v12 = vpop.f32.mrf.mxu2 }
  0xfd   :  { %2269 = vmatpush.bf16.msrb.mxu0 %v4478_v6  ;;  %2245 = vmatpush.bf16.msra.mxu2 %v3838_v14  ;;  %v5336_v35 = vld [vmem:[#allocation5 + $0x714] sm:$0xf]  ;;  %v4030_v44 = vor.u32 %v5248_v33, %v4027_v34  ;;  %v3617_v34 = vld [vmem:[#allocation5 + $0x118] sm:$0xf] }
  0xfe   :  { %v4379_v36 = vld [vmem:[#allocation5 + $0x730] sm:$0xf0]  ;;  %v4417_v13 = vld [vmem:[#allocation5 + $0x758] sm:$0xf] }
  0xff   :  { %2259 = vmatpush.bf16.msra.mxu3 %v4094_v17  ;;  %2232 = vmatpush.bf16.msra.mxu1 %v3550_v25  ;;  %v5112_v40 = vld [vmem:[#allocation5 + $0x14] sm:$0xf]  ;;  %v4382_v45 = vor.u32 %v5336_v35, %v4379_v36  ;;  %v5221_v25 = vld [vmem:[#allocation5 + $0x374] sm:$0xf0] }
 0x100   :  { %v3483_v41 = vld [vmem:[#allocation5 + $0x30] sm:$0xf0]  ;;  %v3906_v33 = vor.u32 %v5221_v25, %v3905_v24  ;;  %v5149_v35 = vld [vmem:[#allocation5 + $0x134] sm:$0xf0] }
 0x101   :  { %2270 = vmatpush.bf16.msrb.mxu0 %v4446_v18  ;;  %2246 = vmatpush.bf16.msra.mxu2 %v3806_v26  ;;  %v5176_v42 = vld [vmem:[#allocation5 + $0x214] sm:$0xf]  ;;  %v3486_v58 = vor.u32 %v5112_v40, %v3483_v41  ;;  %v3873_v36 = vld [vmem:[#allocation5 + $0x318] sm:$0xf] }
 0x102   :  { %v3739_v47 = vld [vmem:[#allocation5 + $0x230] sm:$0xf0]  ;;  %v5301_v40 = vld [vmem:[#allocation5 + $0x5f4] sm:$0xf0] }
 0x103   :  { %2260 = vmatpush.bf16.msra.mxu3 %v4062_v29  ;;  %v5240_v48 = vld [vmem:[#allocation5 + $0x414] sm:$0xf]  ;;  %2233 = vmatpush.bf16.msra.mxu1 %v3518_v37  ;;  %v3742_v59 = vor.u32 %v5176_v42, %v3739_v47  ;;  %v3650_v29 = vor.u32 %v5157_v23, %v3649_v22  ;;  %v5213_v37 = vld [vmem:[#allocation5 + $0x334] sm:$0xf0]  ;;  %v3618_v47 = vor.u32 %v5149_v35, %v3617_v34 }
 0x104   :  { %v3995_v49 = vld [vmem:[#allocation5 + $0x430] sm:$0xf0]  ;;  %v4481_v42 = vld [vmem:[#allocation5 + $0x7d8] sm:$0xf] }
 0x105   :  { %2271 = vmatpush.bf16.msrb.mxu0 %v4414_v30  ;;  %v5328_v51 = vld [vmem:[#allocation5 + $0x6d4] sm:$0xf]  ;;  %2247 = vmatpush.bf16.msra.mxu2 %v3774_v39  ;;  %v3998_v1 = vor.u32 %v5240_v48, %v3995_v49  ;;  %v4225_v39 = vld [vmem:[#allocation5 + $0x5d8] sm:$0xf]  ;;  %v5794_v48 = vpop.f32.mrf.mxu0  ;;  %v3874_v49 = vor.u32 %v5213_v37, %v3873_v36 }
 0x106   :  { %v4347_v52 = vld [vmem:[#allocation5 + $0x6f0] sm:$0xf0]  ;;  %v5189_v22 = vld [vmem:[#allocation5 + $0x274] sm:$0xf0] }
 0x107   :  { %v5392_v53 = vld [vmem:[#allocation5 + $0x8d4] sm:$0xf]  ;;  %2261 = vmatpush.bf16.msra.mxu3 %v4030_v44  ;;  %v4350_v2 = vor.u32 %v5328_v51, %v4347_v52  ;;  %2234 = vmatpush.bf16.msra.mxu1 %v3486_v58  ;;  %v5365_v44 = vld [vmem:[#allocation5 + $0x7f4] sm:$0xf0]  ;;  %v4226_v51 = vor.u32 %v5301_v40, %v4225_v39 }
 0x108   :  { %v4603_v54 = vld [vmem:[#allocation5 + $0x8f0] sm:$0xf0]  ;;  %v3585_v52 = vld [vmem:[#allocation5 + $0xd8] sm:$0xf]  ;;  %v4482_v56 = vor.u32 %v5365_v44, %v4481_v42  ;;  %v5809_v42 = vpop.f32.mrf.mxu2 }
 0x109   :  { %2272 = vmatpush.bf16.msrb.mxu0 %v4382_v45  ;;  %v4606_v3 = vor.u32 %v5392_v53, %v4603_v54  ;;  %v5320_v5 = vld [vmem:[#allocation5 + $0x694] sm:$0xf]  ;;  %2248 = vmatpush.bf16.msra.mxu2 %v3742_v59  ;;  %v5141_v53 = vld [vmem:[#allocation5 + $0xf4] sm:$0xf0] }
 0x10a   :  { %v4315_v6 = vld [vmem:[#allocation5 + $0x6b0] sm:$0xf0]  ;;  %2235 = vmatmul.bf16.vlgmr.msra.gmra.mxu1 %v5744_v55  ;;  %v3841_v54 = vld [vmem:[#allocation5 + $0x2d8] sm:$0xf] }
 0x10b   :  { %v5384_v7 = vld [vmem:[#allocation5 + $0x894] sm:$0xf]  ;;  %2262 = vmatpush.bf16.msra.mxu3 %v3998_v1  ;;  %v4318_v14 = vor.u32 %v5320_v5, %v4315_v6  ;;  %2287 = vmatpush.bf16.msrb.mxu1 %v4606_v3  ;;  %v4193_v58 = vld [vmem:[#allocation5 + $0x598] sm:$0xf]  ;;  %v3586_v1 = vor.u32 %v5141_v53, %v3585_v52  ;;  %v3842_v3 = vor.u32 %v5205_v57, %v3841_v54  ;;  %v3715_v52 = vld [vmem:[#allocation5 + $0x1f8] sm:$0xf0] }
 0x10c   :  { %v4571_v9 = vld [vmem:[#allocation5 + $0x8b0] sm:$0xf0]  ;;  %2249 = vmatmul.bf16.vlgmr.msra.gmra.mxu2 %v5750_v0  ;;  %v5293_v59 = vld [vmem:[#allocation5 + $0x5b4] sm:$0xf0] }
 0x10d   :  { %2273 = vmatpush.bf16.msrb.mxu0 %v4350_v2  ;;  %2297 = vmatpush.bf16.msrb.mxu2 %v3714_v4  ;;  %v4574_v15 = vor.u32 %v5384_v7, %v4571_v9  ;;  %v5312_v17 = vld [vmem:[#allocation5 + $0x654] sm:$0xf]  ;;  %v5796_v2 = vpop.f32.mrf.mxu1  ;;  %v4194_v4 = vor.u32 %v5293_v59, %v4193_v58  ;;  %v3553_v5 = vld [vmem:[#allocation5 + $0x98] sm:$0xf]  ;;  %v5801_v25 = vpop.f32.mrf.mxu0 }
 0x10e   :  { %v4283_v18 = vld [vmem:[#allocation5 + $0x670] sm:$0xf0]  ;;  %2263 = vmatmul.bf16.vlgmr.msra.gmra.mxu3 %v5746_v61  ;;  %v5133_v6 = vld [vmem:[#allocation5 + $0xb4] sm:$0xf0] }
 0x10f   :  { %v5376_v19 = vld [vmem:[#allocation5 + $0x854] sm:$0xf]  ;;  %2311 = vmatpush.bf16.msrb.mxu3 %v3970_v8  ;;  %v4286_v26 = vor.u32 %v5312_v17, %v4283_v18  ;;  %2288 = vmatpush.bf16.msrb.mxu1 %v4574_v15  ;;  %v3809_v7 = vld [vmem:[#allocation5 + $0x298] sm:$0xf]  ;;  %v4450_v8 = vor.u32 %v5357_v63, %v4449_v60  ;;  %v3554_v15 = vor.u32 %v5133_v6, %v3553_v5  ;;  %v5161_v6 = vld [vmem:[#allocation5 + $0x19c] sm:$0xf] }
 0x110   :  { %v4539_v21 = vld [vmem:[#allocation5 + $0x870] sm:$0xf0]  ;;  %v5197_v9 = vld [vmem:[#allocation5 + $0x2b4] sm:$0xf0]  ;;  %v4162_v17 = vor.u32 %v5285_v11, %v4161_v10 }
 0x111   :  { %2274 = vmatpush.bf16.msrb.mxu0 %v4318_v14  ;;  %v5304_v27 = vld [vmem:[#allocation5 + $0x614] sm:$0xf]  ;;  %2298 = vmatpush.bf16.msrb.mxu2 %v3682_v16  ;;  %v4542_v28 = vor.u32 %v5376_v19, %v4539_v21  ;;  %v5349_v14 = vld [vmem:[#allocation5 + $0x774] sm:$0xf0]  ;;  %v3810_v16 = vor.u32 %v5197_v9, %v3809_v7  ;;  %v3683_v7 = vld [vmem:[#allocation5 + $0x1b8] sm:$0xf0] }
 0x112   :  { %v4251_v30 = vld [vmem:[#allocation5 + $0x630] sm:$0xf0]  ;;  %v3521_v18 = vld [vmem:[#allocation5 + $0x58] sm:$0xf]  ;;  %v4418_v21 = vor.u32 %v5349_v14, %v4417_v13 }
 0x113   :  { %v5368_v31 = vld [vmem:[#allocation5 + $0x814] sm:$0xf]  ;;  %2312 = vmatpush.bf16.msrb.mxu3 %v3938_v20  ;;  %v4254_v41 = vor.u32 %v5304_v27, %v4251_v30  ;;  %2289 = vmatpush.bf16.msrb.mxu1 %v4542_v28  ;;  %v5125_v19 = vld [vmem:[#allocation5 + $0x74] sm:$0xf0] }
 0x114   :  { %v4507_v32 = vld [vmem:[#allocation5 + $0x830] sm:$0xf0]  ;;  %v3777_v20 = vld [vmem:[#allocation5 + $0x258] sm:$0xf] }
 0x115   :  { %2275 = vmatpush.bf16.msrb.mxu0 %v4286_v26  ;;  %2299 = vmatpush.bf16.msrb.mxu2 %v3650_v29  ;;  %v4510_v45 = vor.u32 %v5368_v31, %v4507_v32  ;;  %v4129_v23 = vld [vmem:[#allocation5 + $0x518] sm:$0xf]  ;;  %v5803_v26 = vpop.f32.mrf.mxu3  ;;  %v3522_v29 = vor.u32 %v5125_v19, %v3521_v18  ;;  %v5807_v31 = vpop.f32.mrf.mxu1  ;;  %v3778_v32 = vor.u32 %v5189_v22, %v3777_v20  ;;  %v3651_v22 = vld [vmem:[#allocation5 + $0x178] sm:$0xf0] }
 0x116   :  { %v5277_v24 = vld [vmem:[#allocation5 + $0x534] sm:$0xf0] }
 0x117   :  { %2313 = vmatpush.bf16.msrb.mxu3 %v3906_v33  ;;  %2290 = vmatpush.bf16.msrb.mxu1 %v4510_v45  ;;  %v4385_v27 = vld [vmem:[#allocation5 + $0x718] sm:$0xf]  ;;  %v4130_v33 = vor.u32 %v5277_v24, %v4129_v23  ;;  %v5819_v23 = vpop.f32.mrf.mxu2 }
 0x118   :  { %v5341_v28 = vld [vmem:[#allocation5 + $0x734] sm:$0xf0] }
 0x119   :  { %2276 = vmatpush.bf16.msrb.mxu0 %v4254_v41  ;;  %2300 = vmatpush.bf16.msrb.mxu2 %v3618_v47  ;;  %v3489_v30 = vld [vmem:[#allocation5 + $0x18] sm:$0xf]  ;;  %v4386_v37 = vor.u32 %v5341_v28, %v4385_v27 }
 0x11a   :  { %4620 = vmatmul.msk.bf16.vlgmr.msrb.gmra.mxu1 %vm1873_vm0, %v5756_v50  ;;  %v5117_v34 = vld [vmem:[#allocation5 + $0x34] sm:$0xf0] }
 0x11b   :  { %2314 = vmatpush.bf16.msrb.mxu3 %v3874_v49  ;;  %2339 = vmatpush.bf16.msra.mxu1 %v4482_v56  ;;  %v3745_v35 = vld [vmem:[#allocation5 + $0x218] sm:$0xf]  ;;  %v3490_v49 = vor.u32 %v5117_v34, %v3489_v30 }
 0x11c   :  { %2277 = vmatmul.bf16.vlgmr.msrb.gmra.mxu0 %v5748_v62  ;;  %v5181_v36 = vld [vmem:[#allocation5 + $0x234] sm:$0xf0] }
 0x11d   :  { %2325 = vmatpush.bf16.msra.mxu0 %v4226_v51  ;;  %2301 = vmatpush.bf16.msrb.mxu2 %v3586_v1  ;;  %v4097_v39 = vld [vmem:[#allocation5 + $0x4d8] sm:$0xf]  ;;  %v5169_v51 = vld [vmem:[#allocation5 + $0x1dc] sm:$0xf]  ;;  %v3746_v53 = vor.u32 %v5181_v36, %v3745_v35  ;;  %v5811_v63 = vpop.f32.mrf.mxu3 }
 0x11e   :  { %v5269_v40 = vld [vmem:[#allocation5 + $0x4f4] sm:$0xf0]  ;;  %v3718_v1 = vor.u32 %v5169_v51, %v3715_v52  ;;  %v4227_v51 = vld [vmem:[#allocation5 + $0x5f8] sm:$0xf0] }
 0x11f   :  { %2315 = vmatpush.bf16.msrb.mxu3 %v3842_v3  ;;  %2340 = vmatpush.bf16.msra.mxu1 %v4450_v8  ;;  %v4353_v41 = vld [vmem:[#allocation5 + $0x6d8] sm:$0xf]  ;;  %v4098_v54 = vor.u32 %v5269_v40, %v4097_v39  ;;  %v5813_v8 = vpop.f32.mrf.mxu0  ;;  %v3619_v39 = vld [vmem:[#allocation5 + $0x138] sm:$0xf0] }
 0x120   :  { %v5333_v44 = vld [vmem:[#allocation5 + $0x6f4] sm:$0xf0]  ;;  %v5233_v40 = vld [vmem:[#allocation5 + $0x3dc] sm:$0xf] }
 0x121   :  { %2326 = vmatpush.bf16.msra.mxu0 %v4194_v4  ;;  %2302 = vmatpush.bf16.msrb.mxu2 %v3554_v15  ;;  %v4609_v45 = vld [vmem:[#allocation5 + $0x8d8] sm:$0xf]  ;;  %v4354_v56 = vor.u32 %v5333_v44, %v4353_v41  ;;  %v3971_v41 = vld [vmem:[#allocation5 + $0x3f8] sm:$0xf0] }
 0x122   :  { %v5397_v47 = vld [vmem:[#allocation5 + $0x8f4] sm:$0xf0]  ;;  %v5297_v44 = vld [vmem:[#allocation5 + $0x5dc] sm:$0xf] }
 0x123   :  { %2316 = vmatpush.bf16.msrb.mxu3 %v3810_v16  ;;  %2341 = vmatpush.bf16.msra.mxu1 %v4418_v21  ;;  %v4610_v57 = vor.u32 %v5397_v47, %v4609_v45  ;;  %v4065_v58 = vld [vmem:[#allocation5 + $0x498] sm:$0xf]  ;;  %v5815_v16 = vpop.f32.mrf.mxu1  ;;  %v5153_v21 = vld [vmem:[#allocation5 + $0x15c] sm:$0xf] }
 0x124   :  { %v5261_v59 = vld [vmem:[#allocation5 + $0x4b4] sm:$0xf0]  ;;  %v3654_v35 = vor.u32 %v5153_v21, %v3651_v22  ;;  %v5361_v52 = vld [vmem:[#allocation5 + $0x7dc] sm:$0xf] }
 0x125   :  { %2327 = vmatpush.bf16.msra.mxu0 %v4162_v17  ;;  %2303 = vmatpush.bf16.msrb.mxu2 %v3522_v29  ;;  %v4321_v60 = vld [vmem:[#allocation5 + $0x698] sm:$0xf]  ;;  %v4066_v9 = vor.u32 %v5261_v59, %v4065_v58  ;;  %v3686_v17 = vor.u32 %v5161_v6, %v3683_v7  ;;  %v5823_v47 = vpop.f32.mrf.mxu3  ;;  %v3974_v58 = vor.u32 %v5233_v40, %v3971_v41  ;;  %v5137_v59 = vld [vmem:[#allocation5 + $0xdc] sm:$0xf] }
 0x126   :  { %v5325_v3 = vld [vmem:[#allocation5 + $0x6b4] sm:$0xf0]  ;;  %v5289_v6 = vld [vmem:[#allocation5 + $0x59c] sm:$0xf] }
 0x127   :  { %2317 = vmatpush.bf16.msrb.mxu3 %v3778_v32  ;;  %2342 = vmatpush.bf16.msra.mxu1 %v4386_v37  ;;  %v4577_v4 = vld [vmem:[#allocation5 + $0x898] sm:$0xf]  ;;  %v4322_v10 = vor.u32 %v5325_v3, %v4321_v60  ;;  %v5145_v37 = vld [vmem:[#allocation5 + $0x11c] sm:$0xf]  ;;  %v5821_v45 = vpop.f32.mrf.mxu0 }
 0x128   :  { %v5389_v5 = vld [vmem:[#allocation5 + $0x8b4] sm:$0xf0]  ;;  %v3587_v60 = vld [vmem:[#allocation5 + $0xf8] sm:$0xf0] }
 0x129   :  { %2328 = vmatpush.bf16.msra.mxu0 %v4130_v33  ;;  %2304 = vmatpush.bf16.msrb.mxu2 %v3490_v49  ;;  %v4578_v11 = vor.u32 %v5389_v5, %v4577_v4  ;;  %v4033_v13 = vld [vmem:[#allocation5 + $0x458] sm:$0xf]  ;;  %v5225_v4 = vld [vmem:[#allocation5 + $0x39c] sm:$0xf] }
 0x12a   :  { %v5253_v14 = vld [vmem:[#allocation5 + $0x474] sm:$0xf0]  ;;  %v3939_v5 = vld [vmem:[#allocation5 + $0x3b8] sm:$0xf0] }
 0x12b   :  { %2318 = vmatpush.bf16.msrb.mxu3 %v3746_v53  ;;  %2343 = vmatpush.bf16.msra.mxu1 %v4354_v56  ;;  %v4289_v15 = vld [vmem:[#allocation5 + $0x658] sm:$0xf]  ;;  %v4034_v24 = vor.u32 %v5253_v14, %v4033_v13  ;;  %v4483_v53 = vld [vmem:[#allocation5 + $0x7f8] sm:$0xf0]  ;;  %v5825_v7 = vpop.f32.mrf.mxu1  ;;  %v3590_v14 = vor.u32 %v5137_v59, %v3587_v60 }
 0x12c   :  { %2305 = vmatmul.bf16.vlgmr.msrb.gmra.mxu2 %v5744_v55  ;;  %v5317_v18 = vld [vmem:[#allocation5 + $0x674] sm:$0xf0]  ;;  %v4486_v3 = vor.u32 %v5361_v52, %v4483_v53  ;;  %v4451_v13 = vld [vmem:[#allocation5 + $0x7b8] sm:$0xf0] }
 0x12d   :  { %2329 = vmatpush.bf16.msra.mxu0 %v4098_v54  ;;  %2357 = vmatpush.bf16.msra.mxu2 %v4610_v57  ;;  %v4545_v19 = vld [vmem:[#allocation5 + $0x858] sm:$0xf]  ;;  %v4290_v29 = vor.u32 %v5317_v18, %v4289_v15  ;;  %v3622_v57 = vor.u32 %v5145_v37, %v3619_v39  ;;  %v3942_v15 = vor.u32 %v5225_v4, %v3939_v5  ;;  %v3555_v18 = vld [vmem:[#allocation5 + $0xb8] sm:$0xf0] }
 0x12e   :  { %v5381_v20 = vld [vmem:[#allocation5 + $0x874] sm:$0xf0]  ;;  %2319 = vmatmul.bf16.vlgmr.msrb.gmra.mxu3 %v5750_v0  ;;  %v5217_v21 = vld [vmem:[#allocation5 + $0x35c] sm:$0xf] }
 0x12f   :  { %2367 = vmatpush.bf16.msra.mxu3 %v3718_v1  ;;  %v4001_v27 = vld [vmem:[#allocation5 + $0x418] sm:$0xf]  ;;  %2344 = vmatpush.bf16.msra.mxu1 %v4322_v10  ;;  %v4546_v30 = vor.u32 %v5381_v20, %v4545_v19  ;;  %v4230_v1 = vor.u32 %v5297_v44, %v4227_v51  ;;  %v4195_v10 = vld [vmem:[#allocation5 + $0x5b8] sm:$0xf0] }
 0x130   :  { %v5245_v28 = vld [vmem:[#allocation5 + $0x434] sm:$0xf0]  ;;  %v4198_v19 = vor.u32 %v5289_v6, %v4195_v10  ;;  %v3907_v22 = vld [vmem:[#allocation5 + $0x378] sm:$0xf0] }
 0x131   :  { %2330 = vmatpush.bf16.msra.mxu0 %v4066_v9  ;;  %2358 = vmatpush.bf16.msra.mxu2 %v4578_v11  ;;  %v4257_v32 = vld [vmem:[#allocation5 + $0x618] sm:$0xf]  ;;  %v4002_v49 = vor.u32 %v5245_v28, %v4001_v27  ;;  %v5827_v9 = vpop.f32.mrf.mxu2  ;;  %v5353_v11 = vld [vmem:[#allocation5 + $0x79c] sm:$0xf]  ;;  %v5829_v27 = vpop.f32.mrf.mxu3 }
 0x132   :  { %v5309_v33 = vld [vmem:[#allocation5 + $0x634] sm:$0xf0]  ;;  %v4454_v20 = vor.u32 %v5353_v11, %v4451_v13  ;;  %v4163_v28 = vld [vmem:[#allocation5 + $0x578] sm:$0xf0] }
 0x133   :  { %v4513_v34 = vld [vmem:[#allocation5 + $0x818] sm:$0xf]  ;;  %2368 = vmatpush.bf16.msra.mxu3 %v3686_v17  ;;  %2345 = vmatpush.bf16.msra.mxu1 %v4290_v29  ;;  %v4258_v54 = vor.u32 %v5309_v33, %v4257_v32  ;;  %v5129_v17 = vld [vmem:[#allocation5 + $0x9c] sm:$0xf]  ;;  %v5833_v32 = vpop.f32.mrf.mxu0  ;;  %v5837_v53 = vpop.f32.mrf.mxu1 }
 0x134   :  { %v5373_v36 = vld [vmem:[#allocation5 + $0x834] sm:$0xf0]  ;;  %v5345_v29 = vld [vmem:[#allocation5 + $0x75c] sm:$0xf]  ;;  %v3558_v33 = vor.u32 %v5129_v17, %v3555_v18 }
 0x135   :  { %2331 = vmatpush.bf16.msra.mxu0 %v4034_v24  ;;  %2359 = vmatpush.bf16.msra.mxu2 %v4546_v30  ;;  %v4514_v56 = vor.u32 %v5373_v36, %v4513_v34  ;;  %v5281_v24 = vld [vmem:[#allocation5 + $0x55c] sm:$0xf]  ;;  %v3910_v34 = vor.u32 %v5217_v21, %v3907_v22 }
 0x136   :  { %v4419_v30 = vld [vmem:[#allocation5 + $0x778] sm:$0xf0]  ;;  %v4166_v37 = vor.u32 %v5281_v24, %v4163_v28 }
 0x137   :  { %2369 = vmatpush.bf16.msra.mxu3 %v3654_v35  ;;  %2346 = vmatpush.bf16.msra.mxu1 %v4258_v54  ;;  %v5121_v35 = vld [vmem:[#allocation5 + $0x5c] sm:$0xf]  ;;  %v4422_v39 = vor.u32 %v5345_v29, %v4419_v30 }
 0x138   :  { %v3523_v36 = vld [vmem:[#allocation5 + $0x78] sm:$0xf0] }
 0x139   :  { %2332 = vmatpush.bf16.msra.mxu0 %v4002_v49  ;;  %2360 = vmatpush.bf16.msra.mxu2 %v4514_v56  ;;  %v5209_v40 = vld [vmem:[#allocation5 + $0x31c] sm:$0xf]  ;;  %v5839_v54 = vpop.f32.mrf.mxu2  ;;  %v3526_v56 = vor.u32 %v5121_v35, %v3523_v36  ;;  %v5843_v17 = vpop.f32.mrf.mxu3 }
 0x13a   :  { %2347 = vmatmul.bf16.vlgmr.msra.gmra.mxu1 %v5748_v62  ;;  %v3875_v41 = vld [vmem:[#allocation5 + $0x338] sm:$0xf0] }
 0x13b   :  { %2370 = vmatpush.bf16.msra.mxu3 %v3622_v57  ;;  %2395 = vmatpush.bf16.msrb.mxu1 %v4230_v1  ;;  %v5273_v44 = vld [vmem:[#allocation5 + $0x51c] sm:$0xf]  ;;  %v3878_v57 = vor.u32 %v5209_v40, %v3875_v41 }
 0x13c   :  { %2333 = vmatmul.bf16.vlgmr.msra.gmra.mxu0 %v5746_v61  ;;  %4621 = vmatmul.msk.bf16.vlgmr.msra.gmra.mxu2 %vm1873_vm0, %v5756_v50  ;;  %v4131_v49 = vld [vmem:[#allocation5 + $0x538] sm:$0xf0] }
 0x13d   :  { %2381 = vmatpush.bf16.msrb.mxu0 %v3974_v58  ;;  %2409 = vmatpush.bf16.msrb.mxu2 %v4486_v3  ;;  %v5337_v51 = vld [vmem:[#allocation5 + $0x71c] sm:$0xf]  ;;  %v4134_v60 = vor.u32 %v5273_v44, %v4131_v49 }
 0x13e   :  { %v4387_v52 = vld [vmem:[#allocation5 + $0x738] sm:$0xf0] }
 0x13f   :  { %2371 = vmatpush.bf16.msra.mxu3 %v3590_v14  ;;  %2396 = vmatpush.bf16.msrb.mxu1 %v4198_v19  ;;  %v5113_v58 = vld [vmem:[#allocation5 + $0x1c] sm:$0xf]  ;;  %v4390_v1 = vor.u32 %v5337_v51, %v4387_v52 }
 0x140   :  { %v3491_v59 = vld [vmem:[#allocation5 + $0x38] sm:$0xf0] }
 0x141   :  { %2382 = vmatpush.bf16.msrb.mxu0 %v3942_v15  ;;  %2410 = vmatpush.bf16.msrb.mxu2 %v4454_v20  ;;  %v5201_v3 = vld [vmem:[#allocation5 + $0x2dc] sm:$0xf]  ;;  %v5841_v15 = vpop.f32.mrf.mxu0  ;;  %v3494_v18 = vor.u32 %v5113_v58, %v3491_v59  ;;  %v5847_v52 = vpop.f32.mrf.mxu2 }
 0x142   :  { %v3843_v4 = vld [vmem:[#allocation5 + $0x2f8] sm:$0xf0] }
 0x143   :  { %2372 = vmatpush.bf16.msra.mxu3 %v3558_v33  ;;  %2397 = vmatpush.bf16.msrb.mxu1 %v4166_v37  ;;  %v5265_v5 = vld [vmem:[#allocation5 + $0x4dc] sm:$0xf]  ;;  %v3846_v19 = vor.u32 %v5201_v3, %v3843_v4  ;;  %v5845_v37 = vpop.f32.mrf.mxu1  ;;  %v5850_v3 = vpop.f32.mrf.mxu3 }
 0x144   :  { %v4099_v6 = vld [vmem:[#allocation5 + $0x4f8] sm:$0xf0] }
 0x145   :  { %2383 = vmatpush.bf16.msrb.mxu0 %v3910_v34  ;;  %2411 = vmatpush.bf16.msrb.mxu2 %v4422_v39  ;;  %v5329_v10 = vld [vmem:[#allocation5 + $0x6dc] sm:$0xf]  ;;  %v4102_v20 = vor.u32 %v5265_v5, %v4099_v6 }
 0x146   :  { %v4355_v11 = vld [vmem:[#allocation5 + $0x6f8] sm:$0xf0] }
 0x147   :  { %v5393_v13 = vld [vmem:[#allocation5 + $0x8dc] sm:$0xf]  ;;  %2373 = vmatpush.bf16.msra.mxu3 %v3526_v56  ;;  %2398 = vmatpush.bf16.msrb.mxu1 %v4134_v60  ;;  %v4358_v21 = vor.u32 %v5329_v10, %v4355_v11 }
 0x148   :  { %v4611_v14 = vld [vmem:[#allocation5 + $0x8f8] sm:$0xf0] }
 0x149   :  { %2384 = vmatpush.bf16.msrb.mxu0 %v3878_v57  ;;  %2412 = vmatpush.bf16.msrb.mxu2 %v4390_v1  ;;  %v5193_v22 = vld [vmem:[#allocation5 + $0x29c] sm:$0xf]  ;;  %v4614_v29 = vor.u32 %v5393_v13, %v4611_v14 }
 0x14a   :  { %v3811_v24 = vld [vmem:[#allocation5 + $0x2b8] sm:$0xf0] }
 0x14b   :  { %v5257_v28 = vld [vmem:[#allocation5 + $0x49c] sm:$0xf]  ;;  %2374 = vmatpush.bf16.msra.mxu3 %v3494_v18  ;;  %v3814_v39 = vor.u32 %v5193_v22, %v3811_v24  ;;  %2399 = vmatpush.bf16.msrb.mxu1 %v4102_v20  ;;  %v4681_v24 = vld [vmem:[#allocation8 + $0x70] sm:$0xf] }
 0x14c   :  { %v4067_v30 = vld [vmem:[#allocation5 + $0x4b8] sm:$0xf0] }
 0x14d   :  { %v5321_v33 = vld [vmem:[#allocation5 + $0x69c] sm:$0xf]  ;;  %2385 = vmatpush.bf16.msrb.mxu0 %v3846_v19  ;;  %2413 = vmatpush.bf16.msrb.mxu2 %v4358_v21  ;;  %v4070_v40 = vor.u32 %v5257_v28, %v4067_v30  ;;  %v5852_v19 = vpop.f32.mrf.mxu0  ;;  %v5413_v28 = vld [vmem:[#allocation8 + $0x74] sm:$0xf0] }
 0x14e   :  { %v4323_v34 = vld [vmem:[#allocation5 + $0x6b8] sm:$0xf0]  ;;  %2375 = vmatmul.bf16.vlgmr.msra.gmra.mxu3 %v5744_v55 }
 0x14f   :  { %v5385_v35 = vld [vmem:[#allocation5 + $0x89c] sm:$0xf]  ;;  %v4326_v41 = vor.u32 %v5321_v33, %v4323_v34  ;;  %2427 = vmatpush.bf16.msrb.mxu3 %v4614_v29  ;;  %2400 = vmatpush.bf16.msrb.mxu1 %v4070_v40  ;;  %v4745_v29 = vld [vmem:[#allocation8 + $0xf0] sm:$0xf]  ;;  %v5429_v33 = vld [vmem:[#allocation8 + $0xf4] sm:$0xf0] }
 0x150   :  { %v4579_v36 = vld [vmem:[#allocation5 + $0x8b8] sm:$0xf0]  ;;  %v4809_v34 = vld [vmem:[#allocation8 + $0x170] sm:$0xf] }
 0x151   :  { %v5185_v44 = vld [vmem:[#allocation5 + $0x25c] sm:$0xf]  ;;  %v4582_v56 = vor.u32 %v5385_v35, %v4579_v36  ;;  %2386 = vmatpush.bf16.msrb.mxu0 %v3814_v39  ;;  %2414 = vmatpush.bf16.msrb.mxu2 %v4326_v41  ;;  %v5445_v35 = vld [vmem:[#allocation8 + $0x174] sm:$0xf0]  ;;  %v4873_v40 = vld [vmem:[#allocation8 + $0x1f0] sm:$0xf] }
 0x152   :  { %v3779_v49 = vld [vmem:[#allocation5 + $0x278] sm:$0xf0]  ;;  %v5461_v41 = vld [vmem:[#allocation8 + $0x1f4] sm:$0xf0] }
 0x153   :  { %v5249_v51 = vld [vmem:[#allocation5 + $0x45c] sm:$0xf]  ;;  %v3782_v4 = vor.u32 %v5185_v44, %v3779_v49  ;;  %2428 = vmatpush.bf16.msrb.mxu3 %v4582_v56  ;;  %v5854_v44 = vpop.f32.mrf.mxu1  ;;  %v4746_v56 = vor.u32 %v5429_v33, %v4745_v29  ;;  %v5409_v29 = vld [vmem:[#allocation8 + $0x54] sm:$0xf0] }
 0x154   :  { %v4035_v57 = vld [vmem:[#allocation5 + $0x478] sm:$0xf0] }
 0x155   :  { %v5313_v58 = vld [vmem:[#allocation5 + $0x65c] sm:$0xf]  ;;  %v4038_v10 = vor.u32 %v5249_v51, %v4035_v57  ;;  %2387 = vmatpush.bf16.msrb.mxu0 %v3782_v4  ;;  %v4682_v51 = vor.u32 %v5413_v28, %v4681_v24  ;;  %v4810_v57 = vor.u32 %v5445_v35, %v4809_v34  ;;  %v4874_v4 = vor.u32 %v5461_v41, %v4873_v40  ;;  %v4665_v28 = vld [vmem:[#allocation8 + $0x50] sm:$0xf]  ;;  %v5425_v34 = vld [vmem:[#allocation8 + $0xd4] sm:$0xf0] }
 0x156   :  { %v4291_v59 = vld [vmem:[#allocation5 + $0x678] sm:$0xf0]  ;;  %v4793_v35 = vld [vmem:[#allocation8 + $0x150] sm:$0xf] }
 0x157   :  { %v5377_v60 = vld [vmem:[#allocation5 + $0x85c] sm:$0xf]  ;;  %v4294_v11 = vor.u32 %v5313_v58, %v4291_v59  ;;  %2401 = vmatpush.bf16.msrb.mxu1 %v4038_v10  ;;  %v4673_v58 = vld [vmem:[#allocation8 + $0x60] sm:$0xf]  ;;  %v5411_v59 = vld [vmem:[#allocation8 + $0x64] sm:$0xf0] }
 0x158   :  { %v4547_v1 = vld [vmem:[#allocation5 + $0x878] sm:$0xf0]  ;;  %v5443_v10 = vld [vmem:[#allocation8 + $0x164] sm:$0xf0]  ;;  %v4857_v41 = vld [vmem:[#allocation8 + $0x1d0] sm:$0xf] }
 0x159   :  { %v5177_v5 = vld [vmem:[#allocation5 + $0x21c] sm:$0xf]  ;;  %v4550_v20 = vor.u32 %v5377_v60, %v4547_v1  ;;  %2415 = vmatpush.bf16.msrb.mxu2 %v4294_v11  ;;  %v4737_v60 = vld [vmem:[#allocation8 + $0xe0] sm:$0xf]  ;;  %v5856_v1 = vpop.f32.mrf.mxu2  ;;  %v5858_v11 = vld [vmem:[#allocation7] sm:$0xff] }
 0x15a   :  { %v3747_v6 = vld [vmem:[#allocation5 + $0x238] sm:$0xf0] }
 0x15b   :  { %v5241_v13 = vld [vmem:[#allocation5 + $0x41c] sm:$0xf]  ;;  %v3750_v30 = vor.u32 %v5177_v5, %v3747_v6  ;;  %2429 = vmatpush.bf16.msrb.mxu3 %v4550_v20  ;;  %v5427_v5 = vld [vmem:[#allocation8 + $0xe4] sm:$0xf0]  ;;  %v4801_v6 = vld [vmem:[#allocation8 + $0x160] sm:$0xf]  ;;  %v5861_v20 = vpop.f32.mrf.mxu0 }
 0x15c   :  { %v4003_v14 = vld [vmem:[#allocation5 + $0x438] sm:$0xf0]  ;;  %v4802_v24 = vor.u32 %v5443_v10, %v4801_v6 }
 0x15d   :  { %v5305_v18 = vld [vmem:[#allocation5 + $0x61c] sm:$0xf]  ;;  %v4006_v36 = vor.u32 %v5241_v13, %v4003_v14  ;;  %2388 = vmatpush.bf16.msrb.mxu0 %v3750_v30  ;;  %v393_v13 = vperm.slane %v5858_v11, 1  ;;  %v4865_v14 = vld [vmem:[#allocation8 + $0x1e0] sm:$0xf] }
 0x15e   :  { %v4259_v55 = vld [vmem:[#allocation5 + $0x638] sm:$0xf0]  ;;  %v4729_v30 = vld [vmem:[#allocation8 + $0xd0] sm:$0xf] }
 0x15f   :  { %v5369_v21 = vld [vmem:[#allocation5 + $0x81c] sm:$0xf]  ;;  %v4262_v39 = vor.u32 %v5305_v18, %v4259_v55  ;;  %2402 = vmatpush.bf16.msrb.mxu1 %v4006_v36  ;;  %v5459_v18 = vld [vmem:[#allocation8 + $0x1e4] sm:$0xf0]  ;;  %v5863_v55 = vpop.f32.mrf.mxu3  ;;  %v5441_v36 = vld [vmem:[#allocation8 + $0x154] sm:$0xf0]  ;;  %v1957_v40 = vadd.f32 %v5807_v31, %v393_v13  ;;  %v4730_v38 = vor.u32 %v5425_v34, %v4729_v30 }
 0x160   :  { %v4515_v22 = vld [vmem:[#allocation5 + $0x838] sm:$0xf0]  ;;  %2389 = vmatmul.bf16.vlgmr.msrb.gmra.mxu0 %v5750_v0  ;;  %v4866_v33 = vor.u32 %v5459_v18, %v4865_v14  ;;  %v395_v0 = vperm.slane %v5858_v11, 3  ;;  %v5407_v31 = vld [vmem:[#allocation8 + $0x44] sm:$0xf0] }
 0x161   :  { %v4518_v49 = vor.u32 %v5369_v21, %v4515_v22  ;;  %2416 = vmatpush.bf16.msrb.mxu2 %v4262_v39  ;;  %3190 = vmatpush.bf16.msra.mxu0 %v4682_v51  ;;  %v4674_v21 = vor.u32 %v5411_v59, %v4673_v58  ;;  %v4738_v22 = vor.u32 %v5427_v5, %v4737_v60  ;;  %v394_v51 = vperm.slane %v5858_v11, 2  ;;  %v4721_v58 = vld [vmem:[#allocation8 + $0xc0] sm:$0xf]  ;;  %v5423_v60 = vld [vmem:[#allocation8 + $0xc4] sm:$0xf0] }
 0x162   :  { %v1889_v39 = vadd.f32 %v5794_v48, %v392_v46  ;;  %2403 = vmatmul.bf16.vlgmr.msrb.gmra.mxu1 %v5746_v61  ;;  %v4794_v46 = vor.u32 %v5441_v36, %v4793_v35  ;;  %v4657_v48 = vld [vmem:[#allocation8 + $0x40] sm:$0xf]  ;;  %v1959_v61 = vadd.f32 %v5815_v16, %v393_v13  ;;  %v5439_v5 = vld [vmem:[#allocation8 + $0x144] sm:$0xf0]  ;;  %v1971_v10 = vadd.f32 %v5809_v42, %v1957_v40  ;;  %v4713_v42 = vld [vmem:[#allocation8 + $0xb0] sm:$0xf] }
 0x163   :  { %2430 = vmatpush.bf16.msrb.mxu3 %v4518_v49  ;;  %3204 = vmatpush.bf16.msra.mxu1 %v4746_v56  ;;  %v5457_v49 = vld [vmem:[#allocation8 + $0x1d4] sm:$0xf0]  ;;  %v5874_v56 = vpop.f32.mrf.mxu1  ;;  %v4849_v14 = vld [vmem:[#allocation8 + $0x1c0] sm:$0xf]  ;;  %v5455_v18 = vld [vmem:[#allocation8 + $0x1c4] sm:$0xf0]  ;;  %v2029_v16 = vadd.f32 %v5839_v54, %v394_v51  ;;  %v4658_v13 = vor.u32 %v5407_v31, %v4657_v48 }
 0x164   :  { %2417 = vmatmul.bf16.vlgmr.msrb.gmra.mxu2 %v5748_v62  ;;  %v5877_v62 = vpop.f32.mrf.mxu2  ;;  %v4858_v59 = vor.u32 %v5457_v49, %v4857_v41  ;;  %v1903_v6 = vadd.f32 %v5796_v2, %v1889_v39  ;;  %v5421_v30 = vld [vmem:[#allocation8 + $0xb4] sm:$0xf0]  ;;  %v4777_v54 = vld [vmem:[#allocation8 + $0x130] sm:$0xf]  ;;  %v2099_v39 = vadd.f32 %v5863_v55, %v395_v0  ;;  %v5403_v31 = vld [vmem:[#allocation8 + $0x24] sm:$0xf0] }
 0x165   :  { %3218 = vmatpush.bf16.msra.mxu2 %v4810_v57  ;;  %3191 = vmatpush.bf16.msra.mxu0 %v4674_v21  ;;  %v4666_v57 = vor.u32 %v5409_v29, %v4665_v28  ;;  %v2027_v21 = vadd.f32 %v5827_v9, %v394_v51  ;;  %v4722_v28 = vor.u32 %v5423_v60, %v4721_v58  ;;  %v5405_v29 = vld [vmem:[#allocation8 + $0x34] sm:$0xf0]  ;;  %v4841_v40 = vld [vmem:[#allocation8 + $0x1b0] sm:$0xf]  ;;  %v5419_v58 = vld [vmem:[#allocation8 + $0xa4] sm:$0xf0] }
 0x166   :  { %4622 = vmatmul.msk.bf16.vlgmr.msrb.gmra.mxu3 %vm1873_vm0, %v5756_v50  ;;  %v1973_v50 = vadd.f32 %v5819_v23, %v1959_v61  ;;  %v4850_v9 = vor.u32 %v5455_v18, %v4849_v14  ;;  %v5437_v35 = vld [vmem:[#allocation8 + $0x134] sm:$0xf0]  ;;  %v1917_v36 = vadd.f32 %v5799_v12, %v1903_v6  ;;  %v2043_v51 = vadd.f32 %v5843_v17, %v2029_v16  ;;  %v4769_v61 = vld [vmem:[#allocation8 + $0x120] sm:$0xf]  ;;  %v5435_v17 = vld [vmem:[#allocation8 + $0x124] sm:$0xf0] }
 0x167   :  { %3232 = vmatpush.bf16.msra.mxu3 %v4874_v4  ;;  %3205 = vmatpush.bf16.msra.mxu1 %v4738_v22  ;;  %v4785_v4 = vld [vmem:[#allocation8 + $0x140] sm:$0xf]  ;;  %v4649_v22 = vld [vmem:[#allocation8 + $0x30] sm:$0xf]  ;;  %v5887_v34 = vpop.f32.mrf.mxu3  ;;  %v5453_v41 = vld [vmem:[#allocation8 + $0x1b4] sm:$0xf0]  ;;  %v2041_v49 = vadd.f32 %v5829_v27, %v2027_v21  ;;  %v4778_v12 = vor.u32 %v5437_v35, %v4777_v54  ;;  %v4770_v16 = vor.u32 %v5435_v17, %v4769_v61 }
 0x168   :  { %v4786_v2 = vor.u32 %v5439_v5, %v4785_v4  ;;  %v4650_v23 = vor.u32 %v5405_v29, %v4649_v22  ;;  %v1987_v55 = vadd.f32 %v5823_v47, %v1973_v50  ;;  %v4842_v27 = vor.u32 %v5453_v41, %v4841_v40  ;;  %v4833_v4 = vld [vmem:[#allocation8 + $0x1a0] sm:$0xf]  ;;  %v4697_v22 = vld [vmem:[#allocation8 + $0x90] sm:$0xf]  ;;  %v5415_v40 = vld [vmem:[#allocation8 + $0x84] sm:$0xf0] }
 0x169   :  { %3219 = vmatpush.bf16.msra.mxu2 %v4802_v24  ;;  %3192 = vmatpush.bf16.msra.mxu0 %v4666_v57  ;;  %v2097_v24 = vadd.f32 %v5850_v3, %v395_v0  ;;  %v1985_v3 = vadd.f32 %v5811_v63, %v1971_v10  ;;  %v4714_v57 = vor.u32 %v5421_v30, %v4713_v42  ;;  %v4705_v63 = vld [vmem:[#allocation8 + $0xa0] sm:$0xf]  ;;  %v4825_v42 = vld [vmem:[#allocation8 + $0x190] sm:$0xf]  ;;  %v5449_v30 = vld [vmem:[#allocation8 + $0x194] sm:$0xf0] }
 0x16a   :  { %v2055_v5 = vadd.f32 %v5841_v15, %v2041_v49  ;;  %v2057_v6 = vadd.f32 %v5852_v19, %v2043_v51  ;;  %v4706_v18 = vor.u32 %v5419_v58, %v4705_v63  ;;  %v5417_v15 = vld [vmem:[#allocation8 + $0x94] sm:$0xf0]  ;;  %v5431_v49 = vld [vmem:[#allocation8 + $0x104] sm:$0xf0]  ;;  %v4817_v51 = vld [vmem:[#allocation8 + $0x180] sm:$0xf] }
 0x16b   :  { %3233 = vmatpush.bf16.msra.mxu3 %v4866_v33  ;;  %3206 = vmatpush.bf16.msra.mxu1 %v4730_v38  ;;  %v2112_v33 = vpop.f32.mrf.mxu0  ;;  %v4641_v38 = vld [vmem:[#allocation8 + $0x20] sm:$0xf]  ;;  %v2126_v0 = vpop.f32.mrf.mxu1  ;;  %v1999_v60 = vadd.f32 %v5821_v45, %v1985_v3  ;;  %v2001_v45 = vadd.f32 %v5833_v32, %v1987_v55  ;;  %v5433_v19 = vld [vmem:[#allocation8 + $0x114] sm:$0xf0] }
 0x16c   :  { %v2113_v48 = vadd.f32 %v2112_v33, %v2099_v39  ;;  %v2140_v10 = vpop.f32.mrf.mxu2  ;;  %v4642_v14 = vor.u32 %v5403_v31, %v4641_v38  ;;  %v2069_v50 = vadd.f32 %v5845_v37, %v2055_v5  ;;  %v2071_v33 = vadd.f32 %v5854_v44, %v2057_v6  ;;  %v4625_v32 = vld [vmem:[#allocation8] sm:$0xf]  ;;  %v5447_v38 = vld [vmem:[#allocation8 + $0x184] sm:$0xf0]  ;;  %v5493_v63 = vld [vmem:[#allocation8 + $0x2f4] sm:$0xf0] }
 0x16d   :  { %3220 = vmatpush.bf16.msra.mxu2 %v4794_v46  ;;  %3193 = vmatpush.bf16.msra.mxu0 %v4658_v13  ;;  %v2111_v46 = vadd.f32 %v5861_v20, %v2097_v24  ;;  %v5451_v20 = vld [vmem:[#allocation8 + $0x1a4] sm:$0xf0]  ;;  %v4633_v13 = vld [vmem:[#allocation8 + $0x10] sm:$0xf]  ;;  %v4689_v39 = vld [vmem:[#allocation8 + $0x80] sm:$0xf]  ;;  %v2015_v41 = vadd.f32 %v5837_v53, %v2001_v45  ;;  %v4826_v37 = vor.u32 %v5449_v30, %v4825_v42 }
 0x16e   :  { %v2127_v21 = vadd.f32 %v2126_v0, %v2113_v48  ;;  %v4834_v24 = vor.u32 %v5451_v20, %v4833_v4  ;;  %v4753_v44 = vld [vmem:[#allocation8 + $0x100] sm:$0xf]  ;;  %v5477_v48 = vld [vmem:[#allocation8 + $0x274] sm:$0xf0]  ;;  %v2083_v31 = vadd.f32 %v5847_v52, %v2069_v50  ;;  %v4690_v0 = vor.u32 %v5415_v40, %v4689_v39  ;;  %v5475_v52 = vld [vmem:[#allocation8 + $0x264] sm:$0xf0] }
 0x16f   :  { %3234 = vmatpush.bf16.msra.mxu3 %v4858_v59  ;;  %3207 = vmatpush.bf16.msra.mxu1 %v4722_v28  ;;  %v1931_v59 = vadd.f32 %v5803_v26, %v1917_v36  ;;  %v2125_v47 = vadd.f32 %v5874_v56, %v2111_v46  ;;  %v5401_v26 = vld [vmem:[#allocation8 + $0x14] sm:$0xf0]  ;;  %v4761_v28 = vld [vmem:[#allocation8 + $0x110] sm:$0xf]  ;;  %v2013_v56 = vadd.f32 %v5825_v7, %v1999_v60  ;;  %v4929_v4 = vld [vmem:[#allocation8 + $0x260] sm:$0xf] }
 0x170   :  { %v2141_v29 = vadd.f32 %v2140_v10, %v2127_v21  ;;  %v4634_v54 = vor.u32 %v5401_v26, %v4633_v13  ;;  %v4698_v36 = vor.u32 %v5417_v15, %v4697_v22  ;;  %v4762_v3 = vor.u32 %v5433_v19, %v4761_v28  ;;  %v4937_v46 = vld [vmem:[#allocation8 + $0x270] sm:$0xf]  ;;  %v4993_v10 = vld [vmem:[#allocation8 + $0x2e0] sm:$0xf]  ;;  %v5473_v45 = vld [vmem:[#allocation8 + $0x254] sm:$0xf0] }
 0x171   :  { %3221 = vmatpush.bf16.msra.mxu2 %v4786_v2  ;;  %3194 = vmatpush.bf16.msra.mxu0 %v4650_v23  ;;  %v1945_v2 = vadd.f32 %v5813_v8, %v1931_v59  ;;  %v2139_v35 = vadd.f32 %v5877_v62, %v2125_v47  ;;  %v5399_v8 = vld [vmem:[#allocation8 + $0x4] sm:$0xf0]  ;;  %v2085_v7 = vadd.f32 %v5856_v1, %v2071_v33  ;;  %v5001_v1 = vld [vmem:[#allocation8 + $0x2f0] sm:$0xf]  ;;  %v2438_v58 = vmax.f32 %v2013_v56, 0.0 }
 0x172   :  { %v1943_v23 = vadd.f32 %v5801_v25, %v5786_v43  ;;  %v4626_v53 = vor.u32 %v5399_v8, %v4625_v32  ;;  %v4754_v43 = vor.u32 %v5431_v49, %v4753_v44  ;;  %v2446_v25 = vmax.f32 %v2015_v41, 0.0  ;;  %v4921_v22 = vld [vmem:[#allocation8 + $0x250] sm:$0xf]  ;;  %v5489_v19 = vld [vmem:[#allocation8 + $0x2d4] sm:$0xf0] }
 0x173   :  { %3235 = vmatpush.bf16.msra.mxu3 %v4850_v9  ;;  %3208 = vmatpush.bf16.msra.mxu1 %v4714_v57  ;;  %v2154_v9 = vpop.f32.mrf.mxu3  ;;  %v5911_v57 = vpop.f32.mrf.mxu0  ;;  %v2153_v55 = vadd.f32 %v5887_v34, %v2139_v35  ;;  %v4818_v61 = vor.u32 %v5447_v38, %v4817_v51  ;;  %v4938_v17 = vor.u32 %v5477_v48, %v4937_v46  ;;  %v2439_v5 = vmax.f32 %v2083_v31, 0.0  ;;  %v4985_v28 = vld [vmem:[#allocation8 + $0x2d0] sm:$0xf]  ;;  %v4913_v42 = vld [vmem:[#allocation8 + $0x240] sm:$0xf] }
 0x174   :  { %v2155_v62 = vadd.f32 %v2154_v9, %v2141_v29  ;;  %v2437_v59 = vmax.f32 %v1943_v23, 0.0  ;;  %v5002_v20 = vor.u32 %v5493_v63, %v5001_v1  ;;  %v2180_v6 = vpop.f32.mrf.mxu1  ;;  %v5917_v47 = vpack.c.bf16 %v2446_v25, %v2438_v58  ;;  %v2194_v15 = vpop.f32.mrf.mxu2  ;;  %v5471_v30 = vld [vmem:[#allocation8 + $0x244] sm:$0xf0]  ;;  %v4977_v33 = vld [vmem:[#allocation8 + $0x2c0] sm:$0xf] }
 0x175   :  { %3222 = vmatpush.bf16.msra.mxu2 %v4778_v12  ;;  %3195 = vmatpush.bf16.msra.mxu0 %v4642_v14  ;;  %v2445_v12 = vmax.f32 %v1945_v2, 0.0  ;;  %v5491_v14 = vld [vmem:[#allocation8 + $0x2e4] sm:$0xf0]  ;;  %v396_v2 = vperm.slane %v5858_v11, 4  ;;  %v4922_v29 = vor.u32 %v5473_v45, %v4921_v22  ;;  %v4986_v56 = vor.u32 %v5489_v19, %v4985_v28  ;;  %v5469_v8 = vld [vmem:[#allocation8 + $0x234] sm:$0xf0] }
 0x176   :  { %v2448_v60 = vmax.f32 %v2155_v62, 0.0  ;;  %v5487_v9 = vld [vmem:[#allocation8 + $0x2c4] sm:$0xf0]  ;;  %v4914_v35 = vor.u32 %v5471_v30, %v4913_v42  ;;  %v4969_v41 = vld [vmem:[#allocation8 + $0x2b0] sm:$0xf] }
 0x177   :  { %3236 = vmatpush.bf16.msra.mxu3 %v4842_v27  ;;  %3209 = vmatpush.bf16.msra.mxu1 %v4706_v18  ;;  %v2447_v27 = vmax.f32 %v2085_v7, 0.0  ;;  %v5915_v34 = vpack.c.bf16 %v2445_v12, %v2437_v59  ;;  %v2440_v18 = vmax.f32 %v2153_v55, 0.0  ;;  %v4978_v39 = vor.u32 %v5487_v9, %v4977_v33  ;;  %v5485_v7 = vld [vmem:[#allocation8 + $0x2b4] sm:$0xf0]  ;;  %v4897_v23 = vld [vmem:[#allocation8 + $0x220] sm:$0xf] }
 0x178   :  { %v5467_v62 = vld [vmem:[#allocation8 + $0x224] sm:$0xf0]  ;;  %v5065_v38 = vld [vmem:[#allocation8 + $0x370] sm:$0xf]  ;;  %v5509_v46 = vld [vmem:[#allocation8 + $0x374] sm:$0xf0] }
 0x179   :  { %3223 = vmatpush.bf16.msra.mxu2 %v4770_v16  ;;  %3196 = vmatpush.bf16.msra.mxu0 %v4634_v54  ;;  %v5919_v21 = vpack.c.bf16 %v2447_v27, %v2439_v5  ;;  %v4930_v16 = vor.u32 %v5475_v52, %v4929_v4  ;;  %v5921_v13 = vpack.c.bf16 %v2448_v60, %v2440_v18  ;;  %v4961_v48 = vld [vmem:[#allocation8 + $0x2a0] sm:$0xf]  ;;  %v5483_v12 = vld [vmem:[#allocation8 + $0x2a4] sm:$0xf0]  ;;  %v4889_v55 = vld [vmem:[#allocation8 + $0x210] sm:$0xf] }
 0x17a   :  { %v2167_v54 = vadd.f32 %v5911_v57, %v396_v2  ;;  %v4970_v57 = vor.u32 %v5485_v7, %v4969_v41  ;;  %v5066_v31 = vor.u32 %v5509_v46, %v5065_v38  ;;  %v4898_v58 = vor.u32 %v5467_v62, %v4897_v23  ;;  %v4953_v27 = vld [vmem:[#allocation8 + $0x290] sm:$0xf]  ;;  %v5057_v60 = vld [vmem:[#allocation8 + $0x360] sm:$0xf]  ;;  %v5507_v4 = vld [vmem:[#allocation8 + $0x364] sm:$0xf0] }
 0x17b   :  { %3237 = vmatpush.bf16.msra.mxu3 %v4834_v24  ;;  %3210 = vmatpush.bf16.msra.mxu1 %v4698_v36  ;;  %v2168_v26 = vpop.f32.mrf.mxu0  ;;  %v4994_v24 = vor.u32 %v5491_v14, %v4993_v10  ;;  %v2208_v50 = vpop.f32.mrf.mxu3  ;;  %v5463_v5 = vld [vmem:[#allocation8 + $0x204] sm:$0xf0]  ;;  %v5428_v18 = vld [vmem:[#allocation8 + $0xf4] sm:$0xf]  ;;  %v5049_v45 = vld [vmem:[#allocation8 + $0x350] sm:$0xf] }
 0x17c   :  { %v2169_v32 = vadd.f32 %v2168_v26, %v396_v2  ;;  %v2182_v36 = vpop.f32.mrf.mxu1  ;;  %v2196_v49 = vpop.f32.mrf.mxu2  ;;  %v4945_v26 = vld [vmem:[#allocation8 + $0x280] sm:$0xf]  ;;  %v5479_v22 = vld [vmem:[#allocation8 + $0x284] sm:$0xf0]  ;;  %v5444_v19 = vld [vmem:[#allocation8 + $0x174] sm:$0xf] }
 0x17d   :  { %3224 = vmatpush.bf16.msra.mxu2 %v4762_v3  ;;  %3197 = vmatpush.bf16.msra.mxu0 %v4626_v53  ;;  %v4905_v3 = vld [vmem:[#allocation8 + $0x230] sm:$0xf]  ;;  %v4811_v2 = vld [vmem:[#allocation8 + $0x178] sm:$0xf0]  ;;  %v4946_v33 = vor.u32 %v5479_v22, %v4945_v26  ;;  %v5426_v9 = vld [vmem:[#allocation8 + $0xe4] sm:$0xf] }
 0x17e   :  { %v2183_v44 = vadd.f32 %v2182_v36, %v2169_v32  ;;  %v4906_v51 = vor.u32 %v5469_v8, %v4905_v3  ;;  %v4814_v32 = vor.u32 %v5444_v19, %v4811_v2  ;;  %v4803_v36 = vld [vmem:[#allocation8 + $0x168] sm:$0xf0]  ;;  %v5041_v8 = vld [vmem:[#allocation8 + $0x340] sm:$0xf]  ;;  %v5501_v38 = vld [vmem:[#allocation8 + $0x334] sm:$0xf0] }
 0x17f   :  { %3238 = vmatpush.bf16.msra.mxu3 %v4826_v37  ;;  %3211 = vmatpush.bf16.msra.mxu1 %v4690_v0  ;;  %v2181_v37 = vadd.f32 %v2180_v6, %v2167_v54  ;;  %v5465_v0 = vld [vmem:[#allocation8 + $0x214] sm:$0xf0]  ;;  %v5058_v6 = vor.u32 %v5507_v4, %v5057_v60  ;;  %v4739_v54 = vld [vmem:[#allocation8 + $0xe8] sm:$0xf0]  ;;  %v5420_v4 = vld [vmem:[#allocation8 + $0xb4] sm:$0xf] }
 0x180   :  { %3198 = vmatmul.bf16.vlgmr.msra.gmra.mxu0 %v5915_v34  ;;  %v2197_v1 = vadd.f32 %v2196_v49, %v2183_v44  ;;  %v4890_v52 = vor.u32 %v5465_v0, %v4889_v55  ;;  %v4742_v7 = vor.u32 %v5426_v9, %v4739_v54  ;;  %v5438_v0 = vld [vmem:[#allocation8 + $0x144] sm:$0xf]  ;;  %v5436_v26 = vld [vmem:[#allocation8 + $0x134] sm:$0xf]  ;;  %v4779_v22 = vld [vmem:[#allocation8 + $0x138] sm:$0xf0] }
 0x181   :  { %3225 = vmatpush.bf16.msra.mxu2 %v4754_v43  ;;  %3246 = vmatpush.bf16.msrb.mxu0 %v4938_v17  ;;  %v2195_v53 = vadd.f32 %v2194_v15, %v2181_v37  ;;  %v4962_v43 = vor.u32 %v5483_v12, %v4961_v48  ;;  %v5424_v37 = vld [vmem:[#allocation8 + $0xd4] sm:$0xf]  ;;  %v4795_v12 = vld [vmem:[#allocation8 + $0x158] sm:$0xf0]  ;;  %v5418_v2 = vld [vmem:[#allocation8 + $0xa4] sm:$0xf] }
 0x182   :  { %3212 = vmatmul.bf16.vlgmr.msra.gmra.mxu1 %v5917_v47  ;;  %v5440_v48 = vld [vmem:[#allocation8 + $0x154] sm:$0xf] }
 0x183   :  { %3239 = vmatpush.bf16.msra.mxu3 %v4818_v61  ;;  %3260 = vmatpush.bf16.msrb.mxu1 %v5002_v20  ;;  %v2222_v40 = vpop.f32.mrf.mxu0  ;;  %v2210_v63 = vpop.f32.mrf.mxu3  ;;  %v5481_v61 = vld [vmem:[#allocation8 + $0x294] sm:$0xf0]  ;;  %v2209_v17 = vadd.f32 %v2208_v50, %v2195_v53  ;;  %v4881_v20 = vld [vmem:[#allocation8 + $0x200] sm:$0xf]  ;;  %v4798_v55 = vor.u32 %v5440_v48, %v4795_v12  ;;  %v4867_v48 = vld [vmem:[#allocation8 + $0x1e8] sm:$0xf0] }
 0x184   :  { %3226 = vmatmul.bf16.vlgmr.msra.gmra.mxu2 %v5919_v21  ;;  %v2211_v59 = vadd.f32 %v2210_v63, %v2197_v1  ;;  %v4954_v14 = vor.u32 %v5481_v61, %v4953_v27  ;;  %v4882_v42 = vor.u32 %v5463_v5, %v4881_v20  ;;  %v5422_v63 = vld [vmem:[#allocation8 + $0xc4] sm:$0xf]  ;;  %v5025_v27 = vld [vmem:[#allocation8 + $0x320] sm:$0xf]  ;;  %v5499_v61 = vld [vmem:[#allocation8 + $0x324] sm:$0xf0] }
 0x185   :  { %3247 = vmatpush.bf16.msrb.mxu0 %v4930_v16  ;;  %3274 = vmatpush.bf16.msrb.mxu2 %v5066_v31  ;;  %v4747_v16 = vld [vmem:[#allocation8 + $0xf8] sm:$0xf0]  ;;  %v2223_v15 = vadd.f32 %v2222_v40, %v2209_v17 }
 0x186   :  { %3240 = vmatmul.bf16.vlgmr.msra.gmra.mxu3 %v5921_v13  ;;  %v4750_v50 = vor.u32 %v5428_v18, %v4747_v16  ;;  %v4715_v5 = vld [vmem:[#allocation8 + $0xb8] sm:$0xf0] }
 0x187   :  { %3261 = vmatpush.bf16.msrb.mxu1 %v4994_v24  ;;  %v5505_v24 = vld [vmem:[#allocation8 + $0x354] sm:$0xf0]  ;;  %v2236_v28 = vpop.f32.mrf.mxu1  ;;  %v2441_v3 = vmax.f32 %v2223_v15, 0.0  ;;  %v4718_v15 = vor.u32 %v5420_v4, %v4715_v5 }
 0x189   :  { %3248 = vmatpush.bf16.msrb.mxu0 %v4922_v29  ;;  %3275 = vmatpush.bf16.msrb.mxu2 %v5058_v6  ;;  %v5050_v29 = vor.u32 %v5505_v24, %v5049_v45 }
 0x18b   :  { %3262 = vmatpush.bf16.msrb.mxu1 %v4986_v56  ;;  %v2224_v25 = vpop.f32.mrf.mxu0  ;;  %v397_v56 = vperm.slane %v5858_v11, 5 }
 0x18c   :  { %v2225_v10 = vadd.f32 %v2224_v25, %v2211_v59  ;;  %v4787_v25 = vld [vmem:[#allocation8 + $0x148] sm:$0xf0]  ;;  %v5026_v59 = vor.u32 %v5499_v61, %v5025_v27  ;;  %v5515_v27 = vld [vmem:[#allocation8 + $0x3a4] sm:$0xf0] }
 0x18d   :  { %3249 = vmatpush.bf16.msrb.mxu0 %v4914_v35  ;;  %v5442_v35 = vld [vmem:[#allocation8 + $0x164] sm:$0xf]  ;;  %3276 = vmatpush.bf16.msrb.mxu2 %v5050_v29  ;;  %v2237_v44 = vadd.f32 %v2236_v28, %v397_v56  ;;  %v4790_v6 = vor.u32 %v5438_v0, %v4787_v25  ;;  %v4707_v29 = vld [vmem:[#allocation8 + $0xa8] sm:$0xf0]  ;;  %v5089_v25 = vld [vmem:[#allocation8 + $0x3a0] sm:$0xf] }
 0x18e   :  { %v2449_v30 = vmax.f32 %v2225_v10, 0.0  ;;  %v4806_v23 = vor.u32 %v5442_v35, %v4803_v36  ;;  %v5017_v10 = vld [vmem:[#allocation8 + $0x310] sm:$0xf]  ;;  %v4875_v35 = vld [vmem:[#allocation8 + $0x1f8] sm:$0xf0]  ;;  %v4710_v36 = vor.u32 %v5418_v2, %v4707_v29 }
 0x18f   :  { %3263 = vmatpush.bf16.msrb.mxu1 %v4978_v39  ;;  %v5503_v39 = vld [vmem:[#allocation8 + $0x344] sm:$0xf0]  ;;  %v2250_v49 = vpop.f32.mrf.mxu2  ;;  %v2238_v46 = vpop.f32.mrf.mxu1  ;;  %v4755_v61 = vld [vmem:[#allocation8 + $0x108] sm:$0xf0]  ;;  %v5454_v2 = vld [vmem:[#allocation8 + $0x1c4] sm:$0xf] }
 0x190   :  { %v5042_v40 = vor.u32 %v5503_v39, %v5041_v8  ;;  %v5930_v41 = vpack.c.bf16 %v2449_v30, %v2441_v3  ;;  %v2251_v1 = vadd.f32 %v2250_v49, %v2237_v44  ;;  %v5434_v30 = vld [vmem:[#allocation8 + $0x124] sm:$0xf]  ;;  %v5432_v44 = vld [vmem:[#allocation8 + $0x114] sm:$0xf]  ;;  %v4763_v49 = vld [vmem:[#allocation8 + $0x118] sm:$0xf0] }
 0x191   :  { %3250 = vmatpush.bf16.msrb.mxu0 %v4906_v51  ;;  %v4731_v51 = vld [vmem:[#allocation8 + $0xd8] sm:$0xf0]  ;;  %v2264_v62 = vpop.f32.mrf.mxu3  ;;  %v4851_v29 = vld [vmem:[#allocation8 + $0x1c8] sm:$0xf0] }
 0x192   :  { %3277 = vmatpush.bf16.msrb.mxu2 %v5042_v40  ;;  %v4734_v53 = vor.u32 %v5424_v37, %v4731_v51  ;;  %v5416_v40 = vld [vmem:[#allocation8 + $0x94] sm:$0xf]  ;;  %v5097_v51 = vld [vmem:[#allocation8 + $0x3b0] sm:$0xf] }
 0x193   :  { %3264 = vmatpush.bf16.msrb.mxu1 %v4970_v57  ;;  %v5033_v57 = vld [vmem:[#allocation8 + $0x330] sm:$0xf] }
 0x194   :  { %v5034_v31 = vor.u32 %v5501_v38, %v5033_v57  ;;  %v4691_v57 = vld [vmem:[#allocation8 + $0x88] sm:$0xf0] }
 0x195   :  { %3251 = vmatpush.bf16.msrb.mxu0 %v4898_v58  ;;  %v4723_v58 = vld [vmem:[#allocation8 + $0xc8] sm:$0xf0] }
 0x196   :  { %3278 = vmatpush.bf16.msrb.mxu2 %v5034_v31  ;;  %v4726_v60 = vor.u32 %v5422_v63, %v4723_v58  ;;  %v5430_v63 = vld [vmem:[#allocation8 + $0x104] sm:$0xf] }
 0x197   :  { %3265 = vmatpush.bf16.msrb.mxu1 %v4962_v43  ;;  %v2239_v43 = vadd.f32 %v2238_v46, %v397_v56  ;;  %v2252_v20 = vpop.f32.mrf.mxu2  ;;  %v2292_v24 = vpop.f32.mrf.mxu1  ;;  %v4771_v56 = vld [vmem:[#allocation8 + $0x128] sm:$0xf0]  ;;  %v5458_v46 = vld [vmem:[#allocation8 + $0x1e4] sm:$0xf] }
 0x198   :  { %v4774_v37 = vor.u32 %v5434_v30, %v4771_v56  ;;  %v4870_v58 = vor.u32 %v5458_v46, %v4867_v48  ;;  %v5488_v56 = vld [vmem:[#allocation8 + $0x2d4] sm:$0xf]  ;;  %v5502_v46 = vld [vmem:[#allocation8 + $0x344] sm:$0xf]  ;;  %v5043_v48 = vld [vmem:[#allocation8 + $0x348] sm:$0xf0] }
 0x199   :  { %3252 = vmatpush.bf16.msrb.mxu0 %v4890_v52  ;;  %v2278_v17 = vpop.f32.mrf.mxu0  ;;  %v2265_v52 = vadd.f32 %v2264_v62, %v2251_v1  ;;  %v2253_v18 = vadd.f32 %v2252_v20, %v2239_v43  ;;  %v2266_v16 = vpop.f32.mrf.mxu3  ;;  %v5414_v62 = vld [vmem:[#allocation8 + $0x84] sm:$0xf]  ;;  %v5003_v1 = vld [vmem:[#allocation8 + $0x2f8] sm:$0xf0]  ;;  %v4766_v43 = vor.u32 %v5432_v44, %v4763_v49  ;;  %v398_v44 = vperm.slane %v5858_v11, 6 }
 0x19a   :  { %3279 = vmatpush.bf16.msrb.mxu2 %v5026_v59  ;;  %v5067_v59 = vld [vmem:[#allocation8 + $0x378] sm:$0xf0]  ;;  %v4694_v5 = vor.u32 %v5414_v62, %v4691_v57  ;;  %v4979_v57 = vld [vmem:[#allocation8 + $0x2c8] sm:$0xf0] }
 0x19b   :  { %3266 = vmatpush.bf16.msrb.mxu1 %v4954_v14  ;;  %v5497_v14 = vld [vmem:[#allocation8 + $0x314] sm:$0xf0]  ;;  %v2279_v28 = vadd.f32 %v2278_v17, %v2265_v52  ;;  %v2267_v19 = vadd.f32 %v2266_v16, %v2253_v18  ;;  %v5508_v17 = vld [vmem:[#allocation8 + $0x374] sm:$0xf]  ;;  %v4859_v20 = vld [vmem:[#allocation8 + $0x1d8] sm:$0xf0]  ;;  %v4758_v18 = vor.u32 %v5430_v63, %v4755_v61 }
 0x19c   :  { %v5018_v45 = vor.u32 %v5497_v14, %v5017_v10  ;;  %v5456_v52 = vld [vmem:[#allocation8 + $0x1d4] sm:$0xf]  ;;  %v5490_v16 = vld [vmem:[#allocation8 + $0x2e4] sm:$0xf]  ;;  %v5035_v61 = vld [vmem:[#allocation8 + $0x338] sm:$0xf0] }
 0x19d   :  { %3253 = vmatpush.bf16.msrb.mxu0 %v4882_v42  ;;  %v4782_v42 = vor.u32 %v5436_v26, %v4779_v22  ;;  %v2293_v8 = vadd.f32 %v2292_v24, %v2279_v28  ;;  %v4995_v26 = vld [vmem:[#allocation8 + $0x2e8] sm:$0xf0]  ;;  %v5070_v22 = vor.u32 %v5508_v17, %v5067_v59  ;;  %v5081_v24 = vld [vmem:[#allocation8 + $0x390] sm:$0xf]  ;;  %v5484_v63 = vld [vmem:[#allocation8 + $0x2b4] sm:$0xf] }
 0x19e   :  { %3280 = vmatpush.bf16.msrb.mxu2 %v5018_v45  ;;  %v5506_v45 = vld [vmem:[#allocation8 + $0x364] sm:$0xf]  ;;  %v5059_v28 = vld [vmem:[#allocation8 + $0x368] sm:$0xf0]  ;;  %v4998_v30 = vor.u32 %v5490_v16, %v4995_v26  ;;  %v5408_v59 = vld [vmem:[#allocation8 + $0x54] sm:$0xf] }
 0x19f   :  { %3267 = vmatpush.bf16.msrb.mxu1 %v4946_v33  ;;  %v5495_v33 = vld [vmem:[#allocation8 + $0x304] sm:$0xf0]  ;;  %v2294_v12 = vpop.f32.mrf.mxu1  ;;  %v4963_v16 = vld [vmem:[#allocation8 + $0x2a8] sm:$0xf0] }
 0x1a0   :  { %3254 = vmatmul.bf16.vlgmr.msrb.gmra.mxu0 %v5930_v41 }
 0x1a1   :  { %3316 = vmatpush.bf16.msra.mxu0 %v4750_v50  ;;  %v5009_v50 = vld [vmem:[#allocation8 + $0x300] sm:$0xf]  ;;  %v2280_v9 = vpop.f32.mrf.mxu0 }
 0x1a2   :  { %v5010_v54 = vor.u32 %v5495_v33, %v5009_v50  ;;  %v2281_v39 = vadd.f32 %v2280_v9, %v2267_v19  ;;  %v4987_v50 = vld [vmem:[#allocation8 + $0x2d8] sm:$0xf0]  ;;  %v5504_v33 = vld [vmem:[#allocation8 + $0x354] sm:$0xf] }
 0x1a3   :  { %3330 = vmatpush.bf16.msra.mxu1 %v4814_v32  ;;  %v5460_v32 = vld [vmem:[#allocation8 + $0x1f4] sm:$0xf]  ;;  %v4990_v49 = vor.u32 %v5488_v56, %v4987_v50 }
 0x1a4   :  { %v4878_v3 = vor.u32 %v5460_v32, %v4875_v35  ;;  %3281 = vmatpush.bf16.msrb.mxu2 %v5010_v54  ;;  %v2295_v0 = vadd.f32 %v2294_v12, %v2281_v39  ;;  %v5062_v54 = vor.u32 %v5506_v45, %v5059_v28  ;;  %v5051_v32 = vld [vmem:[#allocation8 + $0x358] sm:$0xf0]  ;;  %v5073_v35 = vld [vmem:[#allocation8 + $0x380] sm:$0xf]  ;;  %v4675_v12 = vld [vmem:[#allocation8 + $0x68] sm:$0xf0] }
 0x1a5   :  { %3317 = vmatpush.bf16.msra.mxu0 %v4742_v7  ;;  %v4699_v7 = vld [vmem:[#allocation8 + $0x98] sm:$0xf0]  ;;  %v5027_v45 = vld [vmem:[#allocation8 + $0x328] sm:$0xf0]  ;;  %v5406_v28 = vld [vmem:[#allocation8 + $0x44] sm:$0xf] }
 0x1a6   :  { %v4702_v31 = vor.u32 %v5416_v40, %v4699_v7  ;;  %v2450_v4 = vmax.f32 %v2295_v0, 0.0  ;;  %v4683_v39 = vld [vmem:[#allocation8 + $0x78] sm:$0xf0]  ;;  %v5452_v40 = vld [vmem:[#allocation8 + $0x1b4] sm:$0xf] }
 0x1a7   :  { %3331 = vmatpush.bf16.msra.mxu1 %v4806_v23  ;;  %v5517_v23 = vld [vmem:[#allocation8 + $0x3b4] sm:$0xf0] }
 0x1a8   :  { %3344 = vmatpush.bf16.msra.mxu2 %v4878_v3  ;;  %v5098_v38 = vor.u32 %v5517_v23, %v5097_v51  ;;  %v5486_v51 = vld [vmem:[#allocation8 + $0x2c4] sm:$0xf] }
 0x1a9   :  { %3318 = vmatpush.bf16.msra.mxu0 %v4734_v53  ;;  %v5492_v53 = vld [vmem:[#allocation8 + $0x2f4] sm:$0xf]  ;;  %v4982_v11 = vor.u32 %v5486_v51, %v4979_v57 }
 0x1aa   :  { %3292 = vmatpush.bf16.msrb.mxu3 %v5098_v38  ;;  %v5006_v14 = vor.u32 %v5492_v53, %v5003_v1  ;;  %v5054_v38 = vor.u32 %v5504_v33, %v5051_v32  ;;  %v4835_v1 = vld [vmem:[#allocation8 + $0x1a8] sm:$0xf0]  ;;  %v5480_v33 = vld [vmem:[#allocation8 + $0x294] sm:$0xf] }
 0x1ab   :  { %3332 = vmatpush.bf16.msra.mxu1 %v4798_v55  ;;  %v2442_v55 = vmax.f32 %v2293_v8, 0.0  ;;  %v5412_v8 = vld [vmem:[#allocation8 + $0x74] sm:$0xf] }
 0x1ac   :  { %3345 = vmatpush.bf16.msra.mxu2 %v4870_v58  ;;  %v4686_v7 = vor.u32 %v5412_v8, %v4683_v39  ;;  %v5496_v32 = vld [vmem:[#allocation8 + $0x314] sm:$0xf]  ;;  %v4651_v8 = vld [vmem:[#allocation8 + $0x38] sm:$0xf0] }
 0x1ad   :  { %3319 = vmatpush.bf16.msra.mxu0 %v4726_v60  ;;  %v5090_v60 = vor.u32 %v5515_v27, %v5089_v25  ;;  %v5933_v10 = vpack.c.bf16 %v2450_v4, %v2442_v55  ;;  %v5046_v25 = vor.u32 %v5502_v46, %v5043_v48  ;;  %v5500_v27 = vld [vmem:[#allocation8 + $0x334] sm:$0xf]  ;;  %v5402_v46 = vld [vmem:[#allocation8 + $0x24] sm:$0xf]  ;;  %v4643_v48 = vld [vmem:[#allocation8 + $0x28] sm:$0xf0] }
 0x1ae   :  { %v5448_v4 = vld [vmem:[#allocation8 + $0x194] sm:$0xf]  ;;  %v5038_v26 = vor.u32 %v5500_v27, %v5035_v61  ;;  %v5099_v27 = vld [vmem:[#allocation8 + $0x3b8] sm:$0xf0] }
 0x1af   :  { %3333 = vmatpush.bf16.msra.mxu1 %v4790_v6  ;;  %v4862_v6 = vor.u32 %v5456_v52, %v4859_v20  ;;  %3293 = vmatpush.bf16.msrb.mxu3 %v5090_v60  ;;  %v2306_v9 = vpop.f32.mrf.mxu2  ;;  %v4667_v60 = vld [vmem:[#allocation8 + $0x58] sm:$0xf0] }
 0x1b0   :  { %3268 = vmatmul.bf16.vlgmr.msrb.gmra.mxu1 %v5933_v10  ;;  %v2307_v17 = vadd.f32 %v2306_v9, %v398_v44  ;;  %v4670_v52 = vor.u32 %v5408_v59, %v4667_v60  ;;  %v4827_v20 = vld [vmem:[#allocation8 + $0x198] sm:$0xf0]  ;;  %v5398_v59 = vld [vmem:[#allocation8 + $0x4] sm:$0xf]  ;;  %v4627_v60 = vld [vmem:[#allocation8 + $0x8] sm:$0xf0] }
 0x1b1   :  { %3320 = vmatpush.bf16.msra.mxu0 %v4718_v15  ;;  %3346 = vmatpush.bf16.msra.mxu2 %v4862_v6  ;;  %v5513_v15 = vld [vmem:[#allocation8 + $0x394] sm:$0xf0]  ;;  %v2320_v62 = vpop.f32.mrf.mxu3  ;;  %v5482_v6 = vld [vmem:[#allocation8 + $0x2a4] sm:$0xf]  ;;  %v4955_v9 = vld [vmem:[#allocation8 + $0x298] sm:$0xf0] }
 0x1b2   :  { %v5082_v19 = vor.u32 %v5513_v15, %v5081_v24  ;;  %v2321_v24 = vadd.f32 %v2320_v62, %v2307_v17  ;;  %v4966_v56 = vor.u32 %v5482_v6, %v4963_v16  ;;  %v5514_v6 = vld [vmem:[#allocation8 + $0x3a4] sm:$0xf]  ;;  %v5512_v16 = vld [vmem:[#allocation8 + $0x394] sm:$0xf] }
 0x1b3   :  { %3334 = vmatpush.bf16.msra.mxu1 %v4782_v42  ;;  %v4854_v42 = vor.u32 %v5454_v2, %v4851_v29  ;;  %v5446_v2 = vld [vmem:[#allocation8 + $0x184] sm:$0xf] }
 0x1b4   :  { %3294 = vmatpush.bf16.msrb.mxu3 %v5082_v19  ;;  %v4659_v19 = vld [vmem:[#allocation8 + $0x48] sm:$0xf0] }
 0x1b5   :  { %3321 = vmatpush.bf16.msra.mxu0 %v4710_v36  ;;  %v5511_v36 = vld [vmem:[#allocation8 + $0x384] sm:$0xf0]  ;;  %3347 = vmatpush.bf16.msra.mxu2 %v4854_v42  ;;  %v4662_v42 = vor.u32 %v5406_v28, %v4659_v19  ;;  %v5075_v28 = vld [vmem:[#allocation8 + $0x388] sm:$0xf0] }
 0x1b6   :  { %v5074_v3 = vor.u32 %v5511_v36, %v5073_v35 }
 0x1b7   :  { %3335 = vmatpush.bf16.msra.mxu1 %v4774_v37  ;;  %v4843_v37 = vld [vmem:[#allocation8 + $0x1b8] sm:$0xf0]  ;;  %v2308_v0 = vpop.f32.mrf.mxu2 }
 0x1b8   :  { %v4846_v23 = vor.u32 %v5452_v40, %v4843_v37  ;;  %3295 = vmatpush.bf16.msrb.mxu3 %v5074_v3  ;;  %v2309_v15 = vadd.f32 %v2308_v0, %v398_v44  ;;  %v5019_v3 = vld [vmem:[#allocation8 + $0x318] sm:$0xf0]  ;;  %v4958_v37 = vor.u32 %v5480_v33, %v4955_v9  ;;  %v5478_v44 = vld [vmem:[#allocation8 + $0x284] sm:$0xf] }
 0x1b9   :  { %3322 = vmatpush.bf16.msra.mxu0 %v4702_v31  ;;  %v5450_v31 = vld [vmem:[#allocation8 + $0x1a4] sm:$0xf]  ;;  %v2334_v55 = vpop.f32.mrf.mxu0  ;;  %v2322_v29 = vpop.f32.mrf.mxu3  ;;  %v5022_v51 = vor.u32 %v5496_v32, %v5019_v3 }
 0x1ba   :  { %3348 = vmatpush.bf16.msra.mxu2 %v4846_v23  ;;  %v4838_v58 = vor.u32 %v5450_v31, %v4835_v1  ;;  %v2335_v35 = vadd.f32 %v2334_v55, %v2321_v24  ;;  %v2323_v36 = vadd.f32 %v2322_v29, %v2309_v15  ;;  %v5494_v23 = vld [vmem:[#allocation8 + $0x304] sm:$0xf] }
 0x1bb   :  { %3336 = vmatpush.bf16.msra.mxu1 %v4766_v43  ;;  %v4971_v43 = vld [vmem:[#allocation8 + $0x2b8] sm:$0xf0]  ;;  %v5510_v15 = vld [vmem:[#allocation8 + $0x384] sm:$0xf] }
 0x1bc   :  { %3302 = vmatpush.bf16.msra.mxu3 %v4686_v7  ;;  %v5078_v29 = vor.u32 %v5510_v15, %v5075_v28 }
 0x1bd   :  { %3323 = vmatpush.bf16.msra.mxu0 %v4694_v5  ;;  %v4974_v5 = vor.u32 %v5484_v63, %v4971_v43  ;;  %v5400_v63 = vld [vmem:[#allocation8 + $0x14] sm:$0xf] }
 0x1be   :  { %3349 = vmatpush.bf16.msra.mxu2 %v4838_v58  ;;  %v4635_v58 = vld [vmem:[#allocation8 + $0x18] sm:$0xf0] }
 0x1bf   :  { %3337 = vmatpush.bf16.msra.mxu1 %v4758_v18  ;;  %v2348_v18 = vpop.f32.mrf.mxu1  ;;  %v2362_v40 = vpop.f32.mrf.mxu2  ;;  %v4638_v0 = vor.u32 %v5400_v63, %v4635_v58  ;;  %v5466_v58 = vld [vmem:[#allocation8 + $0x224] sm:$0xf] }
 0x1c0   :  { %3324 = vmatmul.bf16.vlgmr.msra.gmra.mxu0 %v5917_v47  ;;  %v5410_v47 = vld [vmem:[#allocation8 + $0x64] sm:$0xf]  ;;  %v2349_v62 = vadd.f32 %v2348_v18, %v2335_v35 }
 0x1c1   :  { %3372 = vmatpush.bf16.msrb.mxu0 %v5006_v14  ;;  %v4678_v53 = vor.u32 %v5410_v47, %v4675_v12  ;;  %v4830_v14 = vor.u32 %v5448_v4, %v4827_v20  ;;  %v2336_v39 = vpop.f32.mrf.mxu0  ;;  %v4646_v12 = vor.u32 %v5402_v46, %v4643_v48  ;;  %v5472_v46 = vld [vmem:[#allocation8 + $0x254] sm:$0xf]  ;;  %v4923_v48 = vld [vmem:[#allocation8 + $0x258] sm:$0xf0] }
 0x1c2   :  { %3338 = vmatmul.bf16.vlgmr.msra.gmra.mxu1 %v5919_v21  ;;  %v5404_v21 = vld [vmem:[#allocation8 + $0x34] sm:$0xf]  ;;  %v2337_v57 = vadd.f32 %v2336_v39, %v2323_v36  ;;  %v2363_v1 = vadd.f32 %v2362_v40, %v2349_v62 }
 0x1c3   :  { %3386 = vmatpush.bf16.msrb.mxu1 %v5070_v22  ;;  %3303 = vmatpush.bf16.msra.mxu3 %v4678_v53  ;;  %v5498_v22 = vld [vmem:[#allocation8 + $0x324] sm:$0xf]  ;;  %v4654_v7 = vor.u32 %v5404_v21, %v4651_v8 }
 0x1c4   :  { %3350 = vmatpush.bf16.msra.mxu2 %v4830_v14  ;;  %v2443_v61 = vmax.f32 %v2363_v1, 0.0  ;;  %v5091_v14 = vld [vmem:[#allocation8 + $0x3a8] sm:$0xf0]  ;;  %v5468_v1 = vld [vmem:[#allocation8 + $0x234] sm:$0xf] }
 0x1c5   :  { %3373 = vmatpush.bf16.msrb.mxu0 %v4998_v30  ;;  %v4819_v30 = vld [vmem:[#allocation8 + $0x188] sm:$0xf0]  ;;  %v5094_v18 = vor.u32 %v5514_v6, %v5091_v14 }
 0x1c6   :  { %v4822_v50 = vor.u32 %v5446_v2, %v4819_v30 }
 0x1c7   :  { %3387 = vmatpush.bf16.msrb.mxu1 %v5062_v54  ;;  %3304 = vmatpush.bf16.msra.mxu3 %v4670_v52  ;;  %v5030_v54 = vor.u32 %v5498_v22, %v5027_v45  ;;  %v2350_v47 = vpop.f32.mrf.mxu1  ;;  %v2364_v55 = vpop.f32.mrf.mxu2  ;;  %v4630_v52 = vor.u32 %v5398_v59, %v4627_v60 }
 0x1c8   :  { %3351 = vmatpush.bf16.msra.mxu2 %v4822_v50 }
 0x1c9   :  { %3374 = vmatpush.bf16.msrb.mxu0 %v4990_v49  ;;  %v4947_v49 = vld [vmem:[#allocation8 + $0x288] sm:$0xf0] }
 0x1ca   :  { %v4950_v31 = vor.u32 %v5478_v44, %v4947_v49  ;;  %v4939_v44 = vld [vmem:[#allocation8 + $0x278] sm:$0xf0] }
 0x1cb   :  { %3388 = vmatpush.bf16.msrb.mxu1 %v5054_v38  ;;  %3305 = vmatpush.bf16.msra.mxu3 %v4662_v42  ;;  %v5011_v38 = vld [vmem:[#allocation8 + $0x308] sm:$0xf0] }
 0x1cc   :  { %v5014_v53 = vor.u32 %v5494_v23, %v5011_v38  ;;  %v4931_v38 = vld [vmem:[#allocation8 + $0x268] sm:$0xf0] }
 0x1cd   :  { %3375 = vmatpush.bf16.msrb.mxu0 %v4982_v11  ;;  %v2351_v11 = vadd.f32 %v2350_v47, %v2337_v57  ;;  %v5474_v57 = vld [vmem:[#allocation8 + $0x264] sm:$0xf]  ;;  %v4926_v47 = vor.u32 %v5472_v46, %v4923_v48 }
 0x1cf   :  { %3389 = vmatpush.bf16.msrb.mxu1 %v5046_v25  ;;  %3306 = vmatpush.bf16.msra.mxu3 %v4654_v7  ;;  %v2365_v43 = vadd.f32 %v2364_v55, %v2351_v11  ;;  %v5516_v25 = vld [vmem:[#allocation8 + $0x3b4] sm:$0xf]  ;;  %v4907_v11 = vld [vmem:[#allocation8 + $0x238] sm:$0xf0]  ;;  %v4899_v55 = vld [vmem:[#allocation8 + $0x228] sm:$0xf0] }
 0x1d0   :  { %v5102_v4 = vor.u32 %v5516_v25, %v5099_v27  ;;  %v4910_v63 = vor.u32 %v5468_v1, %v4907_v11  ;;  %v4891_v25 = vld [vmem:[#allocation8 + $0x218] sm:$0xf0] }
 0x1d1   :  { %3376 = vmatpush.bf16.msrb.mxu0 %v4974_v5  ;;  %v2451_v17 = vmax.f32 %v2365_v43, 0.0  ;;  %v2376_v5 = vpop.f32.mrf.mxu3  ;;  %v5464_v43 = vld [vmem:[#allocation8 + $0x214] sm:$0xf] }
 0x1d2   :  { %v4894_v27 = vor.u32 %v5464_v43, %v4891_v25 }
 0x1d3   :  { %3390 = vmatpush.bf16.msrb.mxu1 %v5038_v26  ;;  %3307 = vmatpush.bf16.msra.mxu3 %v4646_v12  ;;  %v2459_v20 = vpack.c.bf16 %v2451_v17, %v2443_v61  ;;  %v5083_v26 = vld [vmem:[#allocation8 + $0x398] sm:$0xf0]  ;;  %v5470_v12 = vld [vmem:[#allocation8 + $0x244] sm:$0xf]  ;;  %v4883_v17 = vld [vmem:[#allocation8 + $0x208] sm:$0xf0] }
 0x1d4   :  { %v5086_v45 = vor.u32 %v5512_v16, %v5083_v26  ;;  %v5462_v61 = vld [vmem:[#allocation8 + $0x204] sm:$0xf] }
 0x1d5   :  { %3377 = vmatpush.bf16.msrb.mxu0 %v4966_v56  ;;  %3282 = vmatmul.bf16.vlgmr.msrb.gmra.mxu2 %v2459_v20  ;;  %v4886_v59 = vor.u32 %v5462_v61, %v4883_v17 }
 0x1d6   :  { %3404 = vmatpush.bf16.msrb.mxu2 %v5102_v4 }
 0x1d7   :  { %3391 = vmatpush.bf16.msrb.mxu1 %v5030_v54  ;;  %3308 = vmatpush.bf16.msra.mxu3 %v4638_v0  ;;  %v4902_v0 = vor.u32 %v5466_v58, %v4899_v55 }
 0x1d9   :  { %3378 = vmatpush.bf16.msrb.mxu0 %v4958_v37  ;;  %v2378_v24 = vpop.f32.mrf.mxu3  ;;  %v5476_v37 = vld [vmem:[#allocation8 + $0x274] sm:$0xf] }
 0x1da   :  { %3405 = vmatpush.bf16.msrb.mxu2 %v5094_v18  ;;  %v4942_v23 = vor.u32 %v5476_v37, %v4939_v44 }
 0x1db   :  { %3392 = vmatpush.bf16.msrb.mxu1 %v5022_v51  ;;  %3309 = vmatpush.bf16.msra.mxu3 %v4630_v52 }
 0x1dd   :  { %3379 = vmatpush.bf16.msrb.mxu0 %v4950_v31  ;;  %v2390_v22 = vpop.f32.mrf.mxu0  ;;  %v4915_v31 = vld [vmem:[#allocation8 + $0x248] sm:$0xf0] }
 0x1de   :  { %3406 = vmatpush.bf16.msrb.mxu2 %v5086_v45 }
 0x1df   :  { %3393 = vmatpush.bf16.msrb.mxu1 %v5014_v53  ;;  %v2404_v2 = vpop.f32.mrf.mxu1  ;;  %v4918_v53 = vor.u32 %v5470_v12, %v4915_v31 }
 0x1e0   :  { %3380 = vmatmul.bf16.vlgmr.msrb.gmra.mxu0 %v5933_v10  ;;  %v5531_v10 = vld [vmem:[#allocation7] sm:$0xff] }
 0x1e1   :  { %v399_v19 = vperm.slane %v5531_v10, 7  ;;  %v2581_v10 = vld [vmem:[#allocation10] sm:$0x3] }
 0x1e2   :  { %3394 = vmatmul.bf16.vlgmr.msrb.gmra.mxu1 %v2459_v20  ;;  %3407 = vmatpush.bf16.msrb.mxu2 %v5078_v29  ;;  %v2584_v29 = vperm.slane %v2581_v10, 1 }
 0x1e3   :  { %v2377_v42 = vadd.f32 %v2376_v5, %v399_v19  ;;  %v2379_v50 = vadd.f32 %v2378_v24, %v399_v19 }
 0x1e5   :  { %v2391_v56 = vadd.f32 %v2390_v22, %v2377_v42  ;;  %v2392_v33 = vpop.f32.mrf.mxu0  ;;  %3352 = vmatmul.bf16.vlgmr.msra.gmra.mxu2 %v5921_v13  ;;  %v4934_v13 = vor.u32 %v5474_v57, %v4931_v38 }
 0x1e6   :  { %v2393_v9 = vadd.f32 %v2392_v33, %v2379_v50 }
 0x1e7   :  { %v2418_v30 = vpop.f32.mrf.mxu2  ;;  %v2405_v32 = vadd.f32 %v2404_v2, %v2391_v56  ;;  %v2406_v35 = vpop.f32.mrf.mxu1  ;;  %v2583_v2 = vperm.slane %v2581_v10, 0 }
 0x1e8   :  { %v2407_v3 = vadd.f32 %v2406_v35, %v2393_v9 }
 0x1e9   :  { %v2432_v54 = vpop.f32.mrf.mxu3  ;;  %v2419_v36 = vadd.f32 %v2418_v30, %v2405_v32 }
 0x1eb   :  { %v2433_v39 = vadd.f32 %v2432_v54, %v2419_v36 }
 0x1ed   :  { %v2444_v49 = vmax.f32 %v2433_v39, 0.0 }
 0x1ef   :  { %v2420_v21 = vpop.f32.mrf.mxu2 }
 0x1f0   :  { %v2421_v8 = vadd.f32 %v2420_v21, %v2407_v3 }
 0x1f1   :  { %v2434_v40 = vpop.f32.mrf.mxu3 }
 0x1f2   :  { %v2435_v7 = vadd.f32 %v2434_v40, %v2421_v8 }
 0x1f4   :  { %v2452_v51 = vmax.f32 %v2435_v7, 0.0 }
 0x1f6   :  { %v2460_v62 = vpack.c.bf16 %v2452_v51, %v2444_v49 }
 0x1f8   :  { %5103 = vmatmul.msk.bf16.vlgmr.msrb.gmra.mxu3 %vm1873_vm0, %v2460_v62  ;;  %5104 = vmatmul.msk.bf16.vlgmr.msrb.gmra.mxu2 %vm1873_vm0, %v2460_v62 }
 0x1f9   :  { %3358 = vmatpush.bf16.msrb.mxu3 %v4942_v23 }
 0x1fd   :  { %3359 = vmatpush.bf16.msrb.mxu3 %v4934_v13  ;;  %v3199_v4 = vpop.f32.mrf.mxu0 }
 0x1fe   :  { %v3200_v56 = vadd.f32 %v3199_v4, %v2583_v2 }
 0x1ff   :  { %v3213_v60 = vpop.f32.mrf.mxu1 }
 0x200   :  { %v3214_v33 = vadd.f32 %v3213_v60, %v3200_v56 }
 0x201   :  { %3360 = vmatpush.bf16.msrb.mxu3 %v4926_v47 }
 0x205   :  { %3361 = vmatpush.bf16.msrb.mxu3 %v4918_v53  ;;  %v3201_v6 = vpop.f32.mrf.mxu0 }
 0x206   :  { %v3202_v21 = vadd.f32 %v3201_v6, %v2583_v2 }
 0x207   :  { %v3227_v52 = vpop.f32.mrf.mxu2  ;;  %v3215_v5 = vpop.f32.mrf.mxu1 }
 0x208   :  { %3310 = vmatmul.bf16.vlgmr.msra.gmra.mxu3 %v5915_v34  ;;  %v3228_v35 = vadd.f32 %v3227_v52, %v3214_v33  ;;  %v3216_v7 = vadd.f32 %v3215_v5, %v3202_v21 }
 0x209   :  { %3362 = vmatpush.bf16.msrb.mxu3 %v4910_v63  ;;  %v3241_v20 = vpop.f32.mrf.mxu3 }
 0x20a   :  { %v3242_v40 = vadd.f32 %v3241_v20, %v3228_v35 }
 0x20d   :  { %3363 = vmatpush.bf16.msrb.mxu3 %v4902_v0 }
 0x20f   :  { %v3229_v34 = vpop.f32.mrf.mxu2 }
 0x210   :  { %v3230_v62 = vadd.f32 %v3229_v34, %v3216_v7 }
 0x211   :  { %3364 = vmatpush.bf16.msrb.mxu3 %v4894_v27  ;;  %v3243_v14 = vpop.f32.mrf.mxu3 }
 0x212   :  { %v3244_v31 = vadd.f32 %v3243_v14, %v3230_v62 }
 0x215   :  { %3365 = vmatpush.bf16.msrb.mxu3 %v4886_v59 }
 0x218   :  { %3366 = vmatmul.bf16.vlgmr.msrb.gmra.mxu3 %v5930_v41 }
 0x21d   :  { %v3255_v16 = vpop.f32.mrf.mxu0 }
 0x21e   :  { %v3256_v37 = vadd.f32 %v3255_v16, %v3242_v40 }
 0x225   :  { %v3257_v24 = vpop.f32.mrf.mxu0 }
 0x226   :  { %v3258_v11 = vadd.f32 %v3257_v24, %v3244_v31 }
 0x22d   :  { %v3269_v18 = vpop.f32.mrf.mxu1 }
 0x22e   :  { %v3270_v57 = vadd.f32 %v3269_v18, %v3256_v37 }
 0x235   :  { %v3271_v45 = vpop.f32.mrf.mxu1 }
 0x236   :  { %v3272_v0 = vadd.f32 %v3271_v45, %v3258_v11 }
 0x23d   :  { %v3325_v19 = vpop.f32.mrf.mxu0 }
 0x23f   :  { %v3339_v41 = vpop.f32.mrf.mxu1 }
 0x245   :  { %v3327_v54 = vpop.f32.mrf.mxu0 }
 0x247   :  { %v3341_v36 = vpop.f32.mrf.mxu1 }
 0x258   :  { %v3283_v26 = vpop.f32.mrf.mxu2 }
 0x259   :  { %v3284_v46 = vadd.f32 %v3283_v26, %v3270_v57 }
 0x25d   :  { %v3381_v51 = vpop.f32.mrf.mxu0 }
 0x25f   :  { %v3395_v13 = vpop.f32.mrf.mxu1 }
 0x260   :  { %v3285_v15 = vpop.f32.mrf.mxu2 }
 0x261   :  { %v3286_v17 = vadd.f32 %v3285_v15, %v3272_v0 }
 0x265   :  { %v3383_v61 = vpop.f32.mrf.mxu0 }
 0x267   :  { %v3397_v4 = vpop.f32.mrf.mxu1 }
 0x268   :  { %v3353_v42 = vpop.f32.mrf.mxu2 }
 0x270   :  { %v3355_v3 = vpop.f32.mrf.mxu2 }
 0x27b   :  { %v3297_v22 = vpop.f32.mrf.mxu3  ;;  %v3409_v12 = vpop.f32.mrf.mxu2 }
 0x27c   :  { %v3298_v53 = vadd.f32 %v3297_v22, %v3284_v46 }
 0x27e   :  { %v3414_v43 = vmax.f32 %v3298_v53, 0.0 }
 0x283   :  { %v3299_v28 = vpop.f32.mrf.mxu3  ;;  %v3411_v5 = vpop.f32.mrf.mxu2 }
 0x284   :  { %v3300_v52 = vadd.f32 %v3299_v28, %v3286_v17 }
 0x286   :  { %v3416_v34 = vmax.f32 %v3300_v52, 0.0 }
 0x28b   :  { %v3311_v30 = vpop.f32.mrf.mxu3 }
 0x28c   :  { %v3312_v50 = vadd.f32 %v3311_v30, %v2584_v29 }
 0x28e   :  { %v3326_v9 = vadd.f32 %v3325_v19, %v3312_v50 }
 0x290   :  { %v3340_v39 = vadd.f32 %v3339_v41, %v3326_v9 }
 0x292   :  { %v3354_v49 = vadd.f32 %v3353_v42, %v3340_v39 }
 0x293   :  { %v3313_v32 = vpop.f32.mrf.mxu3 }
 0x294   :  { %v3314_v8 = vadd.f32 %v3313_v32, %v2584_v29 }
 0x296   :  { %v3328_v44 = vadd.f32 %v3327_v54, %v3314_v8 }
 0x298   :  { %v3342_v47 = vadd.f32 %v3341_v36, %v3328_v44 }
 0x29a   :  { %v3356_v58 = vadd.f32 %v3355_v3, %v3342_v47 }
 0x29b   :  { %v3367_v23 = vpop.f32.mrf.mxu3 }
 0x29c   :  { %v3368_v38 = vadd.f32 %v3367_v23, %v3354_v49 }
 0x29e   :  { %v3382_v48 = vadd.f32 %v3381_v51, %v3368_v38 }
 0x2a0   :  { %v3396_v1 = vadd.f32 %v3395_v13, %v3382_v48 }
 0x2a2   :  { %v3410_v63 = vadd.f32 %v3409_v12, %v3396_v1 }
 0x2a3   :  { %v3369_v55 = vpop.f32.mrf.mxu3 }
 0x2a4   :  { %v3415_v25 = vmax.f32 %v3410_v63, 0.0  ;;  %v3370_v27 = vadd.f32 %v3369_v55, %v3356_v58 }
 0x2a6   :  { %v3418_v59 = vpack.c.bf16 %v3415_v25, %v3414_v43  ;;  %v3384_v60 = vadd.f32 %v3383_v61, %v3370_v27 }
 0x2a8   :  { %3420 = vst [vmem:[#allocation11] sm:$0xff] %v3418_v59  ;;  %v3398_v20 = vadd.f32 %v3397_v4, %v3384_v60 }
 0x2aa   :  { %v3412_v6 = vadd.f32 %v3411_v5, %v3398_v20 }
 0x2ac   :  { %v3417_v14 = vmax.f32 %v3412_v6, 0.0 }
 0x2ae   :  { %v3419_v18 = vpack.c.bf16 %v3417_v14, %v3416_v34 }
 0x2b0   :  { %3421 = vst [vmem:[#allocation11 + $0x8] sm:$0xff] %v3419_v18 }
 0x2b1   :  { %3425 = vsyncadd [#allocation4], 128  ;;  %s3428_s21 = sshll.u32 %s5956_s5, 4  ;;  %s5695_s22 = smov [#allocation11]   ;;  %s3429_s21 = int_to_ptr.hbm [resolvable:$true] %s3428_s21 }
 0x2b2   :  { %s3426_s23 = sshll.u32 %s5695_s22, 4  ;;  %s3427_s23 = int_to_ptr.vmem [resolvable:$true] %s3426_s23 }
 0x2b3   :  { %3434 = dma.vmem_to_hbm [thread:$0]  %s3427_s23, 128, %s3429_s21, [#allocation4], %s5688_s30, %s5688_s30, %s5689_s6  }
 0x2b4   :  { %5682 = dma.done.wait [#allocation4], 256  }
 0x2b5   :  { %5683 = vsyncadd [#allocation4], 4294967040 }
 0x2b6   :  { %3439 = vsyncpa [#allocation3], 1 }
 0x2b7   :  { %3440 = vsyncpa [#allocation6], 1 }
 0x2b8   :  { %3441 = vsyncpa [#allocation9], 1 }
 0x2b9   :  { %3442 = vsyncpa [#allocation4], 1 }

</bundles_post_ra>
